<compile_context>
chip_gen: v5e
topology: v5e:2x2
jax: 0.10.0
libtpu: 0.0.40
codegen_flags: <defaults>
</compile_context>

<pallas_src>
import math
import functools
import numpy as np
import jax
import jax.numpy as jnp
from jax import lax
from jax.experimental import pallas as pl
from jax.experimental.pallas import tpu as pltpu


# ----------------------------------------------------------------------------
# Fused kernel: projections + rel-pos scores + rel_shift + softmax + attn@V + out-proj
# ----------------------------------------------------------------------------
def _fused_relpos_mha_kernel(q_ref, k_ref, v_ref, pos_ref,
                             wq_ref, wk_ref, wv_ref, wpos_ref, wout_ref,
                             bq_ref, bk_ref, bv_ref, bout_ref,
                             pbu_ref, pbv_ref,
                             o_ref,
                             ctx_ref,
                             *, num_heads, d_k, scale):
    f32 = jnp.float32
    bf16 = jnp.bfloat16
    T = q_ref.shape[1]

    # ---- full-width projections: one (T,H)@(H,H) MXU matmul per input (K = H) ----
    xq = q_ref[0].astype(bf16)
    xk = k_ref[0].astype(bf16)
    xv = v_ref[0].astype(bf16)
    xp = pos_ref[0].astype(bf16)

    qh = jnp.dot(xq, wq_ref[...], preferred_element_type=f32) + bq_ref[...]
    kh = jnp.dot(xk, wk_ref[...], preferred_element_type=f32) + bk_ref[...]
    vh = jnp.dot(xv, wv_ref[...], preferred_element_type=f32) + bv_ref[...]
    ph = jnp.dot(xp, wpos_ref[...], preferred_element_type=f32)          # w_pos has no bias

    # pos_bias_u / pos_bias_v are head-major along the lane (H) axis; the 1/sqrt(d_k)
    # score scale is folded in here (scores = (ac + bd) * scale is linear in q_u/q_v).
    q_u = ((qh + pbu_ref[...]) * scale).astype(bf16)    # fp32 math, bf16 MXU operand
    q_v = ((qh + pbv_ref[...]) * scale).astype(bf16)
    kh_b = kh.astype(bf16)
    ph_b = ph.astype(bf16)
    vh_b = vh.astype(bf16)

    # ---- rel_shift constants, computed ONCE and shared by all heads ----
    row = lax.broadcasted_iota(jnp.int32, (T, T), 0)
    col = lax.broadcasted_iota(jnp.int32, (T, T), 1)
    lower_mask = col <= row                 # region taken from the row-sheared bd
    diag_mask = col == row + 1              # the injected zero column
    use_strided_roll = (T % 128 == 0)       # lane-aligned: single strided XLU rotate
    if not use_strided_roll:
        # fallback: log2(T) barrel shifter (kept for ragged / lane-unaligned T)
        shift_amt = (lax.broadcasted_iota(jnp.int32, (T, 1), 0) + 1) % T
        nbits = max(1, (T - 1).bit_length())

    dn_nt = (((1,), (1,)), ((), ()))        # contract last dims: (T,dk) x (T,dk) -> (T,T)

    for h in range(num_heads):              # static unroll; heads are contiguous lane groups
        sl = slice(h * d_k, (h + 1) * d_k)

        ac = lax.dot_general(q_u[:, sl], kh_b[:, sl], dn_nt, preferred_element_type=f32)
        bd = lax.dot_general(q_v[:, sl], ph_b[:, sl], dn_nt, preferred_element_type=f32)

        # In-kernel rel_shift, exact equivalent of the reference pad/reshape/slice trick:
        #   shifted[i, j] = bd[i,   T-1-i+j]  for j <= i
        #                 = 0                 for j == i+1
        #                 = bd[i+1, j-i-2]    for j >= i+2
        # r1[i, j] = bd[i, (j - (i+1)) mod T]  (per-row right-rotation / row shear)
        if use_strided_roll:
            # single strided rotate: row i rotated by shift + i*stride = i + 1
            r1 = pltpu.roll(bd, shift=1, axis=1, stride=1, stride_axis=0)
        else:
            r1 = bd
            for bit in range(nbits):
                rolled = jnp.roll(r1, 1 << bit, axis=-1)
                r1 = jnp.where(((shift_amt >> bit) & 1) == 1, rolled, r1)
        r2 = jnp.roll(r1, -1, axis=0)       # r2[i, j] = bd[(i+1) mod T, (j-i-2) mod T]
        bd_shift = jnp.where(lower_mask, r1,
                             jnp.where(diag_mask, jnp.float32(0.0), r2))

        # softmax in fp32 (mask=None, dropout_p=0); denominator via EUP reciprocal.
        # NOTE: approx reciprocal -> rows sum to 1 only to ~1e-3 rel; use approx=False for
        # training-grade numerics.
        s = ac + bd_shift
        m = jnp.max(s, axis=-1, keepdims=True)
        e = jnp.exp(s - m)
        p = e * pl.reciprocal(jnp.sum(e, axis=-1, keepdims=True), approx=True)

        # per-head context written into its lane-dense column group of the (T, H) scratch
        ctx_ref[:, sl] = jnp.dot(p.astype(bf16), vh_b[:, sl], preferred_element_type=f32)

    # ---- single full-width output projection (K = H) + bias ----
    o_ref[0] = (jnp.dot(ctx_ref[...].astype(bf16), wout_ref[...],
                        preferred_element_type=f32) + bout_ref[...]).astype(o_ref.dtype)


# ----------------------------------------------------------------------------
# Wrapper
# ----------------------------------------------------------------------------
def rel_pos_mha_pallas(q, k, v, pos, params, num_heads):
    B, T, H = q.shape
    d_k = H // num_heads
    f32 = jnp.float32
    bf16 = jnp.bfloat16

    # Weights pre-transposed so the kernel computes x @ W.T as x @ (W.T); bf16 halves their
    # HBM traffic and feeds the MXU at bf16 peak. Biases / pos biases stay fp32.
    wqT = params["wq"].T.astype(bf16)
    wkT = params["wk"].T.astype(bf16)
    wvT = params["wv"].T.astype(bf16)
    wposT = params["wpos"].T.astype(bf16)
    woutT = params["wout"].T.astype(bf16)

    bq = params["bq"].reshape(1, H).astype(f32)
    bk = params["bk"].reshape(1, H).astype(f32)
    bv = params["bv"].reshape(1, H).astype(f32)
    bout = params["bout"].reshape(1, H).astype(f32)
    pbu = params["pos_bias_u"].reshape(1, H).astype(f32)   # heads -> contiguous lane groups
    pbv = params["pos_bias_v"].reshape(1, H).astype(f32)

    seq_spec = pl.BlockSpec((1, T, H), lambda b: (b, 0, 0))
    w_spec = pl.BlockSpec((H, H), lambda b: (0, 0))
    vec_spec = pl.BlockSpec((1, H), lambda b: (0, 0))

    kernel = functools.partial(_fused_relpos_mha_kernel,
                               num_heads=num_heads, d_k=d_k,
                               scale=1.0 / math.sqrt(d_k))

    return pl.pallas_call(
        kernel,
        out_shape=jax.ShapeDtypeStruct((B, T, H), f32),
        grid=(B,),
        in_specs=[seq_spec, seq_spec, seq_spec, seq_spec,
                  w_spec, w_spec, w_spec, w_spec, w_spec,
                  vec_spec, vec_spec, vec_spec, vec_spec,
                  vec_spec, vec_spec],
        out_specs=seq_spec,
        scratch_shapes=[pltpu.VMEM((T, H), f32)],
        compiler_params=pltpu.CompilerParams(
            dimension_semantics=("parallel",),
            # Raise the scoped-VMEM budget above the 16 MiB (v5e) / 32 MiB (v6e/v7x)
            # defaults while staying under v7x's 64 MiB physical VMEM.
            vmem_limit_bytes=48 * 1024 * 1024),
    )(q, k, v, pos, wqT, wkT, wvT, wposT, woutT, bq, bk, bv, bout, pbu, pbv)


# ----------------------------------------------------------------------------
# Pure-JAX reference (same intended semantics, fp32 throughout) for correctness check
# ----------------------------------------------------------------------------
def rel_shift_ref(p):
    B, nh, Tq, Tp = p.shape
    zero_pad = jnp.zeros((B, nh, Tq, 1), p.dtype)
    x_padded = jnp.concatenate([zero_pad, p], axis=-1)        # (B, nh, Tq, Tp+1)
    x_padded = x_padded.reshape(B, nh, Tp + 1, Tq)
    return x_padded[:, :, 1:, :].reshape(p.shape)


def rel_pos_mha_ref(q, k, v, pos, params, num_heads):
    B, T, H = q.shape
    d_k = H // num_heads

    def lin(x, w, b=None):
        y = jnp.einsum("bth,oh->bto", x, w)
        return y if b is None else y + b

    qp = lin(q, params["wq"], params["bq"]).reshape(B, T, num_heads, d_k)
    kp = lin(k, params["wk"], params["bk"]).reshape(B, T, num_heads, d_k).transpose(0, 2, 1, 3)
    vp = lin(v, params["wv"], params["bv"]).reshape(B, T, num_heads, d_k).transpose(0, 2, 1, 3)
    pp = lin(pos, params["wpos"]).reshape(B, T, num_heads, d_k).transpose(0, 2, 1, 3)

    q_u = (qp + params["pos_bias_u"]).transpose(0, 2, 1, 3)
    q_v = (qp + params["pos_bias_v"]).transpose(0, 2, 1, 3)
    ac = jnp.einsum("bhqd,bhkd->bhqk", q_u, kp)
    bd = jnp.einsum("bhqd,bhkd->bhqk", q_v, pp)
    bd = rel_shift_ref(bd)
    scores = (ac + bd) / math.sqrt(d_k)
    attn = jax.nn.softmax(scores, axis=-1)
    ctx = jnp.einsum("bhqk,bhkd->bhqd", attn, vp)
    ctx = ctx.transpose(0, 2, 1, 3).reshape(B, T, H)
    return jnp.einsum("bth,oh->bto", ctx, params["wout"]) + params["bout"]


if __name__ == "__main__":
    # Small but TPU-natural shapes (per review: T multiple of 8 and >=128, H multiple of 128)
    B, T, H, NH = 2, 128, 128, 4
    DK = H // NH

    key = jax.random.PRNGKey(0)
    ks = jax.random.split(key, 20)

    def uni(kk, shape, bound):
        return jax.random.uniform(kk, shape, jnp.float32, -bound, bound)

    lin_b = 1.0 / math.sqrt(H)
    xav_b = math.sqrt(6.0 / (NH + DK))
    params = {
        "wq": uni(ks[0], (H, H), lin_b),  "bq": uni(ks[1], (H,), lin_b),
        "wk": uni(ks[2], (H, H), lin_b),  "bk": uni(ks[3], (H,), lin_b),
        "wv": uni(ks[4], (H, H), lin_b),  "bv": uni(ks[5], (H,), lin_b),
        "wout": uni(ks[6], (H, H), lin_b), "bout": uni(ks[7], (H,), lin_b),
        "wpos": uni(ks[8], (H, H), lin_b),
        "pos_bias_u": uni(ks[9], (NH, DK), xav_b),
        "pos_bias_v": uni(ks[10], (NH, DK), xav_b),
    }

    q = jax.random.normal(ks[11], (B, T, H), jnp.float32)
    k = jax.random.normal(ks[12], (B, T, H), jnp.float32)
    v = jax.random.normal(ks[13], (B, T, H), jnp.float32)
    pos = jax.random.normal(ks[14], (B, T, H), jnp.float32)

    out = rel_pos_mha_pallas(q, k, v, pos, params, NH)
    out = jax.block_until_ready(out)

    ref = jax.block_until_ready(rel_pos_mha_ref(q, k, v, pos, params, NH))
    # bf16 MXU operands (fp32 accumulation) + approx reciprocal vs. fp32 reference:
    # observed error is well below these tolerances at this scale.
    np.testing.assert_allclose(np.asarray(out), np.asarray(ref), rtol=2e-2, atol=2e-2)

    print("KERNEL_OK")
</pallas_src>

<mosaic_0001>
module attributes {stable_mosaic.version = 11 : i64} {
  func.func @_fused_relpos_mha_kernel(%arg0: i32, %arg1: memref<1x128x128xf32, #tpu.memory_space<vmem>>, %arg2: memref<1x128x128xf32, #tpu.memory_space<vmem>>, %arg3: memref<1x128x128xf32, #tpu.memory_space<vmem>>, %arg4: memref<1x128x128xf32, #tpu.memory_space<vmem>>, %arg5: memref<128x128xbf16, #tpu.memory_space<vmem>>, %arg6: memref<128x128xbf16, #tpu.memory_space<vmem>>, %arg7: memref<128x128xbf16, #tpu.memory_space<vmem>>, %arg8: memref<128x128xbf16, #tpu.memory_space<vmem>>, %arg9: memref<128x128xbf16, #tpu.memory_space<vmem>>, %arg10: memref<1x128xf32, #tpu.memory_space<vmem>>, %arg11: memref<1x128xf32, #tpu.memory_space<vmem>>, %arg12: memref<1x128xf32, #tpu.memory_space<vmem>>, %arg13: memref<1x128xf32, #tpu.memory_space<vmem>>, %arg14: memref<1x128xf32, #tpu.memory_space<vmem>>, %arg15: memref<1x128xf32, #tpu.memory_space<vmem>>, %arg16: memref<1x128x128xf32, #tpu.memory_space<vmem>>, %arg17: memref<128x128xf32, #tpu.memory_space<vmem>>) attributes {dimension_semantics = [#tpu.dimension_semantics<parallel>], iteration_bounds = array<i64: 2>, scalar_prefetch = 0 : i64, scratch_operands = 1 : i64, tpu.core_type = #tpu.core_type<tc>, window_params = [{transform_indices = @transform_0, window_bounds = array<i64: 1, 128, 128>}, {transform_indices = @transform_1, window_bounds = array<i64: 1, 128, 128>}, {transform_indices = @transform_2, window_bounds = array<i64: 1, 128, 128>}, {transform_indices = @transform_3, window_bounds = array<i64: 1, 128, 128>}, {pipeline_mode = #tpu.pipeline_mode<synchronous>, transform_indices = @transform_4, window_bounds = array<i64: 128, 128>}, {pipeline_mode = #tpu.pipeline_mode<synchronous>, transform_indices = @transform_5, window_bounds = array<i64: 128, 128>}, {pipeline_mode = #tpu.pipeline_mode<synchronous>, transform_indices = @transform_6, window_bounds = array<i64: 128, 128>}, {pipeline_mode = #tpu.pipeline_mode<synchronous>, transform_indices = @transform_7, window_bounds = array<i64: 128, 128>}, {pipeline_mode = #tpu.pipeline_mode<synchronous>, transform_indices = @transform_8, window_bounds = array<i64: 128, 128>}, {pipeline_mode = #tpu.pipeline_mode<synchronous>, transform_indices = @transform_9, window_bounds = array<i64: 1, 128>}, {pipeline_mode = #tpu.pipeline_mode<synchronous>, transform_indices = @transform_10, window_bounds = array<i64: 1, 128>}, {pipeline_mode = #tpu.pipeline_mode<synchronous>, transform_indices = @transform_11, window_bounds = array<i64: 1, 128>}, {pipeline_mode = #tpu.pipeline_mode<synchronous>, transform_indices = @transform_12, window_bounds = array<i64: 1, 128>}, {pipeline_mode = #tpu.pipeline_mode<synchronous>, transform_indices = @transform_13, window_bounds = array<i64: 1, 128>}, {pipeline_mode = #tpu.pipeline_mode<synchronous>, transform_indices = @transform_14, window_bounds = array<i64: 1, 128>}, {transform_indices = @transform_15, window_bounds = array<i64: 1, 128, 128>}]} {
    %c0 = arith.constant 0 : index
    %c0_0 = arith.constant 0 : index
    %c0_1 = arith.constant 0 : index
    %0 = vector.load %arg1[%c0, %c0_0, %c0_1] : memref<1x128x128xf32, #tpu.memory_space<vmem>>, vector<1x128x128xf32>
    %1 = vector.shape_cast %0 : vector<1x128x128xf32> to vector<128x128xf32>
    %2 = arith.truncf %1 : vector<128x128xf32> to vector<128x128xbf16>
    %c0_2 = arith.constant 0 : index
    %c0_3 = arith.constant 0 : index
    %c0_4 = arith.constant 0 : index
    %3 = vector.load %arg2[%c0_2, %c0_3, %c0_4] : memref<1x128x128xf32, #tpu.memory_space<vmem>>, vector<1x128x128xf32>
    %4 = vector.shape_cast %3 : vector<1x128x128xf32> to vector<128x128xf32>
    %5 = arith.truncf %4 : vector<128x128xf32> to vector<128x128xbf16>
    %c0_5 = arith.constant 0 : index
    %c0_6 = arith.constant 0 : index
    %c0_7 = arith.constant 0 : index
    %6 = vector.load %arg3[%c0_5, %c0_6, %c0_7] : memref<1x128x128xf32, #tpu.memory_space<vmem>>, vector<1x128x128xf32>
    %7 = vector.shape_cast %6 : vector<1x128x128xf32> to vector<128x128xf32>
    %8 = arith.truncf %7 : vector<128x128xf32> to vector<128x128xbf16>
    %c0_8 = arith.constant 0 : index
    %c0_9 = arith.constant 0 : index
    %c0_10 = arith.constant 0 : index
    %9 = vector.load %arg4[%c0_8, %c0_9, %c0_10] : memref<1x128x128xf32, #tpu.memory_space<vmem>>, vector<1x128x128xf32>
    %10 = vector.shape_cast %9 : vector<1x128x128xf32> to vector<128x128xf32>
    %11 = arith.truncf %10 : vector<128x128xf32> to vector<128x128xbf16>
    %c0_11 = arith.constant 0 : index
    %c0_12 = arith.constant 0 : index
    %12 = vector.load %arg5[%c0_11, %c0_12] : memref<128x128xbf16, #tpu.memory_space<vmem>>, vector<128x128xbf16>
    %cst = arith.constant dense<0.000000e+00> : vector<128x128xf32>
    %13 = tpu.matmul %2, %12, %cst {dimension_numbers = #tpu.dot_dimension_numbers<[1], [0], [0], [1], [0, 0, 1, 1], [], []>} : vector<128x128xbf16>, vector<128x128xbf16>, vector<128x128xf32> -> vector<128x128xf32>
    %c0_13 = arith.constant 0 : index
    %c0_14 = arith.constant 0 : index
    %14 = vector.load %arg10[%c0_13, %c0_14] : memref<1x128xf32, #tpu.memory_space<vmem>>, vector<1x128xf32>
    %15 = vector.broadcast %14 : vector<1x128xf32> to vector<128x128xf32>
    %16 = arith.addf %13, %15 : vector<128x128xf32>
    %c0_15 = arith.constant 0 : index
    %c0_16 = arith.constant 0 : index
    %17 = vector.load %arg6[%c0_15, %c0_16] : memref<128x128xbf16, #tpu.memory_space<vmem>>, vector<128x128xbf16>
    %cst_17 = arith.constant dense<0.000000e+00> : vector<128x128xf32>
    %18 = tpu.matmul %5, %17, %cst_17 {dimension_numbers = #tpu.dot_dimension_numbers<[1], [0], [0], [1], [0, 0, 1, 1], [], []>} : vector<128x128xbf16>, vector<128x128xbf16>, vector<128x128xf32> -> vector<128x128xf32>
    %c0_18 = arith.constant 0 : index
    %c0_19 = arith.constant 0 : index
    %19 = vector.load %arg11[%c0_18, %c0_19] : memref<1x128xf32, #tpu.memory_space<vmem>>, vector<1x128xf32>
    %20 = vector.broadcast %19 : vector<1x128xf32> to vector<128x128xf32>
    %21 = arith.addf %18, %20 : vector<128x128xf32>
    %c0_20 = arith.constant 0 : index
    %c0_21 = arith.constant 0 : index
    %22 = vector.load %arg7[%c0_20, %c0_21] : memref<128x128xbf16, #tpu.memory_space<vmem>>, vector<128x128xbf16>
    %cst_22 = arith.constant dense<0.000000e+00> : vector<128x128xf32>
    %23 = tpu.matmul %8, %22, %cst_22 {dimension_numbers = #tpu.dot_dimension_numbers<[1], [0], [0], [1], [0, 0, 1, 1], [], []>} : vector<128x128xbf16>, vector<128x128xbf16>, vector<128x128xf32> -> vector<128x128xf32>
    %c0_23 = arith.constant 0 : index
    %c0_24 = arith.constant 0 : index
    %24 = vector.load %arg12[%c0_23, %c0_24] : memref<1x128xf32, #tpu.memory_space<vmem>>, vector<1x128xf32>
    %25 = vector.broadcast %24 : vector<1x128xf32> to vector<128x128xf32>
    %26 = arith.addf %23, %25 : vector<128x128xf32>
    %c0_25 = arith.constant 0 : index
    %c0_26 = arith.constant 0 : index
    %27 = vector.load %arg8[%c0_25, %c0_26] : memref<128x128xbf16, #tpu.memory_space<vmem>>, vector<128x128xbf16>
    %cst_27 = arith.constant dense<0.000000e+00> : vector<128x128xf32>
    %28 = tpu.matmul %11, %27, %cst_27 {dimension_numbers = #tpu.dot_dimension_numbers<[1], [0], [0], [1], [0, 0, 1, 1], [], []>} : vector<128x128xbf16>, vector<128x128xbf16>, vector<128x128xf32> -> vector<128x128xf32>
    %c0_28 = arith.constant 0 : index
    %c0_29 = arith.constant 0 : index
    %29 = vector.load %arg14[%c0_28, %c0_29] : memref<1x128xf32, #tpu.memory_space<vmem>>, vector<1x128xf32>
    %30 = vector.broadcast %29 : vector<1x128xf32> to vector<128x128xf32>
    %31 = arith.addf %16, %30 : vector<128x128xf32>
    %cst_30 = arith.constant 0.176776692 : f32
    %32 = vector.broadcast %cst_30 : f32 to vector<128x128xf32>
    %33 = arith.mulf %31, %32 : vector<128x128xf32>
    %34 = arith.truncf %33 : vector<128x128xf32> to vector<128x128xbf16>
    %c0_31 = arith.constant 0 : index
    %c0_32 = arith.constant 0 : index
    %35 = vector.load %arg15[%c0_31, %c0_32] : memref<1x128xf32, #tpu.memory_space<vmem>>, vector<1x128xf32>
    %36 = vector.broadcast %35 : vector<1x128xf32> to vector<128x128xf32>
    %37 = arith.addf %16, %36 : vector<128x128xf32>
    %cst_33 = arith.constant 0.176776692 : f32
    %38 = vector.broadcast %cst_33 : f32 to vector<128x128xf32>
    %39 = arith.mulf %37, %38 : vector<128x128xf32>
    %40 = arith.truncf %39 : vector<128x128xf32> to vector<128x128xbf16>
    %41 = arith.truncf %21 : vector<128x128xf32> to vector<128x128xbf16>
    %42 = arith.truncf %28 : vector<128x128xf32> to vector<128x128xbf16>
    %43 = arith.truncf %26 : vector<128x128xf32> to vector<128x128xbf16>
    %44 = tpu.iota {dimensions = array<i32: 0>} : vector<128x128xi32>
    %45 = tpu.iota {dimensions = array<i32: 1>} : vector<128x128xi32>
    %46 = arith.cmpi sle, %45, %44 : vector<128x128xi32>
    %c1_i32 = arith.constant 1 : i32
    %47 = vector.broadcast %c1_i32 : i32 to vector<128x128xi32>
    %48 = arith.addi %44, %47 : vector<128x128xi32>
    %49 = arith.cmpi eq, %45, %48 : vector<128x128xi32>
    %50 = vector.extract_strided_slice %34 {offsets = [0, 0], sizes = [128, 32], strides = [1, 1]} : vector<128x128xbf16> to vector<128x32xbf16>
    %51 = vector.extract_strided_slice %41 {offsets = [0, 0], sizes = [128, 32], strides = [1, 1]} : vector<128x128xbf16> to vector<128x32xbf16>
    %cst_34 = arith.constant dense<0.000000e+00> : vector<128x128xf32>
    %52 = tpu.matmul %50, %51, %cst_34 {dimension_numbers = #tpu.dot_dimension_numbers<[1], [1], [0], [0], [0, 0, 1, 0], [], []>} : vector<128x32xbf16>, vector<128x32xbf16>, vector<128x128xf32> -> vector<128x128xf32>
    %53 = vector.extract_strided_slice %40 {offsets = [0, 0], sizes = [128, 32], strides = [1, 1]} : vector<128x128xbf16> to vector<128x32xbf16>
    %54 = vector.extract_strided_slice %42 {offsets = [0, 0], sizes = [128, 32], strides = [1, 1]} : vector<128x128xbf16> to vector<128x32xbf16>
    %cst_35 = arith.constant dense<0.000000e+00> : vector<128x128xf32>
    %55 = tpu.matmul %53, %54, %cst_35 {dimension_numbers = #tpu.dot_dimension_numbers<[1], [1], [0], [0], [0, 0, 1, 0], [], []>} : vector<128x32xbf16>, vector<128x32xbf16>, vector<128x128xf32> -> vector<128x128xf32>
    %c1_i32_36 = arith.constant 1 : i32
    %56 = tpu.dynamic_rotate %55 by %c1_i32_36 dim 1 {stride = 1 : si32, stride_dimension = 0 : si32} : vector<128x128xf32>, i32 -> vector<128x128xf32>
    %57 = vector.extract_strided_slice %56 {offsets = [1, 0], sizes = [127, 128], strides = [1, 1]} : vector<128x128xf32> to vector<127x128xf32>
    %58 = vector.extract_strided_slice %56 {offsets = [0, 0], sizes = [1, 128], strides = [1, 1]} : vector<128x128xf32> to vector<1x128xf32>
    %59 = tpu.concatenate %57, %58 in 0 : vector<127x128xf32>, vector<1x128xf32> -> vector<128x128xf32>
    %cst_37 = arith.constant 0.000000e+00 : f32
    %60 = vector.broadcast %cst_37 : f32 to vector<128x128xf32>
    %61 = arith.select %49, %60, %59 : vector<128x128xi1>, vector<128x128xf32>
    %62 = arith.select %46, %56, %61 : vector<128x128xi1>, vector<128x128xf32>
    %63 = arith.addf %52, %62 : vector<128x128xf32>
    %cst_38 = arith.constant dense<0xFF800000> : vector<128xf32>
    %64 = vector.multi_reduction <maximumf>, %63, %cst_38 [1] : vector<128x128xf32> to vector<128xf32>
    %65 = vector.shape_cast %64 : vector<128xf32> to vector<128x1xf32>
    %66 = vector.broadcast %65 : vector<128x1xf32> to vector<128x128xf32>
    %67 = arith.subf %63, %66 : vector<128x128xf32>
    %68 = math.exp %67 : vector<128x128xf32>
    %cst_39 = arith.constant dense<0.000000e+00> : vector<128xf32>
    %69 = vector.multi_reduction <add>, %68, %cst_39 [1] : vector<128x128xf32> to vector<128xf32>
    %70 = vector.shape_cast %69 : vector<128xf32> to vector<128x1xf32>
    %71 = tpu.reciprocal %70 {approx = true} : vector<128x1xf32> -> vector<128x1xf32>
    %72 = vector.broadcast %71 : vector<128x1xf32> to vector<128x128xf32>
    %73 = arith.mulf %68, %72 : vector<128x128xf32>
    %74 = arith.truncf %73 : vector<128x128xf32> to vector<128x128xbf16>
    %75 = vector.extract_strided_slice %43 {offsets = [0, 0], sizes = [128, 32], strides = [1, 1]} : vector<128x128xbf16> to vector<128x32xbf16>
    %cst_40 = arith.constant dense<0.000000e+00> : vector<128x32xf32>
    %76 = tpu.matmul %74, %75, %cst_40 {dimension_numbers = #tpu.dot_dimension_numbers<[1], [0], [0], [1], [0, 0, 1, 1], [], []>} : vector<128x128xbf16>, vector<128x32xbf16>, vector<128x32xf32> -> vector<128x32xf32>
    %c0_41 = arith.constant 0 : index
    %c0_42 = arith.constant 0 : index
    %77 = vector.load %arg17[%c0_41, %c0_42] : memref<128x128xf32, #tpu.memory_space<vmem>>, vector<128x32xf32>
    tpu.vector_store %arg17[%c0_41, %c0_42], %76 {strides = array<i32>} : memref<128x128xf32, #tpu.memory_space<vmem>>, vector<128x32xf32>,
    %78 = vector.extract_strided_slice %34 {offsets = [0, 32], sizes = [128, 32], strides = [1, 1]} : vector<128x128xbf16> to vector<128x32xbf16>
    %79 = vector.extract_strided_slice %41 {offsets = [0, 32], sizes = [128, 32], strides = [1, 1]} : vector<128x128xbf16> to vector<128x32xbf16>
    %cst_43 = arith.constant dense<0.000000e+00> : vector<128x128xf32>
    %80 = tpu.matmul %78, %79, %cst_43 {dimension_numbers = #tpu.dot_dimension_numbers<[1], [1], [0], [0], [0, 0, 1, 0], [], []>} : vector<128x32xbf16>, vector<128x32xbf16>, vector<128x128xf32> -> vector<128x128xf32>
    %81 = vector.extract_strided_slice %40 {offsets = [0, 32], sizes = [128, 32], strides = [1, 1]} : vector<128x128xbf16> to vector<128x32xbf16>
    %82 = vector.extract_strided_slice %42 {offsets = [0, 32], sizes = [128, 32], strides = [1, 1]} : vector<128x128xbf16> to vector<128x32xbf16>
    %cst_44 = arith.constant dense<0.000000e+00> : vector<128x128xf32>
    %83 = tpu.matmul %81, %82, %cst_44 {dimension_numbers = #tpu.dot_dimension_numbers<[1], [1], [0], [0], [0, 0, 1, 0], [], []>} : vector<128x32xbf16>, vector<128x32xbf16>, vector<128x128xf32> -> vector<128x128xf32>
    %c1_i32_45 = arith.constant 1 : i32
    %84 = tpu.dynamic_rotate %83 by %c1_i32_45 dim 1 {stride = 1 : si32, stride_dimension = 0 : si32} : vector<128x128xf32>, i32 -> vector<128x128xf32>
    %85 = vector.extract_strided_slice %84 {offsets = [1, 0], sizes = [127, 128], strides = [1, 1]} : vector<128x128xf32> to vector<127x128xf32>
    %86 = vector.extract_strided_slice %84 {offsets = [0, 0], sizes = [1, 128], strides = [1, 1]} : vector<128x128xf32> to vector<1x128xf32>
    %87 = tpu.concatenate %85, %86 in 0 : vector<127x128xf32>, vector<1x128xf32> -> vector<128x128xf32>
    %cst_46 = arith.constant 0.000000e+00 : f32
    %88 = vector.broadcast %cst_46 : f32 to vector<128x128xf32>
    %89 = arith.select %49, %88, %87 : vector<128x128xi1>, vector<128x128xf32>
    %90 = arith.select %46, %84, %89 : vector<128x128xi1>, vector<128x128xf32>
    %91 = arith.addf %80, %90 : vector<128x128xf32>
    %cst_47 = arith.constant dense<0xFF800000> : vector<128xf32>
    %92 = vector.multi_reduction <maximumf>, %91, %cst_47 [1] : vector<128x128xf32> to vector<128xf32>
    %93 = vector.shape_cast %92 : vector<128xf32> to vector<128x1xf32>
    %94 = vector.broadcast %93 : vector<128x1xf32> to vector<128x128xf32>
    %95 = arith.subf %91, %94 : vector<128x128xf32>
    %96 = math.exp %95 : vector<128x128xf32>
    %cst_48 = arith.constant dense<0.000000e+00> : vector<128xf32>
    %97 = vector.multi_reduction <add>, %96, %cst_48 [1] : vector<128x128xf32> to vector<128xf32>
    %98 = vector.shape_cast %97 : vector<128xf32> to vector<128x1xf32>
    %99 = tpu.reciprocal %98 {approx = true} : vector<128x1xf32> -> vector<128x1xf32>
    %100 = vector.broadcast %99 : vector<128x1xf32> to vector<128x128xf32>
    %101 = arith.mulf %96, %100 : vector<128x128xf32>
    %102 = arith.truncf %101 : vector<128x128xf32> to vector<128x128xbf16>
    %103 = vector.extract_strided_slice %43 {offsets = [0, 32], sizes = [128, 32], strides = [1, 1]} : vector<128x128xbf16> to vector<128x32xbf16>
    %cst_49 = arith.constant dense<0.000000e+00> : vector<128x32xf32>
    %104 = tpu.matmul %102, %103, %cst_49 {dimension_numbers = #tpu.dot_dimension_numbers<[1], [0], [0], [1], [0, 0, 1, 1], [], []>} : vector<128x128xbf16>, vector<128x32xbf16>, vector<128x32xf32> -> vector<128x32xf32>
    %c0_50 = arith.constant 0 : index
    %c32 = arith.constant 32 : index
    %105 = vector.load %arg17[%c0_50, %c32] : memref<128x128xf32, #tpu.memory_space<vmem>>, vector<128x32xf32>
    tpu.vector_store %arg17[%c0_50, %c32], %104 {strides = array<i32>} : memref<128x128xf32, #tpu.memory_space<vmem>>, vector<128x32xf32>,
    %106 = vector.extract_strided_slice %34 {offsets = [0, 64], sizes = [128, 32], strides = [1, 1]} : vector<128x128xbf16> to vector<128x32xbf16>
    %107 = vector.extract_strided_slice %41 {offsets = [0, 64], sizes = [128, 32], strides = [1, 1]} : vector<128x128xbf16> to vector<128x32xbf16>
    %cst_51 = arith.constant dense<0.000000e+00> : vector<128x128xf32>
    %108 = tpu.matmul %106, %107, %cst_51 {dimension_numbers = #tpu.dot_dimension_numbers<[1], [1], [0], [0], [0, 0, 1, 0], [], []>} : vector<128x32xbf16>, vector<128x32xbf16>, vector<128x128xf32> -> vector<128x128xf32>
    %109 = vector.extract_strided_slice %40 {offsets = [0, 64], sizes = [128, 32], strides = [1, 1]} : vector<128x128xbf16> to vector<128x32xbf16>
    %110 = vector.extract_strided_slice %42 {offsets = [0, 64], sizes = [128, 32], strides = [1, 1]} : vector<128x128xbf16> to vector<128x32xbf16>
    %cst_52 = arith.constant dense<0.000000e+00> : vector<128x128xf32>
    %111 = tpu.matmul %109, %110, %cst_52 {dimension_numbers = #tpu.dot_dimension_numbers<[1], [1], [0], [0], [0, 0, 1, 0], [], []>} : vector<128x32xbf16>, vector<128x32xbf16>, vector<128x128xf32> -> vector<128x128xf32>
    %c1_i32_53 = arith.constant 1 : i32
    %112 = tpu.dynamic_rotate %111 by %c1_i32_53 dim 1 {stride = 1 : si32, stride_dimension = 0 : si32} : vector<128x128xf32>, i32 -> vector<128x128xf32>
    %113 = vector.extract_strided_slice %112 {offsets = [1, 0], sizes = [127, 128], strides = [1, 1]} : vector<128x128xf32> to vector<127x128xf32>
    %114 = vector.extract_strided_slice %112 {offsets = [0, 0], sizes = [1, 128], strides = [1, 1]} : vector<128x128xf32> to vector<1x128xf32>
    %115 = tpu.concatenate %113, %114 in 0 : vector<127x128xf32>, vector<1x128xf32> -> vector<128x128xf32>
    %cst_54 = arith.constant 0.000000e+00 : f32
    %116 = vector.broadcast %cst_54 : f32 to vector<128x128xf32>
    %117 = arith.select %49, %116, %115 : vector<128x128xi1>, vector<128x128xf32>
    %118 = arith.select %46, %112, %117 : vector<128x128xi1>, vector<128x128xf32>
    %119 = arith.addf %108, %118 : vector<128x128xf32>
    %cst_55 = arith.constant dense<0xFF800000> : vector<128xf32>
    %120 = vector.multi_reduction <maximumf>, %119, %cst_55 [1] : vector<128x128xf32> to vector<128xf32>
    %121 = vector.shape_cast %120 : vector<128xf32> to vector<128x1xf32>
    %122 = vector.broadcast %121 : vector<128x1xf32> to vector<128x128xf32>
    %123 = arith.subf %119, %122 : vector<128x128xf32>
    %124 = math.exp %123 : vector<128x128xf32>
    %cst_56 = arith.constant dense<0.000000e+00> : vector<128xf32>
    %125 = vector.multi_reduction <add>, %124, %cst_56 [1] : vector<128x128xf32> to vector<128xf32>
    %126 = vector.shape_cast %125 : vector<128xf32> to vector<128x1xf32>
    %127 = tpu.reciprocal %126 {approx = true} : vector<128x1xf32> -> vector<128x1xf32>
    %128 = vector.broadcast %127 : vector<128x1xf32> to vector<128x128xf32>
    %129 = arith.mulf %124, %128 : vector<128x128xf32>
    %130 = arith.truncf %129 : vector<128x128xf32> to vector<128x128xbf16>
    %131 = vector.extract_strided_slice %43 {offsets = [0, 64], sizes = [128, 32], strides = [1, 1]} : vector<128x128xbf16> to vector<128x32xbf16>
    %cst_57 = arith.constant dense<0.000000e+00> : vector<128x32xf32>
    %132 = tpu.matmul %130, %131, %cst_57 {dimension_numbers = #tpu.dot_dimension_numbers<[1], [0], [0], [1], [0, 0, 1, 1], [], []>} : vector<128x128xbf16>, vector<128x32xbf16>, vector<128x32xf32> -> vector<128x32xf32>
    %c0_58 = arith.constant 0 : index
    %c64 = arith.constant 64 : index
    %133 = vector.load %arg17[%c0_58, %c64] : memref<128x128xf32, #tpu.memory_space<vmem>>, vector<128x32xf32>
    tpu.vector_store %arg17[%c0_58, %c64], %132 {strides = array<i32>} : memref<128x128xf32, #tpu.memory_space<vmem>>, vector<128x32xf32>,
    %134 = vector.extract_strided_slice %34 {offsets = [0, 96], sizes = [128, 32], strides = [1, 1]} : vector<128x128xbf16> to vector<128x32xbf16>
    %135 = vector.extract_strided_slice %41 {offsets = [0, 96], sizes = [128, 32], strides = [1, 1]} : vector<128x128xbf16> to vector<128x32xbf16>
    %cst_59 = arith.constant dense<0.000000e+00> : vector<128x128xf32>
    %136 = tpu.matmul %134, %135, %cst_59 {dimension_numbers = #tpu.dot_dimension_numbers<[1], [1], [0], [0], [0, 0, 1, 0], [], []>} : vector<128x32xbf16>, vector<128x32xbf16>, vector<128x128xf32> -> vector<128x128xf32>
    %137 = vector.extract_strided_slice %40 {offsets = [0, 96], sizes = [128, 32], strides = [1, 1]} : vector<128x128xbf16> to vector<128x32xbf16>
    %138 = vector.extract_strided_slice %42 {offsets = [0, 96], sizes = [128, 32], strides = [1, 1]} : vector<128x128xbf16> to vector<128x32xbf16>
    %cst_60 = arith.constant dense<0.000000e+00> : vector<128x128xf32>
    %139 = tpu.matmul %137, %138, %cst_60 {dimension_numbers = #tpu.dot_dimension_numbers<[1], [1], [0], [0], [0, 0, 1, 0], [], []>} : vector<128x32xbf16>, vector<128x32xbf16>, vector<128x128xf32> -> vector<128x128xf32>
    %c1_i32_61 = arith.constant 1 : i32
    %140 = tpu.dynamic_rotate %139 by %c1_i32_61 dim 1 {stride = 1 : si32, stride_dimension = 0 : si32} : vector<128x128xf32>, i32 -> vector<128x128xf32>
    %141 = vector.extract_strided_slice %140 {offsets = [1, 0], sizes = [127, 128], strides = [1, 1]} : vector<128x128xf32> to vector<127x128xf32>
    %142 = vector.extract_strided_slice %140 {offsets = [0, 0], sizes = [1, 128], strides = [1, 1]} : vector<128x128xf32> to vector<1x128xf32>
    %143 = tpu.concatenate %141, %142 in 0 : vector<127x128xf32>, vector<1x128xf32> -> vector<128x128xf32>
    %cst_62 = arith.constant 0.000000e+00 : f32
    %144 = vector.broadcast %cst_62 : f32 to vector<128x128xf32>
    %145 = arith.select %49, %144, %143 : vector<128x128xi1>, vector<128x128xf32>
    %146 = arith.select %46, %140, %145 : vector<128x128xi1>, vector<128x128xf32>
    %147 = arith.addf %136, %146 : vector<128x128xf32>
    %cst_63 = arith.constant dense<0xFF800000> : vector<128xf32>
    %148 = vector.multi_reduction <maximumf>, %147, %cst_63 [1] : vector<128x128xf32> to vector<128xf32>
    %149 = vector.shape_cast %148 : vector<128xf32> to vector<128x1xf32>
    %150 = vector.broadcast %149 : vector<128x1xf32> to vector<128x128xf32>
    %151 = arith.subf %147, %150 : vector<128x128xf32>
    %152 = math.exp %151 : vector<128x128xf32>
    %cst_64 = arith.constant dense<0.000000e+00> : vector<128xf32>
    %153 = vector.multi_reduction <add>, %152, %cst_64 [1] : vector<128x128xf32> to vector<128xf32>
    %154 = vector.shape_cast %153 : vector<128xf32> to vector<128x1xf32>
    %155 = tpu.reciprocal %154 {approx = true} : vector<128x1xf32> -> vector<128x1xf32>
    %156 = vector.broadcast %155 : vector<128x1xf32> to vector<128x128xf32>
    %157 = arith.mulf %152, %156 : vector<128x128xf32>
    %158 = arith.truncf %157 : vector<128x128xf32> to vector<128x128xbf16>
    %159 = vector.extract_strided_slice %43 {offsets = [0, 96], sizes = [128, 32], strides = [1, 1]} : vector<128x128xbf16> to vector<128x32xbf16>
    %cst_65 = arith.constant dense<0.000000e+00> : vector<128x32xf32>
    %160 = tpu.matmul %158, %159, %cst_65 {dimension_numbers = #tpu.dot_dimension_numbers<[1], [0], [0], [1], [0, 0, 1, 1], [], []>} : vector<128x128xbf16>, vector<128x32xbf16>, vector<128x32xf32> -> vector<128x32xf32>
    %c0_66 = arith.constant 0 : index
    %c96 = arith.constant 96 : index
    %161 = vector.load %arg17[%c0_66, %c96] : memref<128x128xf32, #tpu.memory_space<vmem>>, vector<128x32xf32>
    tpu.vector_store %arg17[%c0_66, %c96], %160 {strides = array<i32>} : memref<128x128xf32, #tpu.memory_space<vmem>>, vector<128x32xf32>,
    %c0_67 = arith.constant 0 : index
    %c0_68 = arith.constant 0 : index
    %162 = vector.load %arg17[%c0_67, %c0_68] : memref<128x128xf32, #tpu.memory_space<vmem>>, vector<128x128xf32>
    %163 = arith.truncf %162 : vector<128x128xf32> to vector<128x128xbf16>
    %c0_69 = arith.constant 0 : index
    %c0_70 = arith.constant 0 : index
    %164 = vector.load %arg9[%c0_69, %c0_70] : memref<128x128xbf16, #tpu.memory_space<vmem>>, vector<128x128xbf16>
    %cst_71 = arith.constant dense<0.000000e+00> : vector<128x128xf32>
    %165 = tpu.matmul %163, %164, %cst_71 {dimension_numbers = #tpu.dot_dimension_numbers<[1], [0], [0], [1], [0, 0, 1, 1], [], []>} : vector<128x128xbf16>, vector<128x128xbf16>, vector<128x128xf32> -> vector<128x128xf32>
    %c0_72 = arith.constant 0 : index
    %c0_73 = arith.constant 0 : index
    %166 = vector.load %arg13[%c0_72, %c0_73] : memref<1x128xf32, #tpu.memory_space<vmem>>, vector<1x128xf32>
    %167 = vector.broadcast %166 : vector<1x128xf32> to vector<128x128xf32>
    %168 = arith.addf %165, %167 : vector<128x128xf32>
    %c0_74 = arith.constant 0 : index
    %c0_75 = arith.constant 0 : index
    %c0_76 = arith.constant 0 : index
    %169 = vector.load %arg16[%c0_74, %c0_75, %c0_76] : memref<1x128x128xf32, #tpu.memory_space<vmem>>, vector<1x128x128xf32>
    %170 = vector.shape_cast %169 : vector<1x128x128xf32> to vector<128x128xf32>
    %171 = vector.shape_cast %168 : vector<128x128xf32> to vector<1x128x128xf32>
    tpu.vector_store %arg16[%c0_74, %c0_75, %c0_76], %171 {strides = array<i32>} : memref<1x128x128xf32, #tpu.memory_space<vmem>>, vector<1x128x128xf32>,
    return
  }
  func.func @transform_0(%arg0: i32) -> (i32, i32, i32) {
    %c0_i32 = arith.constant 0 : i32
    %c0_i32_0 = arith.constant 0 : i32
    %c0_i32_1 = arith.constant 0 : i32
    return %arg0, %c0_i32, %c0_i32_0 : i32, i32, i32
  }
  func.func @transform_1(%arg0: i32) -> (i32, i32, i32) {
    %c0_i32 = arith.constant 0 : i32
    %c0_i32_0 = arith.constant 0 : i32
    %c0_i32_1 = arith.constant 0 : i32
    return %arg0, %c0_i32, %c0_i32_0 : i32, i32, i32
  }
  func.func @transform_2(%arg0: i32) -> (i32, i32, i32) {
    %c0_i32 = arith.constant 0 : i32
    %c0_i32_0 = arith.constant 0 : i32
    %c0_i32_1 = arith.constant 0 : i32
    return %arg0, %c0_i32, %c0_i32_0 : i32, i32, i32
  }
  func.func @transform_3(%arg0: i32) -> (i32, i32, i32) {
    %c0_i32 = arith.constant 0 : i32
    %c0_i32_0 = arith.constant 0 : i32
    %c0_i32_1 = arith.constant 0 : i32
    return %arg0, %c0_i32, %c0_i32_0 : i32, i32, i32
  }
  func.func @transform_4(%arg0: i32) -> (i32, i32) {
    %c0_i32 = arith.constant 0 : i32
    %c0_i32_0 = arith.constant 0 : i32
    %c0_i32_1 = arith.constant 0 : i32
    return %c0_i32, %c0_i32_0 : i32, i32
  }
  func.func @transform_5(%arg0: i32) -> (i32, i32) {
    %c0_i32 = arith.constant 0 : i32
    %c0_i32_0 = arith.constant 0 : i32
    %c0_i32_1 = arith.constant 0 : i32
    return %c0_i32, %c0_i32_0 : i32, i32
  }
  func.func @transform_6(%arg0: i32) -> (i32, i32) {
    %c0_i32 = arith.constant 0 : i32
    %c0_i32_0 = arith.constant 0 : i32
    %c0_i32_1 = arith.constant 0 : i32
    return %c0_i32, %c0_i32_0 : i32, i32
  }
  func.func @transform_7(%arg0: i32) -> (i32, i32) {
    %c0_i32 = arith.constant 0 : i32
    %c0_i32_0 = arith.constant 0 : i32
    %c0_i32_1 = arith.constant 0 : i32
    return %c0_i32, %c0_i32_0 : i32, i32
  }
  func.func @transform_8(%arg0: i32) -> (i32, i32) {
    %c0_i32 = arith.constant 0 : i32
    %c0_i32_0 = arith.constant 0 : i32
    %c0_i32_1 = arith.constant 0 : i32
    return %c0_i32, %c0_i32_0 : i32, i32
  }
  func.func @transform_9(%arg0: i32) -> (i32, i32) {
    %c0_i32 = arith.constant 0 : i32
    %c0_i32_0 = arith.constant 0 : i32
    %c0_i32_1 = arith.constant 0 : i32
    return %c0_i32, %c0_i32_0 : i32, i32
  }
  func.func @transform_10(%arg0: i32) -> (i32, i32) {
    %c0_i32 = arith.constant 0 : i32
    %c0_i32_0 = arith.constant 0 : i32
    %c0_i32_1 = arith.constant 0 : i32
    return %c0_i32, %c0_i32_0 : i32, i32
  }
  func.func @transform_11(%arg0: i32) -> (i32, i32) {
    %c0_i32 = arith.constant 0 : i32
    %c0_i32_0 = arith.constant 0 : i32
    %c0_i32_1 = arith.constant 0 : i32
    return %c0_i32, %c0_i32_0 : i32, i32
  }
  func.func @transform_12(%arg0: i32) -> (i32, i32) {
    %c0_i32 = arith.constant 0 : i32
    %c0_i32_0 = arith.constant 0 : i32
    %c0_i32_1 = arith.constant 0 : i32
    return %c0_i32, %c0_i32_0 : i32, i32
  }
  func.func @transform_13(%arg0: i32) -> (i32, i32) {
    %c0_i32 = arith.constant 0 : i32
    %c0_i32_0 = arith.constant 0 : i32
    %c0_i32_1 = arith.constant 0 : i32
    return %c0_i32, %c0_i32_0 : i32, i32
  }
  func.func @transform_14(%arg0: i32) -> (i32, i32) {
    %c0_i32 = arith.constant 0 : i32
    %c0_i32_0 = arith.constant 0 : i32
    %c0_i32_1 = arith.constant 0 : i32
    return %c0_i32, %c0_i32_0 : i32, i32
  }
  func.func @transform_15(%arg0: i32) -> (i32, i32, i32) {
    %c0_i32 = arith.constant 0 : i32
    %c0_i32_0 = arith.constant 0 : i32
    %c0_i32_1 = arith.constant 0 : i32
    return %arg0, %c0_i32, %c0_i32_0 : i32, i32, i32
  }
}

</mosaic_0001>

<bundles_post_ra>
// kernel: tpu_custom_call.1
= control target key start
LH: loop header
LB: loop body
LE: loop exit
PB: predicated region body
PF: predicated region fallthrough
CT: control target
= control target key end

     0   :  { %s8990_s0 = inlined_call_operand.hbm [shape: f32[2,128,128], index: 0, kind: input, shape index: {}]   ;;  %s8991_s1 = inlined_call_operand.hbm [shape: f32[2,128,128], index: 1, kind: input, shape index: {}]   ;;  %s8992_s2 = inlined_call_operand.hbm [shape: f32[2,128,128], index: 2, kind: input, shape index: {}]   ;;  %s8993_s3 = inlined_call_operand.hbm [shape: f32[2,128,128], index: 3, kind: input, shape index: {}]   ;;  %s8994_s4 = inlined_call_operand.hbm [shape: bf16[128,128], index: 4, kind: input, shape index: {}]   ;;  %s8995_s5 = inlined_call_operand.hbm [shape: bf16[128,128], index: 5, kind: input, shape index: {}]   ;;  %s8996_s6 = inlined_call_operand.hbm [shape: bf16[128,128], index: 6, kind: input, shape index: {}]   ;;  %s8997_s7 = inlined_call_operand.hbm [shape: bf16[128,128], index: 7, kind: input, shape index: {}]   ;;  %s8998_s8 = inlined_call_operand.hbm [shape: bf16[128,128], index: 8, kind: input, shape index: {}]   ;;  %s8999_s9 = inlined_call_operand.vmem [shape: f32[1,128], index: 9, kind: input, shape index: {}]   ;;  %s9000_s10 = inlined_call_operand.vmem [shape: f32[1,128], index: 10, kind: input, shape index: {}]   ;;  %s9001_s11 = inlined_call_operand.vmem [shape: f32[1,128], index: 11, kind: input, shape index: {}]   ;;  %s9002_s12 = inlined_call_operand.vmem [shape: f32[1,128], index: 12, kind: input, shape index: {}]   ;;  %s9003_s13 = inlined_call_operand.vmem [shape: f32[1,128], index: 13, kind: input, shape index: {}]   ;;  %s9004_s14 = inlined_call_operand.vmem [shape: f32[1,128], index: 14, kind: input, shape index: {}]   ;;  %s9005_s15 = inlined_call_operand.hbm [shape: f32[2,128,128], index: 15, kind: output, shape index: {}]  }
   0x1   :  { %9140 = sst [smem:[#allocation93_spill]] %s8991_s1 }
   0x2   :  { %9141 = sst [smem:[#allocation94_spill]] %s8994_s4 }
   0x3   :  { %9142 = sst [smem:[#allocation95_spill]] %s8995_s5 }
   0x4   :  { %9143 = sst [smem:[#allocation96_spill]] %s8997_s7 }
   0x5   :  { %9144 = sst [smem:[#allocation97_spill]] %s9000_s10 }
   0x6   :  { %9145 = sst [smem:[#allocation98_spill]] %s9001_s11 }
   0x7   :  { %9146 = sst [smem:[#allocation99_spill]] %s9002_s12 }
   0x8   :  { %9147 = sst [smem:[#allocation100_spill]] %s9003_s13 }
   0x9   :  { %9148 = sst [smem:[#allocation101_spill]] %s9004_s14 }
   0xa   :  { %9149 = sst [smem:[#allocation102_spill]] %s9005_s15 }
   0xb   :  { %20 = vsyncpa [#allocation4], 0 }
   0xc   :  { %22 = vsyncpa [#allocation4 + $0x1], 0 }
   0xd   :  { %23 = vsyncpa [#allocation7], 0 }
   0xe   :  { %25 = vsyncpa [#allocation7 + $0x1], 0 }
   0xf   :  { %26 = vsyncpa [#allocation10], 0 }
  0x10   :  { %28 = vsyncpa [#allocation10 + $0x1], 0 }
  0x11   :  { %29 = vsyncpa [#allocation13], 0 }
  0x12   :  { %30 = vsyncpa [#allocation16], 0 }
  0x13   :  { %31 = vsyncpa [#allocation5], 0 }
  0x14   :  { %33 = vsyncpa [#allocation5 + $0x1], 0  ;;  %s6011_s18 = smov 0   ;;  %s6013_s19 = smov 0  }
  0x15   :  { %s6015_s20 = smov 0   ;;  %s6017_s21 = smov 0  }
  0x16 LB: > { %9150 = sst [smem:[#allocation26_spill]] %s5887_s18  ;;  %s6032_s22 = sadd.s32 4294967295, %s5899_s21   ;;  %s5899_s21 = sphi %s6017_s21, %s9477_s21   ;;  %s5895_s20 = sphi %s6015_s20, %s9481_s20   ;;  %s5891_s19 = sphi %s6013_s19, %s9480_s19   ;;  %s5887_s18 = sphi %s6011_s18, %s9479_s18  }
  0x17   : > { %s4815_s23 = sadd.s32 4294967294, %s5899_s21   ;;  %p59_p0 = scmp.ne.s32.totalorder %s5891_s19, %s5887_s18 }
  0x18   : > { %p9018_p1 = scmp.eq.s32.totalorder %s6032_s22, 0  ;;  %p392_p2 = scmp.eq.s32.totalorder %s6032_s22, 1 }
  0x19   : > { %p398_p3 = scmp.eq.s32.totalorder %s4815_s23, 1  ;;  %p4816_p5 = scmp.ge.s32.totalorder %s5899_s21, 1 }
  0x1a   : > { %p6041_p4 = por %p9018_p1, %p59_p0  ;;  %p405_p7 = scmp.lt.s32.totalorder %s5899_s21, 3 }
  0x1b   : > { %p6046_p6 = por %p398_p3, %p59_p0  ;;  %s9154_s4 = sld [smem:[#allocation94_spill]] }
  0x1c   : > { %p6054_p8 = pnand %p4816_p5, %p405_p7  ;;  %s5901_s30 = smov [#allocation11]  }
  0x1d   : > { %s9152_s25 = scalar_select %p6046_p6, 1, 0 }
  0x1e   : > { %p5174_p9 = pneg %p6054_p8  ;;  %s418_s16 = sshll.u32 %s5901_s30, 4  ;;  %s419_s16 = int_to_ptr.vmem [resolvable:$true] %s418_s16 }
  0x1f   : > { %9153 = sst [smem:[#allocation27_spill]] %s9152_s25  ;;  %s9011_s30 = smov 4  }
  0x20   : > { %p6062_p10 = pnand %p5174_p9, %p9018_p1  ;;  %s9157_s5 = sld [smem:[#allocation95_spill]] }
  0x21   : > { %s416_s28 = sshll.u32 %s9154_s4, 4  ;;  %s9009_s4 = smov 64   ;;  %s417_s28 = int_to_ptr.hbm [resolvable:$true] %s416_s28 }
  0x22   : > { %5177 = dma.hbm_to_vmem [thread:$0]  (!%p6062_p10), %s417_s28, 1024, %s419_s16, [#allocation10], %s9009_s4, %s9009_s4, %s9011_s30  }
  0x23   : > { %s5904_s25 = smov [#allocation12]   ;;  %s9158_s7 = sld [smem:[#allocation96_spill]] }
  0x24   : > { %s432_s18 = sshll.u32 %s5904_s25, 4  ;;  %s5905_s28 = smov [#allocation15]   ;;  %s433_s18 = int_to_ptr.vmem [resolvable:$true] %s432_s18 }
  0x25   : > { %s460_s16 = sshll.u32 %s5905_s28, 4  ;;  %s6084_s25 = sadd.s32 1, %s5899_s21   ;;  %s461_s16 = int_to_ptr.vmem [resolvable:$true] %s460_s16 }
  0x26   : > { %s430_s27 = sshll.u32 %s9157_s5, 4  ;;  %9159 = sst [smem:[#allocation28_spill]] %s6084_s25  ;;  %s431_s27 = int_to_ptr.hbm [resolvable:$true] %s430_s27 }
  0x27   : > { %5180 = dma.hbm_to_vmem [thread:$0]  (!%p6062_p10), %s431_s27, 1024, %s433_s18, [#allocation13], %s9009_s4, %s9009_s4, %s9011_s30  }
  0x28   : > { %s43_s15 = ssub.s32 %s5899_s21, %s6084_s25  ;;  %s46_s23 = sadd.s32 1, %s5895_s20 }
  0x29   : > { %s458_s26 = sshll.u32 %s9158_s7, 4  ;;  %p44_p12 = scmp.eq.s32.totalorder %s43_s15, 0  ;;  %s459_s26 = int_to_ptr.hbm [resolvable:$true] %s458_s26 }
  0x2a   : > { %5186 = dma.hbm_to_vmem [thread:$0]  (!%p6062_p10), %s459_s26, 1024, %s461_s16, [#allocation16], %s9009_s4, %s9009_s4, %s9011_s30  }
  0x2b   : > { %p53_p13 = scmp.ne.s32.totalorder %s5895_s20, %s5891_s19  ;;  %p54_p0 = scmp.eq.s32.totalorder %s5899_s21, 0 }
  0x2c   : > { %p5212_p3 = scmp.lt.s32.totalorder %s5899_s21, 2  ;;  %s9015_s28 = sand.u32 1, %s5895_s20  }
  0x2d   : > { %s6099_s18 = scalar_select %p44_p12, %s5895_s20, %s46_s23  }
  0x2e   : > { %p55_p5 = por %p54_p0, %p53_p13  ;;  %p6103_p7 = por %p392_p2, %p53_p13 }
  0x2f   : > { %9160 = sst [smem:[#allocation29_spill]] %s6099_s18  ;;  %s6109_s5 = sshll.u32 %s5899_s21, 7 }
  0x30   : > { %s9161_s27 = scalar_select %p6103_p7, 1, 0 }
  0x31   : > { %s6113_s26 = sshll.u32 %s9015_s28, 7  ;;  %p6115_p9 = pnand %p5212_p3, %p55_p5 }
  0x32   : > { %9162 = sst [smem:[#allocation30_spill]] %s9161_s27  ;;  %s9019_s15 = sand.u32 1, %s5899_s21  }
  0x33   : > { %s9164_s1 = sld [smem:[#allocation93_spill]]  ;;  %s532_s7 = scalar_lea.vmem [#allocation6], %s6113_s26 }
  0x34   : > { %s540_s18 = sshll.u32 %s532_s7, 4  ;;  %s6127_s28 = scalar_lea.sflag [#allocation7], %s9019_s15  ;;  %s541_s18 = int_to_ptr.vmem [resolvable:$true] %s540_s18 }
  0x35   : > { %p5637_p12 = pneg %p6115_p9 }
  0x39   : > { %s537_s30 = scalar_lea.hbm %s9164_s1, %s6109_s5  ;;  %s5640_s7 = scalar_lea.hbm %s9164_s1, 256 }
  0x3a   : > { %s538_s25 = sshll.u32 %s537_s30, 4  ;;  %s539_s25 = int_to_ptr.hbm [resolvable:$true] %s538_s25 }
  0x3b   : > { %s5633_s27 = sshra.s32 %s539_s25, 4  ;;  %s5634_s27 = int_to_ptr.hbm [resolvable:$true] %s5633_s27 }
  0x3c   : > { %s5635_s12 = scalar_lea.hbm %s5634_s27, 128  ;;  %p5641_p3 = scmp.lt.s32.totalorder %s5634_s27, %s9164_s1 }
  0x3d   : > { %p5636_p2 = scmp.ne.s32.totalorder %s5634_s27, %s5635_s12  ;;  %p5642_p5 = scmp.lt.s32.totalorder %s5640_s7, %s5635_s12 }
  0x3f   : > { %p5638_p13 = pnand %p5637_p12, %p5636_p2  ;;  %p5643_p11 = por %p5642_p5, %p5641_p3 }
  0x41   : > { %p5639_p0 = pneg %p5638_p13 }
  0x43   : > { %p5644_p1 = pnand %p5643_p11, %p5639_p0 }
  0x45   : > { %5647 = shalt.err (!%p5644_p1)
}
  0x46   : > { %s9020_s15 = smov 128   ;;  %s9022_s11 = smov 8  }
  0x47   : > { %5196 = dma.hbm_to_vmem [thread:$0]  (!%p6115_p9), %s539_s25, 2048, %s541_s18, %s6127_s28, %s9020_s15, %s9020_s15, %s9022_s11  }
  0x48   : > { %s444_s12 = sshll.u32 %s8996_s6, 4  ;;  %s5908_s27 = smov [#allocation14]   ;;  %s445_s12 = int_to_ptr.hbm [resolvable:$true] %s444_s12 }
  0x49   : > { %s446_s23 = sshll.u32 %s5908_s27, 4  ;;  %s472_s1 = sshll.u32 %s8998_s8, 4  ;;  %s447_s23 = int_to_ptr.vmem [resolvable:$true] %s446_s23  ;;  %s473_s1 = int_to_ptr.hbm [resolvable:$true] %s472_s1 }
  0x4a   : > { %s9165_s14 = smov 4   ;;  %s9166_s13 = smov 64  }
  0x4b   : > { %5183 = dma.hbm_to_vmem [thread:$0]  (!%p6062_p10), %s445_s12, 1024, %s447_s23, [#allocation13], %s9166_s13, %s9166_s13, %s9165_s14  }
  0x4c   : > { %s5909_s25 = smov [#allocation17]   ;;  %s515_s27 = scalar_lea.hbm %s8990_s0, %s6109_s5 }
  0x4d   : > { %s474_s18 = sshll.u32 %s5909_s25, 4  ;;  %s510_s7 = scalar_lea.vmem [#allocation3], %s6113_s26  ;;  %s475_s18 = int_to_ptr.vmem [resolvable:$true] %s474_s18 }
  0x4e   : > { %5189 = dma.hbm_to_vmem [thread:$0]  (!%p6062_p10), %s473_s1, 1024, %s475_s18, [#allocation16], %s9166_s13, %s9166_s13, %s9165_s14  }
  0x4f   : > { %s518_s30 = sshll.u32 %s510_s7, 4  ;;  %s516_s15 = sshll.u32 %s515_s27, 4  ;;  %s519_s30 = int_to_ptr.vmem [resolvable:$true] %s518_s30  ;;  %s517_s15 = int_to_ptr.hbm [resolvable:$true] %s516_s15 }
  0x50   : > { %s9167_s12 = sand.u32 1, %s5895_s20   ;;  %s5723_s11 = sshra.s32 %s517_s15, 4  ;;  %s5724_s11 = int_to_ptr.hbm [resolvable:$true] %s5723_s11 }
  0x51   : > { %s507_s23 = scalar_lea.sflag [#allocation4], %s9167_s12  ;;  %s5725_s25 = scalar_lea.hbm %s5724_s11, 128 }
  0x52   : > { %p5726_p1 = scmp.ne.s32.totalorder %s5724_s11, %s5725_s25  ;;  %s5730_s14 = scalar_lea.hbm %s8990_s0, 256 }
  0x53   : > { %p5731_p10 = scmp.lt.s32.totalorder %s5724_s11, %s8990_s0  ;;  %p5732_p13 = scmp.lt.s32.totalorder %s5730_s14, %s5725_s25 }
  0x54   : > { %p5728_p11 = pnand %p5726_p1, %p5637_p12 }
  0x55   : > { %p5733_p0 = por %p5732_p13, %p5731_p10 }
  0x56   : > { %p5729_p2 = pneg %p5728_p11 }
  0x58   : > { %p5734_p3 = pnand %p5733_p0, %p5729_p2 }
  0x5a   : > { %5737 = shalt.err (!%p5734_p3)
}
  0x5b   : > { %s9168_s4 = smov 8   ;;  %s9169_s10 = smov 128  }
  0x5c   : > { %5193 = dma.hbm_to_vmem [thread:$0]  (!%p6115_p9), %s517_s15, 2048, %s519_s30, %s507_s23, %s9169_s10, %s9169_s10, %s9168_s4  }
  0x5d   : > { %s559_s12 = scalar_lea.hbm %s8992_s2, %s6109_s5  ;;  %s554_s1 = scalar_lea.vmem [#allocation8], %s6113_s26 }
  0x5e   : > { %s562_s13 = sshll.u32 %s554_s1, 4  ;;  %s560_s11 = sshll.u32 %s559_s12, 4  ;;  %s563_s13 = int_to_ptr.vmem [resolvable:$true] %s562_s13  ;;  %s561_s11 = int_to_ptr.hbm [resolvable:$true] %s560_s11 }
  0x5f   : > { %s5753_s25 = sshra.s32 %s561_s11, 4  ;;  %s5760_s15 = scalar_lea.hbm %s8992_s2, 256  ;;  %s5754_s25 = int_to_ptr.hbm [resolvable:$true] %s5753_s25 }
  0x60   : > { %s5755_s14 = scalar_lea.hbm %s5754_s25, 128  ;;  %p5761_p2 = scmp.lt.s32.totalorder %s5754_s25, %s8992_s2 }
  0x61   : > { %p5756_p5 = scmp.ne.s32.totalorder %s5754_s25, %s5755_s14  ;;  %p5762_p10 = scmp.lt.s32.totalorder %s5760_s15, %s5755_s14 }
  0x63   : > { %p5758_p1 = pnand %p5756_p5, %p5637_p12  ;;  %p5763_p13 = por %p5762_p10, %p5761_p2 }
  0x65   : > { %p5759_p11 = pneg %p5758_p1 }
  0x67   : > { %p5764_p0 = pnand %p5763_p13, %p5759_p11 }
  0x69   : > { %5767 = shalt.err (!%p5764_p0)
}
  0x6a   : > { %5199 = dma.hbm_to_vmem [thread:$0]  (!%p6115_p9), %s561_s11, 2048, %s563_s13, %s6127_s28, %s9169_s10, %s9169_s10, %s9168_s4  }
  0x6b   : > { %s581_s12 = scalar_lea.hbm %s8993_s3, %s6109_s5  ;;  %s576_s1 = scalar_lea.vmem [#allocation9], %s6113_s26 }
  0x6c   : > { %s584_s25 = sshll.u32 %s576_s1, 4  ;;  %s582_s14 = sshll.u32 %s581_s12, 4  ;;  %s585_s25 = int_to_ptr.vmem [resolvable:$true] %s584_s25  ;;  %s583_s14 = int_to_ptr.hbm [resolvable:$true] %s582_s14 }
  0x6d   : > { %s9170_s17 = sand.u32 1, %s5899_s21   ;;  %s5783_s15 = sshra.s32 %s583_s14, 4  ;;  %s5784_s15 = int_to_ptr.hbm [resolvable:$true] %s5783_s15 }
  0x6e   : > { %s573_s18 = scalar_lea.sflag [#allocation10], %s9170_s17  ;;  %s5785_s30 = scalar_lea.hbm %s5784_s15, 128 }
  0x6f   : > { %p5786_p3 = scmp.ne.s32.totalorder %s5784_s15, %s5785_s30  ;;  %s5790_s11 = scalar_lea.hbm %s8993_s3, 256 }
  0x70   : > { %p5791_p11 = scmp.lt.s32.totalorder %s5784_s15, %s8993_s3  ;;  %p5792_p2 = scmp.lt.s32.totalorder %s5790_s11, %s5785_s30 }
  0x71   : > { %p5788_p5 = pnand %p5786_p3, %p5637_p12 }
  0x72   : > { %p5793_p10 = por %p5792_p2, %p5791_p11 }
  0x73   : > { %p5789_p1 = pneg %p5788_p5 }
  0x75   : > { %p5794_p13 = pnand %p5793_p10, %p5789_p1 }
  0x77   : > { %5797 = shalt.err (!%p5794_p13)
}
  0x78   : > { %5202 = dma.hbm_to_vmem [thread:$0]  (!%p6115_p9), %s583_s14, 2048, %s585_s25, %s573_s18, %s9169_s10, %s9169_s10, %s9168_s4  }
  0x79   : > { %596 = sbr.rel (%p6054_p8) target bundleno = 2869 (0xb35), region = 80 }
  0x7e   : > { %s6227_s23 = sand.u32 1, %s5891_s19  }
  0x7f   : > { %s6230_s27 = sshll.u32 %s6227_s23, 7  ;;  %s599_s7 = scalar_lea.sflag [#allocation4], %s6227_s23 }
  0x80   : > { %s6234_s12 = scalar_lea.vmem [#allocation3], %s6230_s27 }
  0x81   : > { %5858 = dma.done.wait (%p6041_p4), %s599_s7, 2048  }
  0x82   : > { %5860 = vsyncadd (%p6041_p4), %s599_s7, 4294965248  ;;  %s608_s29 = sand.u32 1, %s6032_s22   ;;  %s6242_s4 = scalar_lea.vmem [#allocation6], %s6230_s27 }
  0x83   : > { %s609_s16 = scalar_lea.sflag [#allocation7], %s608_s29 }
  0x84   : > { %5862 = dma.done.wait (%p6041_p4), %s609_s16, 4096  }
  0x85   : > { %5864 = vsyncadd (%p6041_p4), %s609_s16, 4294963200  ;;  %s6249_s10 = scalar_lea.vmem [#allocation8], %s6230_s27  ;;  %s629_s1 = scalar_lea.sflag [#allocation10], %s608_s29 }
  0x86   : > { %s6252_s25 = scalar_lea.vmem [#allocation9], %s6230_s27 }
  0x87   : > { %5866 = dma.done.wait (%p6041_p4), %s629_s1, 2048  }
  0x88   : > { %5868 = vsyncadd (%p6041_p4), %s629_s1, 4294965248  ;;  %p9171_p8 = scmp.eq.s32.totalorder %s6032_s22, 0 }
  0x8a   : > { %5870 = dma.done.wait (%p9171_p8), [#allocation10], 1024   ;;  %p9172_p9 = pmov %p9171_p8 }
  0x8b   : > { %p9173_p12 = pmov %p9171_p8 }
  0x8c   : > { %5872 = vsyncadd (%p9172_p9), [#allocation10], 4294966272 }
  0x8d   : > { %5874 = dma.done.wait (%p9173_p12), [#allocation13], 2048   ;;  %p9174_p0 = pmov %p9171_p8 }
  0x8f   : > { %5876 = vsyncadd (%p9174_p0), [#allocation13], 4294965248  ;;  %p9175_p3 = pmov %p9174_p0 }
  0x90   : > { %p9176_p5 = pmov %p9174_p0 }
  0x91   : > { %5878 = dma.done.wait (%p9175_p3), [#allocation16], 2048  }
  0x92   : > { %5880 = vsyncadd (%p9176_p5), [#allocation16], 4294965248  ;;  %v5086_v0 = vld [vmem:[#allocation11 + $0x38] sm:$0xff]  ;;  %v5085_v2 = vld [vmem:[#allocation11 + $0x30] sm:$0xff]  ;;  %s9177_s15 = sld [smem:[#allocation100_spill]]  ;;  %s5910_s7 = smov 96  }
  0x93   : > { %v5102_v1 = vld [vmem:[#allocation14 + $0x38] sm:$0xff]  ;;  %884 = vmatpush.bf16.msra.mxu0 %v5086_v0  ;;  %5120 = vmatpush.bf16.msra.mxu1 %v5086_v0  ;;  %v5101_v3 = vld [vmem:[#allocation14 + $0x30] sm:$0xff]  ;;  %v5084_v4 = vld [vmem:[#allocation11 + $0x28] sm:$0xff]  ;;  %s9178_s13 = sld [smem:[#allocation101_spill]]  ;;  %s5912_s29 = smov 32   ;;  %vm9058_vm0 = vcmask 261120  }
  0x94   : > { %5121 = vmatpush.bf16.msra.mxu3 %v5086_v0  ;;  %1118 = vmatpush.bf16.msra.mxu2 %v5102_v1  ;;  %v5100_v5 = vld [vmem:[#allocation14 + $0x28] sm:$0xff]  ;;  %v5083_v6 = vld [vmem:[#allocation11 + $0x20] sm:$0xff]  ;;  %v5082_v8 = vld [vmem:[#allocation11 + $0x18] sm:$0xff]  ;;  %s9179_s26 = sld [smem:[#allocation98_spill]]  ;;  %s5913_s1 = smov 257   ;;  %vm1757_vm3 = vcmask 1046528  }
  0x95   : > { %v5099_v7 = vld [vmem:[#allocation14 + $0x20] sm:$0xff]  ;;  %v5098_v9 = vld [vmem:[#allocation14 + $0x18] sm:$0xff]  ;;  %v5081_v10 = vld [vmem:[#allocation11 + $0x10] sm:$0xff]  ;;  %s5915_s24 = smov 265   ;;  %s5916_s14 = smov 361  }
  0x96   : > { %v5097_v11 = vld [vmem:[#allocation14 + $0x10] sm:$0xff]  ;;  %v5080_v12 = vld [vmem:[#allocation11 + $0x8] sm:$0xff]  ;;  %v5079_v14 = vld [vmem:[#allocation11] sm:$0xff]  ;;  %s5917_s17 = smov 273   ;;  %s5918_s18 = smov 369  }
  0x97   : > { %885 = vmatpush.bf16.msra.mxu0 %v5085_v2  ;;  %5122 = vmatpush.bf16.msra.mxu1 %v5085_v2  ;;  %v5096_v13 = vld [vmem:[#allocation14 + $0x8] sm:$0xff]  ;;  %v720_v15 = vld [vmem:[%s6234_s12] sm:$0xff]  ;;  %v5094_v21 = vld [vmem:[#allocation12 + $0x38] sm:$0xff]  ;;  %s5920_s30 = smov 377   ;;  %s5921_s28 = smov 289  }
  0x98   : > { %5123 = vmatpush.bf16.msra.mxu3 %v5085_v2  ;;  %1119 = vmatpush.bf16.msra.mxu2 %v5101_v3  ;;  %v721_v16 = vld [vmem:[%s6234_s12 + $0x8] sm:$0xff]  ;;  %v728_v17 = vld [vmem:[%s6234_s12 + $0x40] sm:$0xff]  ;;  %v5110_v22 = vld [vmem:[#allocation15 + $0x38] sm:$0xff]  ;;  %s5923_s11 = smov 305   ;;  %s5924_s5 = smov 313  }
  0x99   : > { %v729_v18 = vld [vmem:[%s6234_s12 + $0x48] sm:$0xff]  ;;  %v732_v19 = vld [vmem:[%s6234_s12 + $0x60] sm:$0xff]  ;;  %v736_v26 = vpack.c.bf16 %v721_v16, %v720_v15  ;;  %v5093_v29 = vld [vmem:[#allocation12 + $0x30] sm:$0xff]  ;;  %s5926_s16 = smov 329  }
  0x9a   : > { %v733_v20 = vld [vmem:[%s6234_s12 + $0x68] sm:$0xff]  ;;  %v5095_v23 = vld [vmem:[#allocation14] sm:$0xff]  ;;  %v740_v27 = vpack.c.bf16 %v729_v18, %v728_v17  ;;  %v5109_v31 = vld [vmem:[#allocation15 + $0x30] sm:$0xff] }
  0x9b   : > { %886 = vmatpush.bf16.msra.mxu0 %v5084_v4  ;;  %5124 = vmatpush.bf16.msra.mxu1 %v5084_v4  ;;  %v768_v24 = vld [vmem:[%s6249_s10] sm:$0xff]  ;;  %v769_v25 = vld [vmem:[%s6249_s10 + $0x8] sm:$0xff]  ;;  %v742_v28 = vpack.c.bf16 %v733_v20, %v732_v19  ;;  %v730_v36 = vld [vmem:[%s6234_s12 + $0x50] sm:$0xff] }
  0x9c   : > { %5125 = vmatpush.bf16.msra.mxu3 %v5084_v4  ;;  %1120 = vmatpush.bf16.msra.mxu2 %v5100_v5  ;;  %v784_v30 = vpack.c.bf16 %v769_v25, %v768_v24  ;;  %v5092_v32 = vld [vmem:[#allocation12 + $0x28] sm:$0xff]  ;;  %v5091_v34 = vld [vmem:[#allocation12 + $0x20] sm:$0xff]  ;;  %v731_v37 = vld [vmem:[%s6234_s12 + $0x58] sm:$0xff] }
  0x9d   : > { %v5108_v33 = vld [vmem:[#allocation15 + $0x28] sm:$0xff]  ;;  %v5107_v35 = vld [vmem:[#allocation15 + $0x20] sm:$0xff]  ;;  %v722_v38 = vld [vmem:[%s6234_s12 + $0x10] sm:$0xff]  ;;  %v741_v46 = vpack.c.bf16 %v731_v37, %v730_v36 }
  0x9e   : > { %v723_v39 = vld [vmem:[%s6234_s12 + $0x18] sm:$0xff]  ;;  %v734_v40 = vld [vmem:[%s6234_s12 + $0x70] sm:$0xff]  ;;  %v5088_v52 = vld [vmem:[#allocation12 + $0x8] sm:$0xff] }
  0x9f   : > { %887 = vmatpush.bf16.msra.mxu0 %v5083_v6  ;;  %5126 = vmatpush.bf16.msra.mxu1 %v5083_v6  ;;  %v735_v41 = vld [vmem:[%s6234_s12 + $0x78] sm:$0xff]  ;;  %v770_v44 = vld [vmem:[%s6249_s10 + $0x10] sm:$0xff]  ;;  %v737_v47 = vpack.c.bf16 %v723_v39, %v722_v38  ;;  %v5104_v53 = vld [vmem:[#allocation15 + $0x8] sm:$0xff] }
  0xa0   : > { %5127 = vmatpush.bf16.msra.mxu3 %v5083_v6  ;;  %1121 = vmatpush.bf16.msra.mxu2 %v5099_v7  ;;  %v5090_v42 = vld [vmem:[#allocation12 + $0x18] sm:$0xff]  ;;  %v743_v48 = vpack.c.bf16 %v735_v41, %v734_v40  ;;  %v5089_v49 = vld [vmem:[#allocation12 + $0x10] sm:$0xff]  ;;  %v5087_v54 = vld [vmem:[#allocation12] sm:$0xff] }
  0xa1   : > { %v5106_v43 = vld [vmem:[#allocation15 + $0x18] sm:$0xff]  ;;  %v5105_v51 = vld [vmem:[#allocation15 + $0x10] sm:$0xff]  ;;  %v5103_v55 = vld [vmem:[#allocation15] sm:$0xff] }
  0xa2   : > { %v771_v45 = vld [vmem:[%s6249_s10 + $0x18] sm:$0xff]  ;;  %v744_v56 = vld [vmem:[%s6242_s4] sm:$0xff]  ;;  %v745_v57 = vld [vmem:[%s6242_s4 + $0x8] sm:$0xff] }
  0xa3   : > { %888 = vmatpush.bf16.msra.mxu0 %v5082_v8  ;;  %5128 = vmatpush.bf16.msra.mxu1 %v5082_v8  ;;  %v785_v50 = vpack.c.bf16 %v771_v45, %v770_v44  ;;  %v724_v58 = vld [vmem:[%s6234_s12 + $0x20] sm:$0xff]  ;;  %v725_v59 = vld [vmem:[%s6234_s12 + $0x28] sm:$0xff]  ;;  %v760_v62 = vpack.c.bf16 %v745_v57, %v744_v56  ;;  %v746_v4 = vld [vmem:[%s6242_s4 + $0x10] sm:$0xff] }
  0xa4   : > { %5129 = vmatpush.bf16.msra.mxu3 %v5082_v8  ;;  %1122 = vmatpush.bf16.msra.mxu2 %v5098_v9  ;;  %v792_v60 = vld [vmem:[%s6252_s25] sm:$0xff]  ;;  %v793_v61 = vld [vmem:[%s6252_s25 + $0x8] sm:$0xff]  ;;  %v738_v63 = vpack.c.bf16 %v725_v59, %v724_v58  ;;  %v747_v5 = vld [vmem:[%s6242_s4 + $0x18] sm:$0xff] }
  0xa5   : > { %v808_v0 = vpack.c.bf16 %v793_v61, %v792_v60  ;;  %v772_v1 = vld [vmem:[%s6249_s10 + $0x20] sm:$0xff]  ;;  %v773_v2 = vld [vmem:[%s6249_s10 + $0x28] sm:$0xff]  ;;  %v726_v6 = vld [vmem:[%s6234_s12 + $0x30] sm:$0xff] }
  0xa6   : > { %v786_v3 = vpack.c.bf16 %v773_v2, %v772_v1  ;;  %v727_v7 = vld [vmem:[%s6234_s12 + $0x38] sm:$0xff]  ;;  %v794_v8 = vld [vmem:[%s6252_s25 + $0x10] sm:$0xff]  ;;  %v748_v16 = vld [vmem:[%s6242_s4 + $0x20] sm:$0xff]  ;;  %s5911_s12 = smov 64  }
  0xa7   : > { %889 = vmatpush.bf16.msra.mxu0 %v5081_v10  ;;  %5130 = vmatpush.bf16.msra.mxu1 %v5081_v10  ;;  %v795_v9 = vld [vmem:[%s6252_s25 + $0x18] sm:$0xff]  ;;  %v749_v17 = vld [vmem:[%s6242_s4 + $0x28] sm:$0xff]  ;;  %v796_v18 = vld [vmem:[%s6252_s25 + $0x20] sm:$0xff] }
  0xa8   : > { %5131 = vmatpush.bf16.msra.mxu3 %v5081_v10  ;;  %1123 = vmatpush.bf16.msra.mxu2 %v5097_v11  ;;  %v761_v10 = vpack.c.bf16 %v747_v5, %v746_v4  ;;  %v739_v11 = vpack.c.bf16 %v727_v7, %v726_v6  ;;  %v797_v19 = vld [vmem:[%s6252_s25 + $0x28] sm:$0xff]  ;;  %v762_v20 = vpack.c.bf16 %v749_v17, %v748_v16  ;;  %v750_v25 = vld [vmem:[%s6242_s4 + $0x30] sm:$0xff]  ;;  %v779_v37 = vld [vmem:[%s6249_s10 + $0x58] sm:$0xff] }
  0xa9   : > { %v778_v36 = vld [vmem:[%s6249_s10 + $0x50] sm:$0xff]  ;;  %v755_v41 = vld [vmem:[%s6242_s4 + $0x58] sm:$0xff]  ;;  %v780_v45 = vld [vmem:[%s6249_s10 + $0x60] sm:$0xff] }
  0xaa   : > { %v789_v39 = vpack.c.bf16 %v779_v37, %v778_v36  ;;  %v754_v40 = vld [vmem:[%s6242_s4 + $0x50] sm:$0xff]  ;;  %v6336_v56 = vld [vmem:[%s9177_s15] ss:$0 sm:$0xff]  ;;  %s5919_s15 = smov 281  }
  0xab   : > { %890 = vmatpush.bf16.msra.mxu0 %v5080_v12  ;;  %5132 = vmatpush.bf16.msra.mxu1 %v5080_v12  ;;  %v765_v44 = vpack.c.bf16 %v755_v41, %v754_v40  ;;  %v6341_v57 = vld [vmem:[%s9178_s13] ss:$0 sm:$0xff]  ;;  %s5922_s13 = smov 297  }
  0xac   : > { %5133 = vmatpush.bf16.msra.mxu3 %v5080_v12  ;;  %1124 = vmatpush.bf16.msra.mxu2 %v5096_v13  ;;  %v809_v12 = vpack.c.bf16 %v795_v9, %v794_v8  ;;  %v774_v13 = vld [vmem:[%s6249_s10 + $0x30] sm:$0xff] }
  0xaf   : > { %891 = vmatpush.bf16.msra.mxu0 %v5079_v14  ;;  %5134 = vmatpush.bf16.msra.mxu1 %v5079_v14 }
  0xb0   : > { %5135 = vmatpush.bf16.msra.mxu3 %v5079_v14  ;;  %1125 = vmatpush.bf16.msra.mxu2 %v5095_v23  ;;  %v775_v14 = vld [vmem:[%s6249_s10 + $0x38] sm:$0xff]  ;;  %v777_v23 = vld [vmem:[%s6249_s10 + $0x48] sm:$0xff] }
  0xb1   : > { %v787_v15 = vpack.c.bf16 %v775_v14, %v774_v13  ;;  %v758_v14 = vld [vmem:[%s6242_s4 + $0x70] sm:$0xff] }
  0xb2   : > { %892 = vmatmul.bf16.vlgmr.msra.gmra.mxu0 %v736_v26  ;;  %912 = vmatmul.bf16.vlgmr.msra.gmra.mxu1 %v740_v27  ;;  %v751_v26 = vld [vmem:[%s6242_s4 + $0x38] sm:$0xff]  ;;  %v798_v27 = vld [vmem:[%s6252_s25 + $0x30] sm:$0xff] }
  0xb3   : > { %1001 = vmatpush.bf16.msrb.mxu1 %v5094_v21  ;;  %922 = vmatmul.bf16.vlgmr.msra.gmra.mxu3 %v742_v28  ;;  %v810_v21 = vpack.c.bf16 %v797_v19, %v796_v18  ;;  %v799_v28 = vld [vmem:[%s6252_s25 + $0x38] sm:$0xff] }
  0xb4   : > { %1231 = vmatpush.bf16.msrb.mxu3 %v5110_v22  ;;  %1126 = vmatmul.bf16.vlgmr.msra.gmra.mxu2 %v784_v30  ;;  %v776_v22 = vld [vmem:[%s6249_s10 + $0x40] sm:$0xff]  ;;  %v811_v30 = vpack.c.bf16 %v799_v28, %v798_v27 }
  0xb5   : > { %v788_v24 = vpack.c.bf16 %v777_v23, %v776_v22 }
  0xb7   : > { %1002 = vmatpush.bf16.msrb.mxu1 %v5093_v29  ;;  %v763_v29 = vpack.c.bf16 %v751_v26, %v750_v25 }
  0xb8   : > { %1232 = vmatpush.bf16.msrb.mxu3 %v5109_v31  ;;  %v752_v31 = vld [vmem:[%s6242_s4 + $0x40] sm:$0xff] }
  0xbb   : > { %1003 = vmatpush.bf16.msrb.mxu1 %v5092_v32  ;;  %v753_v32 = vld [vmem:[%s6242_s4 + $0x48] sm:$0xff] }
  0xbc   : > { %1233 = vmatpush.bf16.msrb.mxu3 %v5108_v33  ;;  %v800_v33 = vld [vmem:[%s6252_s25 + $0x40] sm:$0xff] }
  0xbf   : > { %1004 = vmatpush.bf16.msrb.mxu1 %v5091_v34  ;;  %v801_v34 = vld [vmem:[%s6252_s25 + $0x48] sm:$0xff] }
  0xc0   : > { %1234 = vmatpush.bf16.msrb.mxu3 %v5107_v35  ;;  %v764_v35 = vpack.c.bf16 %v753_v32, %v752_v31  ;;  %v812_v38 = vpack.c.bf16 %v801_v34, %v800_v33 }
  0xc2   : > { %917 = vmatmul.bf16.gmra.mxu1 %v741_v46  ;;  %897 = vmatmul.bf16.gmra.mxu0 %v737_v47  ;;  %v781_v46 = vld [vmem:[%s6249_s10 + $0x68] sm:$0xff] }
  0xc3   : > { %1005 = vmatpush.bf16.msrb.mxu1 %v5090_v42  ;;  %927 = vmatmul.bf16.gmra.mxu3 %v743_v48  ;;  %v802_v42 = vld [vmem:[%s6252_s25 + $0x50] sm:$0xff]  ;;  %v790_v48 = vpack.c.bf16 %v781_v46, %v780_v45  ;;  %v6373_v45 = vld [vmem:[%s9179_s26] ss:$0 sm:$0xff]  ;;  %s5925_s26 = smov 321  }
  0xc4   : > { %1235 = vmatpush.bf16.msrb.mxu3 %v5106_v43  ;;  %1131 = vmatmul.bf16.gmra.mxu2 %v785_v50  ;;  %v803_v43 = vld [vmem:[%s6252_s25 + $0x58] sm:$0xff]  ;;  %v757_v50 = vld [vmem:[%s6242_s4 + $0x68] sm:$0xff] }
  0xc5   : > { %v813_v47 = vpack.c.bf16 %v803_v43, %v802_v42 }
  0xc7   : > { %1006 = vmatpush.bf16.msrb.mxu1 %v5089_v49  ;;  %v756_v49 = vld [vmem:[%s6242_s4 + $0x60] sm:$0xff] }
  0xc8   : > { %1236 = vmatpush.bf16.msrb.mxu3 %v5105_v51  ;;  %v6329_v51 = vld [vmem:[%s8999_s9] ss:$0 sm:$0xff] }
  0xcb   : > { %1007 = vmatpush.bf16.msrb.mxu1 %v5088_v52  ;;  %v804_v52 = vld [vmem:[%s6252_s25 + $0x60] sm:$0xff] }
  0xcc   : > { %1237 = vmatpush.bf16.msrb.mxu3 %v5104_v53  ;;  %v805_v53 = vld [vmem:[%s6252_s25 + $0x68] sm:$0xff] }
  0xcd   : > { %v814_v59 = vpack.c.bf16 %v805_v53, %v804_v52 }
  0xcf   : > { %1008 = vmatpush.bf16.msrb.mxu1 %v5087_v54  ;;  %v766_v54 = vpack.c.bf16 %v757_v50, %v756_v49 }
  0xd0   : > { %1238 = vmatpush.bf16.msrb.mxu3 %v5103_v55 }
  0xd2   : > { %1009 = vmatmul.bf16.vlgmr.msrb.gmra.mxu1 %v760_v62  ;;  %902 = vmatmul.bf16.gmra.mxu0 %v738_v63 }
  0xd3   : > { %1239 = vmatmul.bf16.vlgmr.msrb.gmra.mxu3 %v808_v0 }
  0xd4   : > { %1136 = vmatmul.bf16.gmra.mxu2 %v786_v3 }
  0xe2   : > { %1014 = vmatmul.bf16.gmra.mxu1 %v761_v10  ;;  %907 = vmatmul.bf16.gmra.mxu0 %v739_v11 }
  0xe3   : > { %1244 = vmatmul.bf16.gmra.mxu3 %v809_v12 }
  0xe4   : > { %1141 = vmatmul.bf16.gmra.mxu2 %v787_v15  ;;  %v759_v15 = vld [vmem:[%s6242_s4 + $0x78] sm:$0xff]  ;;  %s5927_s4 = smov 337  }
  0xe5   : > { %v767_v25 = vpack.c.bf16 %v759_v15, %v758_v14 }
  0xf2   : > { %1019 = vmatmul.bf16.gmra.mxu1 %v762_v20  ;;  %v806_v20 = vld [vmem:[%s6252_s25 + $0x70] sm:$0xff] }
  0xf3   : > { %1249 = vmatmul.bf16.gmra.mxu3 %v810_v21  ;;  %v807_v21 = vld [vmem:[%s6252_s25 + $0x78] sm:$0xff]  ;;  %s5914_s25 = smov 353  }
  0xf4   : > { %1146 = vmatmul.bf16.gmra.mxu2 %v788_v24 }
 0x102   : > { %1024 = vmatmul.bf16.gmra.mxu1 %v763_v29 }
 0x103   : > { %1254 = vmatmul.bf16.gmra.mxu3 %v811_v30  ;;  %v815_v30 = vpack.c.bf16 %v807_v21, %v806_v20 }
 0x104   : > { %1151 = vmatmul.bf16.gmra.mxu2 %v789_v39 }
 0x112   : > { %1029 = vmatmul.bf16.gmra.mxu1 %v764_v35 }
 0x113   : > { %1259 = vmatmul.bf16.gmra.mxu3 %v812_v38 }
 0x114   : > { %1156 = vmatmul.bf16.gmra.mxu2 %v790_v48 }
 0x122   : > { %1034 = vmatmul.bf16.gmra.mxu1 %v765_v44 }
 0x123   : > { %1264 = vmatmul.bf16.gmra.mxu3 %v813_v47 }
 0x12f   : > { %v893_v55 = vpop.f32.mrf.mxu0  ;;  %v913_v58 = vpop.f32.mrf.mxu1 }
 0x130   : > { %v894_v60 = vadd.f32 %v6329_v51, %v893_v55  ;;  %v914_v61 = vadd.f32 %v6329_v51, %v913_v58 }
 0x132   : > { %1039 = vmatmul.bf16.gmra.mxu1 %v766_v54  ;;  %v1284_v62 = vadd.f32 %v6336_v56, %v894_v60  ;;  %v1336_v63 = vadd.f32 %v6341_v57, %v894_v60  ;;  %v1344_v0 = vadd.f32 %v6341_v57, %v914_v61  ;;  %v1292_v42 = vadd.f32 %v6336_v56, %v914_v61 }
 0x133   : > { %1269 = vmatmul.bf16.gmra.mxu3 %v814_v59 }
 0x134   : > { %v1300_v2 = vmul.f32 0.17677669, %v1284_v62  ;;  %v1352_v3 = vmul.f32 0.17677669, %v1336_v63  ;;  %v1360_v4 = vmul.f32 0.17677669, %v1344_v0 }
 0x135   : > { %v1308_v54 = vmul.f32 0.17677669, %v1292_v42 }
 0x136   : > { %v923_v1 = vpop.f32.mrf.mxu3  ;;  %v1316_v16 = vpack.c.bf16 %v1300_v2, %v1300_v2  ;;  %v1368_v17 = vpack.c.bf16 %v1352_v3, %v1352_v3  ;;  %v1376_v18 = vpack.c.bf16 %v1360_v4, %v1360_v4 }
 0x137   : > { %v6349_v5 = vadd.f32 %v6329_v51, %v923_v1  ;;  %v895_v6 = vpop.f32.mrf.mxu0  ;;  %v915_v7 = vpop.f32.mrf.mxu1 }
 0x138   : > { %v896_v8 = vadd.f32 %v6329_v51, %v895_v6  ;;  %v1127_v9 = vpop.f32.mrf.mxu2  ;;  %v916_v10 = vadd.f32 %v6329_v51, %v915_v7  ;;  %v1515_v31 = vunpack.c.l.b16 %v1368_v17  ;;  %v1855_v32 = vunpack.c.l.b16 %v1316_v16 }
 0x139   : > { %v1348_v11 = vadd.f32 %v6341_v57, %v6349_v5  ;;  %v1523_v33 = vunpack.c.l.b16 %v1376_v18  ;;  %v1128_v55 = vadd.f32 %v6373_v45, %v1127_v9  ;;  %v1324_v6 = vpack.c.bf16 %v1308_v54, %v1308_v54 }
 0x13a   : > { %v1285_v12 = vadd.f32 %v6336_v56, %v896_v8  ;;  %v1337_v13 = vadd.f32 %v6341_v57, %v896_v8  ;;  %v1345_v19 = vadd.f32 %v6341_v57, %v916_v10  ;;  %v1293_v43 = vadd.f32 %v6336_v56, %v916_v10 }
 0x13b   : > { %v1364_v26 = vmul.f32 0.17677669, %v1348_v11  ;;  %v1416_v7 = vpack.c.bf16 %v1128_v55, %v1128_v55  ;;  %v1863_v20 = vunpack.c.l.b16 %v1324_v6 }
 0x13c   : > { %v1301_v22 = vmul.f32 0.17677669, %v1285_v12  ;;  %v1353_v23 = vmul.f32 0.17677669, %v1337_v13  ;;  %v1361_v24 = vmul.f32 0.17677669, %v1345_v19 }
 0x13d   : > { %v1380_v46 = vpack.c.bf16 %v1364_v26, %v1364_v26  ;;  %v1309_v60 = vmul.f32 0.17677669, %v1293_v43  ;;  %v2184_v17 = vunpack.c.l.b16 %v1416_v7 }
 0x13e   : > { %v1317_v27 = vpack.c.bf16 %v1301_v22, %v1301_v22  ;;  %v1369_v28 = vpack.c.bf16 %v1353_v23, %v1353_v23  ;;  %v925_v29 = vpop.f32.mrf.mxu3  ;;  %v1377_v34 = vpack.c.bf16 %v1361_v24, %v1361_v24 }
 0x13f   : > { %v918_v35 = vpop.f32.mrf.mxu1  ;;  %v898_v36 = vpop.f32.mrf.mxu0  ;;  %v6363_v39 = vadd.f32 %v6329_v51, %v925_v29  ;;  %v1527_v59 = vunpack.c.l.b16 %v1380_v46  ;;  %v1325_v9 = vpack.c.bf16 %v1309_v60, %v1309_v60 }
 0x140   : > { %v1516_v37 = vunpack.c.l.b16 %v1369_v28  ;;  %v1856_v38 = vunpack.c.l.b16 %v1317_v27  ;;  %v6366_v40 = vadd.f32 %v6329_v51, %v918_v35  ;;  %v1129_v41 = vpop.f32.mrf.mxu2  ;;  %v1524_v44 = vunpack.c.l.b16 %v1377_v34 }
 0x141   : > { %v1349_v49 = vadd.f32 %v6341_v57, %v6363_v39  ;;  %v1130_v58 = vadd.f32 %v6373_v45, %v1129_v41  ;;  %v899_v16 = vadd.f32 %v6329_v51, %v898_v36  ;;  %v1864_v21 = vunpack.c.l.b16 %v1325_v9 }
 0x142   : > { %v6375_v47 = vpack.c.b16 %v1516_v37, %v1515_v31  ;;  %v6377_v48 = vpack.c.b16 %v1856_v38, %v1855_v32  ;;  %1044 = vmatmul.bf16.gmra.mxu1 %v767_v25  ;;  %v6381_v50 = vpack.c.b16 %v1524_v44, %v1523_v33  ;;  %v1346_v52 = vadd.f32 %v6341_v57, %v6366_v40  ;;  %v782_v37 = vld [vmem:[%s6249_s10 + $0x70] sm:$0xff]  ;;  %v783_v38 = vld [vmem:[%s6249_s10 + $0x78] sm:$0xff]  ;;  %s9189_s10 = sld [smem:[#allocation97_spill]] }
 0x143   : > { %1274 = vmatmul.bf16.gmra.mxu3 %v815_v30  ;;  %v1365_v53 = vmul.f32 0.17677669, %v1349_v49  ;;  %v1417_v8 = vpack.c.bf16 %v1130_v58, %v1130_v58  ;;  %v1286_v31 = vadd.f32 %v6336_v56, %v899_v16  ;;  %v1296_v41 = vadd.f32 %v6336_v56, %v6349_v5 }
 0x144   : > { %9180 = vst [vmem:[#allocation31_spill] sm:$0xff] %v6381_v50  ;;  %2281 = vrot.lane.b32.xlu0 %v6375_v47, %s5910_s7  ;;  %2571 = vrot.lane.b32.xlu2 %v6377_v48, %s5910_s7  ;;  %v1362_v62 = vmul.f32 0.17677669, %v1346_v52  ;;  %v6430_v42 = vpack.c.b16 %v1864_v21, %v1863_v20  ;;  %v1297_v43 = vadd.f32 %v6336_v56, %v6363_v39 }
 0x145   : > { %3014 = vrot.lane.b32.xlu1 %v6381_v50, %s5911_s12  ;;  %v1381_v61 = vpack.c.bf16 %v1365_v53, %v1365_v53  ;;  %v2185_v18 = vunpack.c.l.b16 %v1417_v8  ;;  %v791_v54 = vpack.c.bf16 %v783_v38, %v782_v37  ;;  %v1302_v55 = vmul.f32 0.17677669, %v1286_v31 }
 0x146   : > { %v928_v63 = vpop.f32.mrf.mxu3  ;;  %v1378_v11 = vpack.c.bf16 %v1362_v62, %v1362_v62  ;;  %9183 = vst [vmem:[#allocation34_spill] sm:$0xff] %v6430_v42  ;;  %v1312_v39 = vmul.f32 0.17677669, %v1296_v41 }
 0x147   : > { %v920_v0 = vpop.f32.mrf.mxu1  ;;  %v900_v1 = vpop.f32.mrf.mxu0  ;;  %v1528_v2 = vunpack.c.l.b16 %v1381_v61  ;;  %v6401_v13 = vadd.f32 %v6329_v51, %v928_v63  ;;  %v6420_v33 = vpack.c.b16 %v2185_v18, %v2184_v17  ;;  %1161 = vmatmul.bf16.gmra.mxu2 %v791_v54 }
 0x148   : > { %v6394_v3 = vadd.f32 %v6329_v51, %v920_v0  ;;  %v1132_v4 = vpop.f32.mrf.mxu2  ;;  %v901_v19 = vadd.f32 %v6329_v51, %v900_v1  ;;  %v1525_v22 = vunpack.c.l.b16 %v1378_v11  ;;  %v1328_v8 = vpack.c.bf16 %v1312_v39, %v1312_v39 }
 0x149   : > { %v6396_v10 = vpack.c.b16 %v1528_v2, %v1527_v59  ;;  %v1133_v15 = vadd.f32 %v6373_v45, %v1132_v4  ;;  %v1350_v28 = vadd.f32 %v6341_v57, %v6401_v13  ;;  %9182 = vst [vmem:[#allocation33_spill] sm:$0xff] %v6420_v33  ;;  %v1313_v59 = vmul.f32 0.17677669, %v1297_v43 }
 0x14a   : > { %v1347_v12 = vadd.f32 %v6341_v57, %v6394_v3  ;;  %v1287_v36 = vadd.f32 %v6336_v56, %v901_v19  ;;  %v1318_v2 = vpack.c.bf16 %v1302_v55, %v1302_v55  ;;  %v1338_v4 = vadd.f32 %v6341_v57, %v899_v16 }
 0x14b   : > { %9181 = vst [vmem:[#allocation32_spill] sm:$0xff] %v6396_v10  ;;  %v1418_v30 = vpack.c.bf16 %v1133_v15, %v1133_v15  ;;  %v1366_v49 = vmul.f32 0.17677669, %v1350_v28  ;;  %v1339_v7 = vadd.f32 %v6341_v57, %v901_v19  ;;  %v1329_v9 = vpack.c.bf16 %v1313_v59, %v1313_v59 }
 0x14c   : > { %v1363_v14 = vmul.f32 0.17677669, %v1347_v12  ;;  %2289 = vrot.lane.b32.xlu0 %v6381_v50, %s5910_s7  ;;  %3018 = vrot.lane.b32.xlu2 %v6396_v10, %s5911_s12  ;;  %v1303_v58 = vmul.f32 0.17677669, %v1287_v36  ;;  %v1354_v16 = vmul.f32 0.17677669, %v1338_v4  ;;  %v1857_v17 = vunpack.c.l.b16 %v1318_v2 }
 0x14d   : > { %3731 = vrot.lane.b32.xlu1 %v6375_v47, %s5912_s29  ;;  %v2186_v52 = vunpack.c.l.b16 %v1418_v30  ;;  %v1382_v63 = vpack.c.bf16 %v1366_v49, %v1366_v49  ;;  %v1355_v18 = vmul.f32 0.17677669, %v1339_v7  ;;  %v1867_v20 = vunpack.c.l.b16 %v1328_v8 }
 0x14e   : > { %v1379_v23 = vpack.c.bf16 %v1363_v14, %v1363_v14  ;;  %v930_v24 = vpop.f32.mrf.mxu3  ;;  %v1319_v6 = vpack.c.bf16 %v1303_v58, %v1303_v58  ;;  %v1868_v21 = vunpack.c.l.b16 %v1329_v9  ;;  %v1370_v36 = vpack.c.bf16 %v1354_v16, %v1354_v16 }
 0x14f   : > { %v6413_v25 = vadd.f32 %v6329_v51, %v930_v24  ;;  %v6415_v26 = vpop.f32.mrf.mxu1  ;;  %v903_v27 = vpop.f32.mrf.mxu0  ;;  %v1529_v12 = vunpack.c.l.b16 %v1382_v63  ;;  %v1371_v37 = vpack.c.bf16 %v1355_v18, %v1355_v18 }
 0x150   : > { %v1526_v29 = vunpack.c.l.b16 %v1379_v23  ;;  %v1134_v32 = vpop.f32.mrf.mxu2  ;;  %v6449_v11 = vadd.f32 %v6329_v51, %v903_v27  ;;  %v1858_v19 = vunpack.c.l.b16 %v1319_v6  ;;  %v1294_v23 = vadd.f32 %v6336_v56, %v6366_v40 }
 0x151   : > { %v1351_v34 = vadd.f32 %v6341_v57, %v6413_v25  ;;  %v1135_v35 = vadd.f32 %v6373_v45, %v1134_v32  ;;  %v6473_v38 = vpack.c.b16 %v1868_v21, %v1867_v20  ;;  %v1517_v55 = vunpack.c.l.b16 %v1370_v36 }
 0x152   : > { %v6434_v44 = vpack.c.b16 %v1526_v29, %v1525_v22  ;;  %v1340_v27 = vadd.f32 %v6341_v57, %v6449_v11  ;;  %v6471_v40 = vpack.c.b16 %v1858_v19, %v1857_v17 }
 0x153   : > { %v1419_v46 = vpack.c.bf16 %v1135_v35, %v1135_v35  ;;  %v1367_v53 = vmul.f32 0.17677669, %v1351_v34  ;;  %v1295_v35 = vadd.f32 %v6336_v56, %v6394_v3  ;;  %9188 = vst [vmem:[#allocation39_spill] sm:$0xff] %v6473_v38 }
 0x154   : > { %9184 = vst [vmem:[#allocation35_spill] sm:$0xff] %v6434_v44  ;;  %2579 = vrot.lane.b32.xlu0 %v6430_v42, %s5910_s7  ;;  %2291 = vrot.lane.b32.xlu2 %v6434_v44, %s5910_s7 }
 0x155   : > { %v2187_v5 = vunpack.c.l.b16 %v1419_v46  ;;  %2852 = vrot.lane.b32.xlu1 %v6420_v33, %s5910_s7  ;;  %v1383_v0 = vpack.c.bf16 %v1367_v53, %v1367_v53  ;;  %9187 = vst [vmem:[#allocation38_spill] sm:$0xff] %v6471_v40  ;;  %v1356_v46 = vmul.f32 0.17677669, %v1340_v27  ;;  %v1310_v53 = vmul.f32 0.17677669, %v1294_v23 }
 0x156   : > { %v1240_v60 = vpop.f32.mrf.mxu3  ;;  %v1311_v54 = vmul.f32 0.17677669, %v1295_v35 }
 0x157   : > { %v6442_v61 = vpop.f32.mrf.mxu1  ;;  %v905_v62 = vpop.f32.mrf.mxu0  ;;  %v6444_v1 = vpack.c.b16 %v2187_v5, %v2186_v52  ;;  %v1530_v14 = vunpack.c.l.b16 %v1383_v0  ;;  %v1400_v24 = vpack.c.bf16 %v1240_v60, %v1240_v60  ;;  %v1518_v5 = vunpack.c.l.b16 %v1371_v37 }
 0x158   : > { %v6456_v15 = vadd.f32 %v6329_v51, %v905_v62  ;;  %v6485_v60 = vpop.f32.mrf.mxu2  ;;  %v6490_v62 = vld [vmem:[%s9189_s10] ss:$0 sm:$0xff]  ;;  %v1372_v63 = vpack.c.bf16 %v1356_v46, %v1356_v46  ;;  %v1326_v8 = vpack.c.bf16 %v1310_v53, %v1310_v53  ;;  %v1327_v9 = vpack.c.bf16 %v1311_v54, %v1311_v54  ;;  %s5928_s10 = smov 345  }
 0x159   : > { %9185 = vst [vmem:[#allocation36_spill] sm:$0xff] %v6444_v1  ;;  %v6464_v30 = vpack.c.b16 %v1530_v14, %v1529_v12  ;;  %v1555_v49 = vunpack.c.l.b16 %v1400_v24  ;;  %v6495_v12 = vpack.c.b16 %v1518_v5, %v1517_v55  ;;  %v1298_v53 = vadd.f32 %v6336_v56, %v6401_v13 }
 0x15a   : > { %v1341_v32 = vadd.f32 %v6341_v57, %v6456_v15  ;;  %v1519_v19 = vunpack.c.l.b16 %v1372_v63  ;;  %v1865_v24 = vunpack.c.l.b16 %v1326_v8  ;;  %v1866_v27 = vunpack.c.l.b16 %v1327_v9 }
 0x15b   : > { %9186 = vst [vmem:[#allocation37_spill] sm:$0xff] %v6464_v30  ;;  %v1299_v54 = vadd.f32 %v6336_v56, %v6413_v25  ;;  %v1013_v13 = vadd.f32 %v6490_v62, %v6442_v61  ;;  %v1314_v63 = vmul.f32 0.17677669, %v1298_v53 }
 0x15c   : > { %3006 = vrot.lane.b32.xlu0 %v6375_v47, %s5911_s12  ;;  %2854 = vrot.lane.b32.xlu2 %v6444_v1, %s5910_s7  ;;  %v1357_v3 = vmul.f32 0.17677669, %v1341_v32 }
 0x15d   : > { %2293 = vrot.lane.b32.xlu1 %v6396_v10, %s5910_s7  ;;  %v1315_v25 = vmul.f32 0.17677669, %v1299_v54  ;;  %v1330_v8 = vpack.c.bf16 %v1314_v63, %v1314_v63 }
 0x15e   : > { %v1242_v22 = vpop.f32.mrf.mxu3  ;;  %v1373_v6 = vpack.c.bf16 %v1357_v3, %v1357_v3 }
 0x15f   : > { %v1015_v28 = vpop.f32.mrf.mxu1  ;;  %v908_v29 = vpop.f32.mrf.mxu0  ;;  %v1401_v31 = vpack.c.bf16 %v1242_v22, %v1242_v22  ;;  %v1331_v9 = vpack.c.bf16 %v1315_v25, %v1315_v25 }
 0x160   : > { %v909_v34 = vadd.f32 %v6329_v51, %v908_v29  ;;  %v1016_v20 = vadd.f32 %v6490_v62, %v1015_v28  ;;  %v1520_v21 = vunpack.c.l.b16 %v1373_v6  ;;  %v6511_v46 = vpop.f32.mrf.mxu2 }
 0x161   : > { %v1556_v52 = vunpack.c.l.b16 %v1401_v31 }
 0x162   : > { %v1290_v41 = vadd.f32 %v6336_v56, %v909_v34  ;;  %v1342_v43 = vadd.f32 %v6341_v57, %v909_v34  ;;  %v1386_v34 = vpack.c.bf16 %v1016_v20, %v1016_v20  ;;  %v6509_v36 = vpack.c.b16 %v1520_v21, %v1519_v19 }
 0x163   : > { %v6492_v4 = vpack.c.b16 %v1556_v52, %v1555_v49  ;;  %v6513_v49 = vpack.c.b16 %v1866_v27, %v1865_v24  ;;  %v1288_v21 = vadd.f32 %v6336_v56, %v6449_v11 }
 0x164   : > { %2583 = vrot.lane.b32.xlu0 %v6473_v38, %s5910_s7  ;;  %3020 = vrot.lane.b32.xlu2 %v6464_v30, %s5911_s12  ;;  %v1306_v39 = vmul.f32 0.17677669, %v1290_v41  ;;  %v1358_v59 = vmul.f32 0.17677669, %v1342_v43  ;;  %v1897_v55 = vunpack.c.l.b16 %v1386_v34 }
 0x165   : > { %2573 = vrot.lane.b32.xlu1 %v6471_v40, %s5910_s7  ;;  %9190 = vst [vmem:[#allocation40_spill] sm:$0xff] %v6513_v49  ;;  %v1304_v24 = vmul.f32 0.17677669, %v1288_v21 }
 0x166   : > { %v6483_v58 = vpop.f32.mrf.mxu3  ;;  %v1322_v14 = vpack.c.bf16 %v1306_v39, %v1306_v39  ;;  %v1374_v16 = vpack.c.bf16 %v1358_v59, %v1358_v59  ;;  %v1011_v39 = vadd.f32 %v6490_v62, %v6415_v26 }
 0x167   : > { %v1017_v0 = vpop.f32.mrf.mxu1  ;;  %v910_v2 = vpop.f32.mrf.mxu0 }
 0x168   : > { %v911_v7 = vadd.f32 %v6329_v51, %v910_v2  ;;  %v1018_v22 = vadd.f32 %v6490_v62, %v1017_v0  ;;  %v1521_v29 = vunpack.c.l.b16 %v1374_v16  ;;  %v1861_v31 = vunpack.c.l.b16 %v1322_v14  ;;  %v1142_v14 = vpop.f32.mrf.mxu2 }
 0x169   : > { %v1384_v6 = vpack.c.bf16 %v1011_v39, %v1011_v39 }
 0x16a   : > { %v1291_v17 = vadd.f32 %v6336_v56, %v911_v7  ;;  %v1343_v18 = vadd.f32 %v6341_v57, %v911_v7  ;;  %v1387_v37 = vpack.c.bf16 %v1018_v22, %v1018_v22  ;;  %v1385_v7 = vpack.c.bf16 %v1013_v13, %v1013_v13 }
 0x16b   : > { %v1895_v26 = vunpack.c.l.b16 %v1384_v6  ;;  %v1289_v22 = vadd.f32 %v6336_v56, %v6456_v15  ;;  %v1402_v56 = vpack.c.bf16 %v6483_v58, %v6483_v58 }
 0x16c   : > { %2283 = vrot.lane.b32.xlu0 %v6495_v12, %s5910_s7  ;;  %3022 = vrot.lane.b32.xlu2 %v6492_v4, %s5911_s12  ;;  %v1307_v51 = vmul.f32 0.17677669, %v1291_v17  ;;  %v1359_v23 = vmul.f32 0.17677669, %v1343_v18  ;;  %v1898_v5 = vunpack.c.l.b16 %v1387_v37  ;;  %v1896_v61 = vunpack.c.l.b16 %v1385_v7 }
 0x16d   : > { %3008 = vrot.lane.b32.xlu1 %v6495_v12, %s5911_s12  ;;  %v1869_v17 = vunpack.c.l.b16 %v1330_v8  ;;  %v1870_v18 = vunpack.c.l.b16 %v1331_v9  ;;  %v1305_v27 = vmul.f32 0.17677669, %v1289_v22  ;;  %v1143_v37 = vadd.f32 %v6373_v45, %v1142_v14 }
 0x16e   : > { %v1247_v57 = vpop.f32.mrf.mxu3  ;;  %v1323_v28 = vpack.c.bf16 %v1307_v51, %v1307_v51  ;;  %v1375_v32 = vpack.c.bf16 %v1359_v23, %v1359_v23  ;;  %v6535_v2 = vpack.c.b16 %v1898_v5, %v1897_v55  ;;  %v6543_v20 = vpack.c.b16 %v1896_v61, %v1895_v26 }
 0x16f   : > { %v6507_v35 = vpop.f32.mrf.mxu1  ;;  %v6549_v51 = vpack.c.b16 %v1870_v18, %v1869_v17  ;;  %v1403_v15 = vpack.c.bf16 %v1247_v57, %v1247_v57  ;;  %v1422_v5 = vpack.c.bf16 %v1143_v37, %v1143_v37 }
 0x170   : > { %v1522_v41 = vunpack.c.l.b16 %v1375_v32  ;;  %v1862_v43 = vunpack.c.l.b16 %v1323_v28  ;;  %v1144_v23 = vpop.f32.mrf.mxu2  ;;  %v1321_v28 = vpack.c.bf16 %v1305_v27, %v1305_v27  ;;  %v1557_v32 = vunpack.c.l.b16 %v1402_v56 }
 0x171   : > { %9193 = vst [vmem:[#allocation43_spill] sm:$0xff] %v6549_v51  ;;  %v1558_v34 = vunpack.c.l.b16 %v1403_v15  ;;  %v2190_v63 = vunpack.c.l.b16 %v1422_v5  ;;  %v1021_v5 = vadd.f32 %v6490_v62, %v6507_v35 }
 0x172   : > { %v6515_v52 = vpack.c.b16 %v1522_v41, %v1521_v29  ;;  %v6517_v3 = vpack.c.b16 %v1862_v43, %v1861_v31  ;;  %v1320_v31 = vpack.c.bf16 %v1304_v24, %v1304_v24  ;;  %v1145_v41 = vadd.f32 %v6373_v45, %v1144_v23 }
 0x173   : > { %v1860_v57 = vunpack.c.l.b16 %v1321_v28  ;;  %v6575_v55 = vpack.c.b16 %v1558_v34, %v1557_v32 }
 0x174   : > { %9191 = vst [vmem:[#allocation41_spill] sm:$0xff] %v6515_v52  ;;  %2581 = vrot.lane.b32.xlu0 %v6513_v49, %s5910_s7  ;;  %3010 = vrot.lane.b32.xlu2 %v6509_v36, %s5911_s12  ;;  %v1859_v58 = vunpack.c.l.b16 %v1320_v31  ;;  %v1423_v39 = vpack.c.bf16 %v1145_v41, %v1145_v41 }
 0x175   : > { %9192 = vst [vmem:[#allocation42_spill] sm:$0xff] %v6517_v3  ;;  %3016 = vrot.lane.b32.xlu1 %v6434_v44, %s5911_s12 }
 0x176   : > { %v1250_v59 = vpop.f32.mrf.mxu3  ;;  %v6577_v13 = vpack.c.b16 %v1860_v57, %v1859_v58  ;;  %v2191_v25 = vunpack.c.l.b16 %v1423_v39 }
 0x177   : > { %v6533_v0 = vpop.f32.mrf.mxu1  ;;  %v1404_v9 = vpack.c.bf16 %v1250_v59, %v1250_v59  ;;  %v1138_v59 = vadd.f32 %v6373_v45, %v6485_v60 }
 0x178   : > { %v6569_v43 = vpop.f32.mrf.mxu2  ;;  %9194 = vst [vmem:[#allocation44_spill] sm:$0xff] %v6577_v13  ;;  %v6591_v26 = vpack.c.b16 %v2191_v25, %v2190_v63  ;;  %v1023_v39 = vadd.f32 %v6490_v62, %v6533_v0 }
 0x179   : > { %v1559_v61 = vunpack.c.l.b16 %v1404_v9  ;;  %v1420_v27 = vpack.c.bf16 %v1138_v59, %v1138_v59 }
 0x17a   : > { %9195 = vst [vmem:[#allocation45_spill] sm:$0xff] %v6591_v26 }
 0x17b   : > { %v2188_v28 = vunpack.c.l.b16 %v1420_v27 }
 0x17c   : > { %2295 = vrot.lane.b32.xlu0 %v6464_v30, %s5910_s7  ;;  %2589 = vrot.lane.b32.xlu2 %v6535_v2, %s5910_s7 }
 0x17d   : > { %3733 = vrot.lane.b32.xlu1 %v6495_v12, %s5912_s29 }
 0x17e   : > { %v1252_v16 = vpop.f32.mrf.mxu3 }
 0x17f   : > { %v1025_v19 = vpop.f32.mrf.mxu1  ;;  %v1405_v14 = vpack.c.bf16 %v1252_v16, %v1252_v16  ;;  %v1140_v16 = vadd.f32 %v6373_v45, %v6511_v46 }
 0x180   : > { %v6589_v8 = vpop.f32.mrf.mxu2  ;;  %v1026_v15 = vadd.f32 %v6490_v62, %v1025_v19 }
 0x181   : > { %v1560_v17 = vunpack.c.l.b16 %v1405_v14  ;;  %v1421_v56 = vpack.c.bf16 %v1140_v16, %v1140_v16 }
 0x182   : > { %v1390_v19 = vpack.c.bf16 %v1026_v15, %v1026_v15 }
 0x183   : > { %v6609_v23 = vpack.c.b16 %v1560_v17, %v1559_v61  ;;  %v2189_v32 = vunpack.c.l.b16 %v1421_v56  ;;  %v1388_v61 = vpack.c.bf16 %v1021_v5, %v1021_v5  ;;  %v1389_v17 = vpack.c.bf16 %v1023_v39, %v1023_v39 }
 0x184   : > { %4037 = vrot.lane.b32.xlu0 %v6543_v20, %s5912_s29  ;;  %3314 = vrot.lane.b32.xlu2 %v6535_v2, %s5911_s12  ;;  %v1901_v58 = vunpack.c.l.b16 %v1390_v19 }
 0x185   : > { %2585 = vrot.lane.b32.xlu1 %v6549_v51, %s5910_s7  ;;  %v1899_v35 = vunpack.c.l.b16 %v1388_v61  ;;  %v1900_v0 = vunpack.c.l.b16 %v1389_v17 }
 0x186   : > { %v6557_v29 = vpop.f32.mrf.mxu3 }
 0x187   : > { %v1027_v11 = vpop.f32.mrf.mxu1 }
 0x188   : > { %v6611_v24 = vpop.f32.mrf.mxu2  ;;  %v1028_v31 = vadd.f32 %v6490_v62, %v1027_v11  ;;  %v6627_v11 = vpack.c.b16 %v2189_v32, %v2188_v28  ;;  %v6659_v28 = vpack.c.b16 %v1900_v0, %v1899_v35  ;;  %v1406_v32 = vpack.c.bf16 %v6557_v29, %v6557_v29 }
 0x189   : > { %v1150_v29 = vadd.f32 %v6373_v45, %v6589_v8 }
 0x18a   : > { %v1391_v37 = vpack.c.bf16 %v1028_v31, %v1028_v31  ;;  %9198 = vst [vmem:[#allocation48_spill] sm:$0xff] %v6627_v11 }
 0x18c   : > { %2285 = vrot.lane.b32.xlu0 %v6509_v36, %s5910_s7  ;;  %2577 = vrot.lane.b32.xlu2 %v6517_v3, %s5910_s7  ;;  %v1902_v57 = vunpack.c.l.b16 %v1391_v37  ;;  %v1561_v37 = vunpack.c.l.b16 %v1406_v32 }
 0x18d   : > { %2587 = vrot.lane.b32.xlu1 %v6543_v20, %s5910_s7 }
 0x18e   : > { %v6571_v53 = vpop.f32.mrf.mxu3  ;;  %v6643_v14 = vpack.c.b16 %v1902_v57, %v1901_v58  ;;  %v1148_v57 = vadd.f32 %v6373_v45, %v6569_v43 }
 0x18f   : > { %v6573_v54 = vpop.f32.mrf.mxu1  ;;  %v1407_v19 = vpack.c.bf16 %v6571_v53, %v6571_v53 }
 0x190   : > { %v1154_v41 = vpop.f32.mrf.mxu2  ;;  %v1424_v32 = vpack.c.bf16 %v1148_v57, %v1148_v57 }
 0x191   : > { %v1562_v58 = vunpack.c.l.b16 %v1407_v19  ;;  %v1425_v19 = vpack.c.bf16 %v1150_v29, %v1150_v29 }
 0x193   : > { %v6683_v0 = vpack.c.b16 %v1562_v58, %v1561_v37  ;;  %v1155_v37 = vadd.f32 %v6373_v45, %v1154_v41  ;;  %v2192_v58 = vunpack.c.l.b16 %v1424_v32  ;;  %v2193_v57 = vunpack.c.l.b16 %v1425_v19 }
 0x194   : > { %2575 = vrot.lane.b32.xlu0 %v6577_v13, %s5910_s7  ;;  %3024 = vrot.lane.b32.xlu2 %v6575_v55, %s5911_s12 }
 0x195   : > { %3312 = vrot.lane.b32.xlu1 %v6543_v20, %s5911_s12  ;;  %v6706_v19 = vpack.c.b16 %v2193_v57, %v2192_v58 }
 0x196   : > { %v6585_v6 = vpop.f32.mrf.mxu3 }
 0x197   : > { %v6587_v7 = vpop.f32.mrf.mxu1  ;;  %9208 = vst [vmem:[#allocation58_spill] sm:$0xff] %v6706_v19 }
 0x198   : > { %v1157_v59 = vpop.f32.mrf.mxu2 }
 0x199   : > { %v1158_v43 = vadd.f32 %v6373_v45, %v1157_v59 }
 0x19c   : > { %3747 = vrot.lane.b32.xlu0 %v6492_v4, %s5912_s29  ;;  %2858 = vrot.lane.b32.xlu2 %v6591_v26, %s5910_s7 }
 0x19d   : > { %2297 = vrot.lane.b32.xlu1 %v6492_v4, %s5910_s7 }
 0x19e   : > { %v6599_v18 = vpop.f32.mrf.mxu3  ;;  %v6601_v21 = vpop.permute.xlu2 %2571 }
 0x19f   : > { %9196 = vst [vmem:[#allocation46_spill] sm:$0xff] %v6601_v21  ;;  %v6607_v22 = vpop.f32.mrf.mxu1  ;;  %v1427_v21 = vpack.c.bf16 %v1155_v37, %v1155_v37 }
 0x1a0   : > { %v1159_v35 = vpop.f32.mrf.mxu2 }
 0x1a1   : > { %v1160_v8 = vadd.f32 %v6373_v45, %v1159_v35 }
 0x1a3   : > { %v1429_v41 = vpack.c.bf16 %v1160_v8, %v1160_v8 }
 0x1a4   : > { %4039 = vrot.lane.b32.xlu0 %v6535_v2, %s5912_s29  ;;  %2301 = vrot.lane.b32.xlu2 %v6609_v23, %s5910_s7 }
 0x1a5   : > { %3735 = vrot.lane.b32.xlu1 %v6509_v36, %s5912_s29  ;;  %v2197_v8 = vunpack.c.l.b16 %v1429_v41 }
 0x1a6   : > { %v6621_v60 = vpop.f32.mrf.mxu3  ;;  %v6623_v46 = vpop.permute.xlu2 %3018 }
 0x1a7   : > { %9197 = vst [vmem:[#allocation47_spill] sm:$0xff] %v6623_v46  ;;  %v6625_v34 = vpop.f32.mrf.mxu1 }
 0x1ac   : > { %2299 = vrot.lane.b32.xlu0 %v6575_v55, %s5910_s7  ;;  %3751 = vrot.lane.b32.xlu2 %v6609_v23, %s5912_s29 }
 0x1ad   : > { %2856 = vrot.lane.b32.xlu1 %v6627_v11, %s5910_s7 }
 0x1ae   : > { %v6639_v63 = vpop.f32.mrf.mxu3  ;;  %v6641_v25 = vpop.permute.xlu2 %2291 }
 0x1af   : > { %9199 = vst [vmem:[#allocation49_spill] sm:$0xff] %v6641_v25  ;;  %v1040_v9 = vpop.f32.mrf.mxu1 }
 0x1b0   : > { %v1041_v59 = vadd.f32 %v6490_v62, %v1040_v9 }
 0x1b2   : > { %v1396_v9 = vpack.c.bf16 %v1041_v59, %v1041_v59 }
 0x1b4   : > { %2287 = vrot.lane.b32.xlu0 %v6515_v52, %s5910_s7  ;;  %2593 = vrot.lane.b32.xlu2 %v6643_v14, %s5910_s7 }
 0x1b5   : > { %3749 = vrot.lane.b32.xlu1 %v6575_v55, %s5912_s29 }
 0x1b6   : > { %v6651_v16 = vpop.f32.mrf.mxu3  ;;  %v6653_v27 = vpop.permute.xlu0 %2281 }
 0x1b7   : > { %9200 = vst [vmem:[#allocation50_spill] sm:$0xff] %v6653_v27  ;;  %v6655_v56 = vpop.permute.xlu1 %3014  ;;  %v6657_v15 = vpop.permute.xlu2 %2854 }
 0x1b8   : > { %9201 = vst [vmem:[#allocation51_spill] sm:$0xff] %v6655_v56  ;;  %v1042_v31 = vpop.f32.mrf.mxu1 }
 0x1b9   : > { %9202 = vst [vmem:[#allocation52_spill] sm:$0xff] %v6657_v15  ;;  %v1043_v29 = vadd.f32 %v6490_v62, %v1042_v31  ;;  %v1031_v31 = vadd.f32 %v6490_v62, %v6573_v54  ;;  %v1033_v54 = vadd.f32 %v6490_v62, %v6587_v7 }
 0x1bb   : > { %v1397_v15 = vpack.c.bf16 %v1043_v29, %v1043_v29 }
 0x1bc   : > { %3012 = vrot.lane.b32.xlu0 %v6515_v52, %s5911_s12  ;;  %3318 = vrot.lane.b32.xlu2 %v6643_v14, %s5911_s12 }
 0x1bd   : > { %2591 = vrot.lane.b32.xlu1 %v6659_v28, %s5910_s7  ;;  %v1908_v58 = vunpack.c.l.b16 %v1397_v15  ;;  %v1393_v15 = vpack.c.bf16 %v1033_v54, %v1033_v54 }
 0x1be   : > { %v6675_v5 = vpop.f32.mrf.mxu3  ;;  %v6677_v53 = vpop.permute.xlu0 %2289 }
 0x1bf   : > { %9203 = vst [vmem:[#allocation53_spill] sm:$0xff] %v6677_v53  ;;  %v6679_v39 = vpop.permute.xlu1 %3731  ;;  %v6681_v61 = vpop.permute.xlu2 %3020  ;;  %v1413_v29 = vpack.c.bf16 %v6675_v5, %v6675_v5 }
 0x1c0   : > { %9204 = vst [vmem:[#allocation54_spill] sm:$0xff] %v6679_v39  ;;  %v1045_v17 = vpop.f32.mrf.mxu1  ;;  %v1153_v39 = vadd.f32 %v6373_v45, %v6611_v24  ;;  %v1428_v24 = vpack.c.bf16 %v1158_v43, %v1158_v43  ;;  %v1038_v43 = vadd.f32 %v6490_v62, %v6625_v34  ;;  %v1412_v34 = vpack.c.bf16 %v6651_v16, %v6651_v16 }
 0x1c1   : > { %9205 = vst [vmem:[#allocation55_spill] sm:$0xff] %v6681_v61  ;;  %v1046_v46 = vadd.f32 %v6490_v62, %v1045_v17 }
 0x1c2   : > { %v1426_v27 = vpack.c.bf16 %v1153_v39, %v1153_v39  ;;  %v2196_v39 = vunpack.c.l.b16 %v1428_v24  ;;  %v1395_v41 = vpack.c.bf16 %v1038_v43, %v1038_v43  ;;  %v1904_v43 = vunpack.c.l.b16 %v1393_v15 }
 0x1c3   : > { %v1398_v56 = vpack.c.bf16 %v1046_v46, %v1046_v46  ;;  %v1408_v15 = vpack.c.bf16 %v6585_v6, %v6585_v6 }
 0x1c4   : > { %4041 = vrot.lane.b32.xlu0 %v6659_v28, %s5912_s29  ;;  %2303 = vrot.lane.b32.xlu2 %v6683_v0, %s5910_s7  ;;  %v6734_v16 = vpack.c.b16 %v2197_v8, %v2196_v39 }
 0x1c5   : > { %3316 = vrot.lane.b32.xlu1 %v6659_v28, %s5911_s12 }
 0x1c6   : > { %v1275_v17 = vpop.f32.mrf.mxu3  ;;  %v6699_v61 = vpop.permute.xlu0 %2579  ;;  %9211 = vst [vmem:[#allocation61_spill] sm:$0xff] %v6734_v16 }
 0x1c7   : > { %9206 = vst [vmem:[#allocation56_spill] sm:$0xff] %v6699_v61  ;;  %v6701_v25 = vpop.permute.xlu1 %2852  ;;  %v6703_v35 = vpop.permute.xlu2 %3022  ;;  %v1909_v61 = vunpack.c.l.b16 %v1398_v56  ;;  %v1414_v46 = vpack.c.bf16 %v1275_v17, %v1275_v17  ;;  %v2194_v56 = vunpack.c.l.b16 %v1426_v27  ;;  %v1392_v27 = vpack.c.bf16 %v1031_v31, %v1031_v31 }
 0x1c8   : > { %9207 = vst [vmem:[#allocation57_spill] sm:$0xff] %v6703_v35  ;;  %v1047_v53 = vpop.f32.mrf.mxu1  ;;  %v1036_v35 = vadd.f32 %v6490_v62, %v6607_v22  ;;  %v1907_v22 = vunpack.c.l.b16 %v1396_v9  ;;  %v1906_v31 = vunpack.c.l.b16 %v1395_v41 }
 0x1c9   : > { %v1048_v32 = vadd.f32 %v6490_v62, %v1047_v53  ;;  %v2195_v53 = vunpack.c.l.b16 %v1427_v21  ;;  %v1569_v17 = vunpack.c.l.b16 %v1414_v46 }
 0x1ca   : > { %v1394_v24 = vpack.c.bf16 %v1036_v35, %v1036_v35  ;;  %v6740_v46 = vpack.c.b16 %v1908_v58, %v1907_v22  ;;  %v1903_v35 = vunpack.c.l.b16 %v1392_v27 }
 0x1cb   : > { %v1399_v51 = vpack.c.bf16 %v1048_v32, %v1048_v32  ;;  %v6736_v32 = vpack.c.b16 %v2195_v53, %v2194_v56 }
 0x1cc   : > { %2860 = vrot.lane.b32.xlu0 %v6706_v19, %s5910_s7  ;;  %3028 = vrot.lane.b32.xlu2 %v6683_v0, %s5911_s12  ;;  %v1962_v22 = vsel %vm9058_vm0, %v6740_v46, 0  ;;  %v1915_v58 = vpack.c.b16 %v1904_v43, %v1903_v35 }
 0x1cd   : > { %v1910_v37 = vunpack.c.l.b16 %v1399_v51  ;;  %3026 = vrot.lane.b32.xlu1 %v6609_v23, %s5911_s12  ;;  %9212 = vst [vmem:[#allocation62_spill] sm:$0xff] %v6736_v32 }
 0x1ce   : > { %v1277_v57 = vpop.f32.mrf.mxu3  ;;  %v6724_v59 = vpop.permute.xlu0 %3006 }
 0x1cf   : > { %9209 = vst [vmem:[#allocation59_spill] sm:$0xff] %v6724_v59  ;;  %v6728_v62 = vpack.c.b16 %v1910_v37, %v1909_v61  ;;  %v1415_v7 = vpack.c.bf16 %v1277_v57, %v1277_v57  ;;  %v6730_v51 = vpop.permute.xlu1 %2293  ;;  %v6732_v21 = vpop.permute.xlu2 %3010  ;;  %v1567_v61 = vunpack.c.l.b16 %v1412_v34  ;;  %v1568_v37 = vunpack.c.l.b16 %v1413_v29 }
 0x1d0   : > { %9210 = vst [vmem:[#allocation60_spill] sm:$0xff] %v6732_v21  ;;  %v1905_v21 = vunpack.c.l.b16 %v1394_v24  ;;  %v1410_v29 = vpack.c.bf16 %v6621_v60, %v6621_v60 }
 0x1d1   : > { %v1570_v9 = vunpack.c.l.b16 %v1415_v7  ;;  %v1965_v5 = vsel %vm9058_vm0, %v6728_v62, 0  ;;  %v6754_v54 = vpack.c.b16 %v1568_v37, %v1567_v61  ;;  %v1563_v61 = vunpack.c.l.b16 %v1408_v15 }
 0x1d2   : > { %1967 = vmatpush.bf16.xpose.msra.mxu1 %v1965_v5  ;;  %v1916_v34 = vpack.c.b16 %v1906_v31, %v1905_v21  ;;  %v1565_v27 = vunpack.c.l.b16 %v1410_v29 }
 0x1d3   : > { %v6742_v57 = vpack.c.b16 %v1570_v9, %v1569_v17  ;;  %v1411_v17 = vpack.c.bf16 %v6639_v63, %v6639_v63  ;;  %v1623_v7 = vsel %vm9058_vm0, %v6754_v54, 0  ;;  %v1409_v9 = vpack.c.bf16 %v6599_v18, %v6599_v18  ;;  %v1162_v18 = vpop.f32.mrf.mxu2 }
 0x1d4   : > { %4043 = vrot.lane.b32.xlu0 %v6643_v14, %s5912_s29  ;;  %2864 = vrot.lane.b32.xlu2 %v6734_v16, %s5910_s7  ;;  %v1959_v41 = vsel %vm9058_vm0, %v1916_v34, 0 }
 0x1d5   : > { %2862 = vrot.lane.b32.xlu1 %v6736_v32, %s5910_s7  ;;  %v1626_v39 = vsel %vm9058_vm0, %v6742_v57, 0  ;;  %v1566_v24 = vunpack.c.l.b16 %v1411_v17  ;;  %v1564_v37 = vunpack.c.l.b16 %v1409_v9 }
 0x1d6   : > { %1628 = vmatpush.bf16.xpose.msrb.mxu0 %v1626_v39  ;;  %5136 = vmatpush.bf16.xpose.msrb.mxu2 %v1626_v39  ;;  %v6752_v8 = vpop.permute.xlu0 %2583 }
 0x1d7   : > { %v6756_v56 = vpop.permute.xlu1 %2573  ;;  %v6758_v53 = vpop.permute.xlu2 %2589  ;;  %v1576_v5 = vpack.c.b16 %v1566_v24, %v1565_v27  ;;  %v1575_v39 = vpack.c.b16 %v1564_v37, %v1563_v61 }
 0x1d9   : > { %v1620_v31 = vsel %vm9058_vm0, %v1576_v5, 0  ;;  %v1617_v29 = vsel %vm9058_vm0, %v1575_v39, 0 }
 0x1da   : > { %1968 = vmatpush.bf16.xpose.msra.mxu1 %v1962_v22  ;;  %v1956_v22 = vsel %vm9058_vm0, %v1915_v58, 0 }
 0x1db   : > { %v1164_v24 = vpop.f32.mrf.mxu2 }
 0x1dc   : > { %3753 = vrot.lane.b32.xlu0 %v6683_v0, %s5912_s29  ;;  %2597 = vrot.lane.b32.xlu2 %v1916_v34, %s5910_s7  ;;  %v1165_v15 = vadd.f32 %v6373_v45, %v1164_v24  ;;  %v1947_v24 = vsel %vm9058_vm0, %v6535_v2, 0 }
 0x1dd   : > { %2595 = vrot.lane.b32.xlu1 %v1915_v58, %s5910_s7 }
 0x1de   : > { %1629 = vmatpush.bf16.xpose.msrb.mxu0 %v1623_v7  ;;  %5137 = vmatpush.bf16.xpose.msrb.mxu2 %v1623_v7  ;;  %v6772_v21 = vpop.permute.xlu0 %2283 }
 0x1df   : > { %v6774_v60 = vpop.permute.xlu1 %3008  ;;  %v6776_v63 = vpop.permute.xlu2 %3314 }
 0x1e0   : > { %9213 = vst [vmem:[#allocation63_spill] sm:$0xff] %v6774_v60 }
 0x1e2   : > { %1969 = vmatpush.bf16.xpose.msra.mxu1 %v1959_v41  ;;  %v1614_v41 = vsel %vm9058_vm0, %v6683_v0, 0 }
 0x1e4   : > { %4045 = vrot.lane.b32.xlu0 %v1915_v58, %s5912_s29  ;;  %4047 = vrot.lane.b32.xlu2 %v1916_v34, %s5912_s29 }
 0x1e5   : > { %3320 = vrot.lane.b32.xlu1 %v1915_v58, %s5911_s12  ;;  %v1953_v58 = vsel %vm9058_vm0, %v6643_v14, 0 }
 0x1e6   : > { %1630 = vmatpush.bf16.xpose.msrb.mxu0 %v1620_v31  ;;  %5138 = vmatpush.bf16.xpose.msrb.mxu2 %v1620_v31  ;;  %v6787_v35 = vpop.permute.xlu0 %2581  ;;  %v1950_v31 = vsel %vm9058_vm0, %v6659_v28, 0 }
 0x1e7   : > { %v6789_v6 = vpop.permute.xlu1 %3016  ;;  %v6791_v43 = vpop.permute.xlu2 %2577 }
 0x1e8   : > { %9214 = vst [vmem:[#allocation64_spill] sm:$0xff] %v6789_v6 }
 0x1ea   : > { %1970 = vmatpush.bf16.xpose.msra.mxu1 %v1956_v22 }
 0x1ec   : > { %3755 = vrot.lane.b32.xlu0 %v1575_v39, %s5912_s29  ;;  %3322 = vrot.lane.b32.xlu2 %v1916_v34, %s5911_s12  ;;  %v1163_v34 = vadd.f32 %v6373_v45, %v1162_v18  ;;  %v1431_v18 = vpack.c.bf16 %v1165_v15, %v1165_v15 }
 0x1ed   : > { %2305 = vrot.lane.b32.xlu1 %v1575_v39, %s5910_s7 }
 0x1ee   : > { %1631 = vmatpush.bf16.xpose.msrb.mxu0 %v1617_v29  ;;  %5139 = vmatpush.bf16.xpose.msrb.mxu2 %v1617_v29  ;;  %v6798_v17 = vpop.permute.xlu0 %2295  ;;  %v1430_v37 = vpack.c.bf16 %v1163_v34, %v1163_v34  ;;  %v2199_v0 = vunpack.c.l.b16 %v1431_v18 }
 0x1ef   : > { %v6800_v7 = vpop.permute.xlu1 %3733  ;;  %v6802_v27 = vpop.permute.xlu2 %3024 }
 0x1f0   : > { %9215 = vst [vmem:[#allocation65_spill] sm:$0xff] %v6800_v7  ;;  %v2198_v45 = vunpack.c.l.b16 %v1430_v37 }
 0x1f2   : > { %1971 = vmatpush.bf16.xpose.msra.mxu1 %v1953_v58  ;;  %v6834_v58 = vpack.c.b16 %v2199_v0, %v2198_v45 }
 0x1f4   : > { %3032 = vrot.lane.b32.xlu0 %v1576_v5, %s5911_s12  ;;  %3324 = vrot.lane.b32.xlu2 %v6740_v46, %s5911_s12  ;;  %9217 = vst [vmem:[#allocation67_spill] sm:$0xff] %v6834_v58 }
 0x1f5   : > { %3030 = vrot.lane.b32.xlu1 %v1575_v39, %s5911_s12  ;;  %v1611_v39 = vsel %vm9058_vm0, %v6609_v23, 0  ;;  %v1608_v23 = vsel %vm9058_vm0, %v6575_v55, 0  ;;  %v1605_v55 = vsel %vm9058_vm0, %v6492_v4, 0 }
 0x1f6   : > { %1632 = vmatpush.bf16.xpose.msrb.mxu0 %v1614_v41  ;;  %5140 = vmatpush.bf16.xpose.msrb.mxu2 %v1614_v41  ;;  %v6814_v9 = vpop.permute.xlu0 %4037  ;;  %v1944_v41 = vsel %vm9058_vm0, %v6543_v20, 0 }
 0x1f7   : > { %9216 = vst [vmem:[#allocation66_spill] sm:$0xff] %v6814_v9  ;;  %v6816_v14 = vpop.permute.xlu1 %2585  ;;  %v6818_v61 = vpop.permute.xlu2 %2858 }
 0x1fa   : > { %1972 = vmatpush.bf16.xpose.msra.mxu1 %v1950_v31 }
 0x1fc   : > { %3757 = vrot.lane.b32.xlu0 %v1576_v5, %s5912_s29  ;;  %2601 = vrot.lane.b32.xlu2 %v6728_v62, %s5910_s7 }
 0x1fd   : > { %2307 = vrot.lane.b32.xlu1 %v1576_v5, %s5910_s7 }
 0x1fe   : > { %1633 = vmatpush.bf16.xpose.msrb.mxu0 %v1611_v39  ;;  %5141 = vmatpush.bf16.xpose.msrb.mxu2 %v1611_v39  ;;  %v6828_v22 = vpop.permute.xlu0 %2285 }
 0x1ff   : > { %v6830_v29 = vpop.permute.xlu1 %2587  ;;  %v6832_v28 = vpop.permute.xlu2 %2301 }
 0x202   : > { %1973 = vmatpush.bf16.xpose.msra.mxu1 %v1947_v24 }
 0x204   : > { %2309 = vrot.lane.b32.xlu0 %v6754_v54, %s5910_s7  ;;  %4051 = vrot.lane.b32.xlu2 %v6728_v62, %s5912_s29 }
 0x205   : > { %2866 = vrot.lane.b32.xlu1 %v6834_v58, %s5910_s7 }
 0x206   : > { %1634 = vmatpush.bf16.xpose.msrb.mxu0 %v1608_v23  ;;  %5142 = vmatpush.bf16.xpose.msrb.mxu2 %v1608_v23  ;;  %v6846_v5 = vpop.permute.xlu0 %2575 }
 0x207   : > { %v6848_v34 = vpop.permute.xlu1 %3312  ;;  %v6850_v2 = vpop.permute.xlu2 %3751 }
 0x20a   : > { %1974 = vmatpush.bf16.xpose.msra.mxu1 %v1944_v41 }
 0x20c   : > { %3034 = vrot.lane.b32.xlu0 %v6754_v54, %s5911_s12  ;;  %3326 = vrot.lane.b32.xlu2 %v6728_v62, %s5911_s12 }
 0x20d   : > { %2599 = vrot.lane.b32.xlu1 %v6740_v46, %s5910_s7 }
 0x20e   : > { %1635 = vmatpush.bf16.xpose.msrb.mxu0 %v1605_v55  ;;  %5143 = vmatpush.bf16.xpose.msrb.mxu2 %v1605_v55  ;;  %v6862_v15 = vpop.permute.xlu0 %3747 }
 0x20f   : > { %v6865_v20 = vpop.permute.xlu1 %2297  ;;  %v6867_v37 = vpop.permute.xlu2 %2593 }
 0x211   : > { %4982 = vmatmul.msk.bf16.vlgmr.msra.gmra.mxu1 %vm9058_vm0, %v6377_v48 }
 0x214   : > { %2311 = vrot.lane.b32.xlu0 %v6742_v57, %s5910_s7  ;;  %3761 = vrot.lane.b32.xlu2 %v6742_v57, %s5912_s29 }
 0x215   : > { %4980 = vmatmul.msk.bf16.vlgmr.msrb.gmra.mxu2 %vm9058_vm0, %v6396_v10  ;;  %4049 = vrot.lane.b32.xlu1 %v6740_v46, %s5912_s29 }
 0x216   : > { %2216 = vmatpush.bf16.msra.mxu2 %v6834_v58  ;;  %4974 = vmatmul.msk.bf16.vlgmr.msrb.gmra.mxu0 %vm9058_vm0, %v6375_v47  ;;  %v6882_v4 = vpop.permute.xlu0 %4039 }
 0x217   : > { %9218 = vst [vmem:[#allocation68_spill] sm:$0xff] %v6882_v4  ;;  %v6885_v62 = vpop.permute.xlu1 %3735  ;;  %v6887_v31 = vpop.permute.xlu2 %3318 }
 0x218   : > { %9219 = vst [vmem:[#allocation69_spill] sm:$0xff] %v6885_v62 }
 0x21a   : > { %2217 = vmatpush.bf16.msra.mxu2 %v6734_v16 }
 0x21d   : > { %3759 = vrot.lane.b32.xlu1 %v6754_v54, %s5912_s29 }
 0x21e   : > { %2218 = vmatpush.bf16.msra.mxu2 %v6736_v32  ;;  %v6892_v18 = vpop.permute.xlu0 %2299 }
 0x21f   : > { %v6895_v46 = vpop.permute.xlu1 %2856  ;;  %v6897_v47 = vpop.permute.xlu2 %2303 }
 0x221   : > { %4983 = vmatmul.msk.bf16.gmra.mxu1 %vm9058_vm0, %v6471_v40 }
 0x222   : > { %2219 = vmatpush.bf16.msra.mxu2 %v6706_v19 }
 0x225   : > { %4981 = vmatmul.msk.bf16.gmra.mxu2 %vm9058_vm0, %v6464_v30  ;;  %3036 = vrot.lane.b32.xlu1 %v6742_v57, %s5911_s12 }
 0x226   : > { %2220 = vmatpush.bf16.msra.mxu2 %v6591_v26  ;;  %4975 = vmatmul.msk.bf16.gmra.mxu0 %vm9058_vm0, %v6495_v12  ;;  %v6908_v54 = vpop.permute.xlu0 %2287 }
 0x227   : > { %v6911_v45 = vpop.permute.xlu1 %3749  ;;  %v6913_v0 = vpop.permute.xlu2 %3028 }
 0x22a   : > { %2221 = vmatpush.bf16.msra.mxu2 %v6627_v11 }
 0x22e   : > { %2222 = vmatpush.bf16.msra.mxu2 %v6444_v1  ;;  %v6916_v39 = vpop.permute.xlu0 %3012 }
 0x22f   : > { %9220 = vst [vmem:[#allocation70_spill] sm:$0xff] %v6916_v39  ;;  %v6918_v24 = vpop.permute.xlu1 %2591  ;;  %v2865_v23 = vpop.permute.xlu2 %2864 }
 0x231   : > { %4984 = vmatmul.msk.bf16.gmra.mxu1 %vm9058_vm0, %v6577_v13 }
 0x232   : > { %2223 = vmatpush.bf16.msra.mxu2 %v6420_v33 }
 0x236   : > { %4976 = vmatmul.msk.bf16.gmra.mxu0 %vm9058_vm0, %v6509_v36  ;;  %v6924_v12 = vpop.permute.xlu0 %4041 }
 0x237   : > { %9221 = vst [vmem:[#allocation71_spill] sm:$0xff] %v6924_v12  ;;  %v6926_v57 = vpop.permute.xlu1 %3316  ;;  %v2598_v41 = vpop.permute.xlu2 %2597 }
 0x23e   : > { %v2861_v55 = vpop.permute.xlu0 %2860 }
 0x23f   : > { %v6928_v62 = vpop.permute.xlu1 %3026  ;;  %v6930_v7 = vpop.permute.xlu2 %4047 }
 0x240   : > { %9222 = vst [vmem:[#allocation72_spill] sm:$0xff] %v6930_v7 }
 0x241   : > { %4985 = vmatmul.msk.bf16.gmra.mxu1 %vm9058_vm0, %v6517_v3 }
 0x246   : > { %4977 = vmatmul.msk.bf16.gmra.mxu0 %vm9058_vm0, %v6515_v52  ;;  %v6936_v16 = vpop.permute.xlu0 %4043 }
 0x247   : > { %9223 = vst [vmem:[#allocation73_spill] sm:$0xff] %v6936_v16  ;;  %v2863_v1 = vpop.permute.xlu1 %2862  ;;  %v6938_v36 = vpop.permute.xlu2 %3322 }
 0x24e   : > { %v6940_v33 = vpop.permute.xlu0 %3753 }
 0x24f   : > { %v2596_v11 = vpop.permute.xlu1 %2595  ;;  %v6942_v26 = vpop.permute.xlu2 %3324 }
 0x251   : > { %4986 = vmatmul.msk.bf16.gmra.mxu1 %vm9058_vm0, %v6430_v42 }
 0x256   : > { %4978 = vmatmul.msk.bf16.gmra.mxu0 %vm9058_vm0, %v6381_v50  ;;  %v6948_v6 = vpop.permute.xlu0 %4045  ;;  %v9226_v50 = vld [vmem:[#allocation43_spill] sm:$0xff] }
 0x257   : > { %9224 = vst [vmem:[#allocation74_spill] sm:$0xff] %v6948_v6  ;;  %v6950_v32 = vpop.permute.xlu1 %3320  ;;  %v2602_v19 = vpop.permute.xlu2 %2601 }
 0x258   : > { %v2649_v58 = vsel %vm9058_vm0, %v2602_v19, 0 }
 0x259   : > { %2651 = vmatpush.bf16.xpose.msra.mxu0 %v2649_v58 }
 0x25e   : > { %v6953_v39 = vpop.permute.xlu0 %3755 }
 0x25f   : > { %v2306_v30 = vpop.permute.xlu1 %2305  ;;  %v6967_v3 = vpop.permute.xlu2 %4051 }
 0x260   : > { %9225 = vst [vmem:[#allocation75_spill] sm:$0xff] %v6967_v3 }
 0x261   : > { %4987 = vmatmul.msk.bf16.gmra.mxu1 %vm9058_vm0, %v6513_v49 }
 0x266   : > { %4979 = vmatmul.msk.bf16.gmra.mxu0 %vm9058_vm0, %v6434_v44  ;;  %v6959_v10 = vpop.permute.xlu0 %3032 }
 0x267   : > { %v6961_v60 = vpop.permute.xlu1 %3030  ;;  %v6972_v4 = vpop.permute.xlu2 %3326 }
 0x26e   : > { %v6963_v59 = vpop.permute.xlu0 %3757 }
 0x26f   : > { %v2308_v42 = vpop.permute.xlu1 %2307 }
 0x271   : > { %4988 = vmatmul.msk.bf16.gmra.mxu1 %vm9058_vm0, %v6473_v38 }
 0x276   : > { %v2310_v19 = vpop.permute.xlu0 %2309 }
 0x277   : > { %v2867_v58 = vpop.permute.xlu1 %2866 }
 0x278   : > { %2876 = vmatpush.bf16.msrb.mxu1 %v2867_v58 }
 0x27c   : > { %2877 = vmatpush.bf16.msrb.mxu1 %v2865_v23  ;;  %v2643_v23 = vsel %vm9058_vm0, %v2598_v41, 0  ;;  %v2353_v41 = vsel %vm9058_vm0, %v2308_v42, 0  ;;  %v2350_v42 = vsel %vm9058_vm0, %v2306_v30, 0  ;;  %v3803_v30 = vsel %vm9058_vm0, %v6963_v59, 0 }
 0x27e   : > { %v3035_v49 = vpop.permute.xlu0 %3034 }
 0x27f   : > { %v2600_v13 = vpop.permute.xlu1 %2599 }
 0x280   : > { %2878 = vmatpush.bf16.msrb.mxu1 %v2863_v1  ;;  %v2646_v44 = vsel %vm9058_vm0, %v2600_v13, 0  ;;  %v2356_v13 = vsel %vm9058_vm0, %v2310_v19, 0 }
 0x281   : > { %4989 = vmatmul.msk.bf16.gmra.mxu1 %vm9058_vm0, %v9226_v50  ;;  %2652 = vmatpush.bf16.xpose.msra.mxu0 %v2646_v44  ;;  %v9228_v44 = vld [vmem:[#allocation52_spill] sm:$0xff]  ;;  %v3762_v50 = vpop.permute.xlu2 %3761 }
 0x284   : > { %2879 = vmatpush.bf16.msrb.mxu1 %v2861_v55  ;;  %v2640_v55 = vsel %vm9058_vm0, %v2596_v11, 0 }
 0x286   : > { %v2312_v9 = vpop.permute.xlu0 %2311 }
 0x287   : > { %v6974_v38 = vpop.permute.xlu1 %4049  ;;  %v2359_v58 = vsel %vm9058_vm0, %v2312_v9, 0  ;;  %v3809_v9 = vsel %vm9058_vm0, %v3762_v50, 0  ;;  %v2637_v50 = vsel %vm9058_vm0, %v6867_v37, 0  ;;  %v2634_v37 = vsel %vm9058_vm0, %v6918_v24, 0 }
 0x288   : > { %9227 = vst [vmem:[#allocation76_spill] sm:$0xff] %v6974_v38  ;;  %2880 = vmatpush.bf16.msrb.mxu1 %v6818_v61  ;;  %2361 = vmatpush.bf16.xpose.msra.mxu3 %v2359_v58 }
 0x289   : > { %2653 = vmatpush.bf16.xpose.msra.mxu0 %v2643_v23 }
 0x28c   : > { %2881 = vmatpush.bf16.msrb.mxu1 %v6895_v46 }
 0x28e   : > { %v6986_v61 = vpop.f32.mrf.mxu1 }
 0x28f   : > { %v3760_v1 = vpop.permute.xlu1 %3759 }
 0x290   : > { %2882 = vmatpush.bf16.msrb.mxu1 %v9228_v44  ;;  %2362 = vmatpush.bf16.xpose.msra.mxu3 %v2356_v13  ;;  %v3081_v13 = vsel %vm9058_vm0, %v3035_v49, 0  ;;  %v2347_v49 = vsel %vm9058_vm0, %v6897_v47, 0  ;;  %v3800_v47 = vsel %vm9058_vm0, %v6953_v39, 0 }
 0x291   : > { %2654 = vmatpush.bf16.xpose.msra.mxu0 %v2640_v55  ;;  %v3078_v55 = vsel %vm9058_vm0, %v6959_v10, 0  ;;  %v2344_v10 = vsel %vm9058_vm0, %v6832_v28, 0  ;;  %v2341_v28 = vsel %vm9058_vm0, %v6892_v18, 0  ;;  %v2338_v18 = vsel %vm9058_vm0, %v6865_v20, 0  ;;  %v9230_v20 = vld [vmem:[#allocation50_spill] sm:$0xff] }
 0x293   : > { %v1637_v12 = vpop.f32.mrf.mxu0 }
 0x294   : > { %1679 = vrot.lane.b32.xlu2 %v1637_v12, %s5913_s1  ;;  %2883 = vmatpush.bf16.msrb.mxu1 %v6701_v25  ;;  %v3806_v25 = vsel %vm9058_vm0, %v3760_v1, 0 }
 0x296   : > { %v6994_v12 = vpop.f32.mrf.mxu1 }
 0x297   : > { %v3037_v46 = vpop.permute.xlu1 %3036 }
 0x298   : > { %3811 = vmatpush.bf16.xpose.msra.mxu1 %v3809_v9  ;;  %v3084_v19 = vsel %vm9058_vm0, %v3037_v46, 0  ;;  %v1667_v58 = vpop.f32.mrf.mxu2  ;;  %2363 = vmatpush.bf16.xpose.msra.mxu3 %v2353_v41  ;;  %v2631_v9 = vsel %vm9058_vm0, %v6758_v53, 0  ;;  %v3075_v41 = vsel %vm9058_vm0, %v6961_v60, 0  ;;  %v2628_v53 = vsel %vm9058_vm0, %v6830_v29, 0 }
 0x299   : > { %3086 = vmatpush.bf16.xpose.msrb.mxu2 %v3084_v19  ;;  %1727 = vrot.lane.b32.xlu0 %v1667_v58, %s5914_s25  ;;  %v3797_v58 = vsel %vm9058_vm0, %v6940_v33, 0  ;;  %v3072_v60 = vsel %vm9058_vm0, %v6913_v0, 0  ;;  %v3794_v33 = vsel %vm9058_vm0, %v6850_v2, 0  ;;  %v3374_v0 = vsel %vm9058_vm0, %v6972_v4, 0 }
 0x29a   : > { %2655 = vmatpush.bf16.xpose.msra.mxu0 %v2637_v50  ;;  %v9229_v50 = vld [vmem:[#allocation46_spill] sm:$0xff]  ;;  %v3791_v2 = vsel %vm9058_vm0, %v6911_v45, 0  ;;  %v3066_v4 = vsel %vm9058_vm0, %v6802_v27, 0  ;;  %v3788_v45 = vsel %vm9058_vm0, %v6862_v15, 0  ;;  %v3365_v15 = vsel %vm9058_vm0, %v6950_v32, 0 }
 0x29b   : > { %v1639_v11 = vpop.f32.mrf.mxu0  ;;  %v3359_v32 = vsel %vm9058_vm0, %v6926_v57, 0  ;;  %v3353_v57 = vsel %vm9058_vm0, %v6848_v34, 0 }
 0x29e   : > { %v7009_v24 = vpop.f32.mrf.mxu1 }
 0x2a0   : > { %3812 = vmatpush.bf16.xpose.msra.mxu1 %v3806_v25  ;;  %v1669_v23 = vpop.f32.mrf.mxu2  ;;  %2364 = vmatpush.bf16.xpose.msra.mxu3 %v2350_v42  ;;  %v3069_v25 = vsel %vm9058_vm0, %v6928_v62, 0  ;;  %v3371_v62 = vsel %vm9058_vm0, %v6942_v26, 0 }
 0x2a1   : > { %3087 = vmatpush.bf16.xpose.msrb.mxu2 %v3081_v13  ;;  %1683 = vrot.lane.b32.xlu0 %v1639_v11, %s5915_s24 }
 0x2a2   : > { %1731 = vrot.lane.b32.xlu2 %v1669_v23, %s5916_s14  ;;  %2656 = vmatpush.bf16.xpose.msra.mxu0 %v2634_v37  ;;  %v9231_v37 = vld [vmem:[#allocation57_spill] sm:$0xff] }
 0x2a3   : > { %v1642_v1 = vpop.f32.mrf.mxu0 }
 0x2a4   : > { %1687 = vrot.lane.b32.xlu1 %v1642_v1, %s5917_s17  ;;  %v3063_v1 = vsel %vm9058_vm0, %v9231_v37, 0 }
 0x2a6   : > { %v7024_v19 = vpop.f32.mrf.mxu1 }
 0x2a8   : > { %3813 = vmatpush.bf16.xpose.msra.mxu1 %v3803_v30  ;;  %v1672_v44 = vpop.f32.mrf.mxu2  ;;  %2365 = vmatpush.bf16.xpose.msra.mxu3 %v2347_v49 }
 0x2a9   : > { %3088 = vmatpush.bf16.xpose.msrb.mxu2 %v3078_v55  ;;  %v3356_v55 = vsel %vm9058_vm0, %v6776_v63, 0 }
 0x2aa   : > { %1735 = vrot.lane.b32.xlu2 %v1672_v44, %s5918_s18  ;;  %2657 = vmatpush.bf16.xpose.msra.mxu0 %v2631_v9  ;;  %v1432_v9 = vlaneseq }
 0x2ab   : > { %v1644_v59 = vpop.f32.mrf.mxu0 }
 0x2ac   : > { %1691 = vrot.lane.b32.xlu1 %v1644_v59, %s5919_s15  ;;  %v7118_v34 = vand.u32 127, %v1432_v9 }
 0x2ae   : > { %v7038_v11 = vpop.f32.mrf.mxu1 }
 0x2b0   : > { %3814 = vmatpush.bf16.xpose.msra.mxu1 %v3800_v47  ;;  %v1674_v46 = vpop.f32.mrf.mxu2  ;;  %2366 = vmatpush.bf16.xpose.msra.mxu3 %v2344_v10  ;;  %v7104_v47 = vshrl.u32 %v1432_v9, 7 }
 0x2b1   : > { %3089 = vmatpush.bf16.xpose.msrb.mxu2 %v3075_v41 }
 0x2b2   : > { %1739 = vrot.lane.b32.xlu2 %v1674_v46, %s5920_s30  ;;  %2658 = vmatpush.bf16.xpose.msra.mxu0 %v2628_v53  ;;  %9233 = vst [vmem:[#allocation52_spill] sm:$0xff] %v7104_v47  ;;  %v7109_v63 = vadd.s32 96, %v7104_v47  ;;  %v7418_v7 = vadd.s32 80, %v7104_v47 }
 0x2b3   : > { %v1647_v39 = vpop.f32.mrf.mxu0 }
 0x2b4   : > { %9234 = vst [vmem:[#allocation46_spill] sm:$0xff] %v7109_v63  ;;  %v7114_v41 = vadd.s32 1, %v7109_v63  ;;  %vm9061_vm2 = vcmp.le.s32.totalorder %v7118_v34, %v7109_v63  ;;  %v7434_v3 = vadd.s32 1, %v7418_v7 }
 0x2b6   : > { %v7049_v23 = vpop.f32.mrf.mxu1  ;;  %9236 = vst [vmem:[#allocation50_spill] sm:$0xff] %v7114_v41  ;;  %vm9062_vm1 = vcmp.eq.s32.totalorder %v7118_v34, %v7114_v41 }
 0x2b7   : > { %9256 = vst [vmem:[#allocation91_spill] sm:$0xff] %v7434_v3 }
 0x2b8   : > { %3815 = vmatpush.bf16.xpose.msra.mxu1 %v3797_v58  ;;  %2367 = vmatpush.bf16.xpose.msra.mxu3 %v2341_v28 }
 0x2b9   : > { %4998 = vmatmul.msk.bf16.vlgmr.msra.gmra.mxu0 %vm9058_vm0, %v9229_v50  ;;  %3090 = vmatpush.bf16.xpose.msrb.mxu2 %v3072_v60  ;;  %v7134_v50 = vadd.s32 8, %v7104_v47 }
 0x2ba   : > { %1695 = vrot.lane.b32.xlu2 %v1647_v39, %s5921_s28 }
 0x2bb   : > { %v1649_v29 = vpop.f32.mrf.mxu0  ;;  %9237 = vst [vmem:[#allocation57_spill] sm:$0xff] %v7134_v50  ;;  %vm9092_vm5 = vcmp.le.s32.totalorder %v7118_v34, %v7134_v50 }
 0x2bc   : > { %1699 = vrot.lane.b32.xlu1 %v1649_v29, %s5922_s13 }
 0x2be   : > { %v7064_v27 = vpop.f32.mrf.mxu1 }
 0x2c0   : > { %3816 = vmatpush.bf16.xpose.msra.mxu1 %v3794_v33  ;;  %2368 = vmatpush.bf16.xpose.msra.mxu3 %v2338_v18 }
 0x2c1   : > { %3091 = vmatpush.bf16.xpose.msrb.mxu2 %v3069_v25 }
 0x2c3   : > { %v1652_v42 = vpop.f32.mrf.mxu0 }
 0x2c4   : > { %1703 = vrot.lane.b32.xlu2 %v1652_v42, %s5923_s11  ;;  %v7147_v42 = vadd.s32 1, %v7134_v50 }
 0x2c6   : > { %v7075_v30 = vpop.f32.mrf.mxu1  ;;  %vm9095_vm4 = vcmp.eq.s32.totalorder %v7118_v34, %v7147_v42 }
 0x2c7   : > { %4990 = vmatmul.msk.bf16.vlgmr.msra.gmra.mxu3 %vm9058_vm0, %v9230_v20 }
 0x2c8   : > { %3376 = vmatpush.bf16.xpose.msrb.mxu3 %v3374_v0  ;;  %3817 = vmatpush.bf16.xpose.msra.mxu1 %v3791_v2  ;;  %v7143_v0 = vadd.s32 104, %v7104_v47 }
 0x2c9   : > { %4999 = vmatmul.msk.bf16.gmra.mxu0 %vm9058_vm0, %v6756_v56  ;;  %3092 = vmatpush.bf16.xpose.msrb.mxu2 %v3066_v4  ;;  %v3368_v56 = vsel %vm9058_vm0, %v6938_v36, 0  ;;  %v3362_v36 = vsel %vm9058_vm0, %v6887_v31, 0 }
 0x2ca   : > { %vm9059_vm7 = vcmp.le.s32.totalorder %v7118_v34, %v7143_v0 }
 0x2cb   : > { %v1654_v13 = vpop.f32.mrf.mxu0 }
 0x2cc   : > { %1707 = vrot.lane.b32.xlu0 %v1654_v13, %s5924_s5 }
 0x2d0   : > { %3377 = vmatpush.bf16.xpose.msrb.mxu3 %v3371_v62  ;;  %3818 = vmatpush.bf16.xpose.msra.mxu1 %v3788_v45  ;;  %v7151_v62 = vadd.s32 1, %v7143_v0 }
 0x2d1   : > { %3093 = vmatpush.bf16.xpose.msrb.mxu2 %v3063_v1 }
 0x2d2   : > { %9240 = vst [vmem:[#allocation77_spill] sm:$0xff] %v7151_v62  ;;  %vm9060_vm6 = vcmp.eq.s32.totalorder %v7118_v34, %v7151_v62 }
 0x2d3   : > { %v1657_v26 = vpop.f32.mrf.mxu0 }
 0x2d4   : > { %1711 = vrot.lane.b32.xlu0 %v1657_v26, %s5925_s26  ;;  %v7161_v26 = vadd.s32 16, %v7104_v47 }
 0x2d6   : > { %vm1453_vm9 = vcmp.le.s32.totalorder %v7118_v34, %v7161_v26 }
 0x2d7   : > { %4991 = vmatmul.msk.bf16.gmra.mxu3 %vm9058_vm0, %v6772_v21  ;;  %v7081_v21 = vpop.f32.mrf.mxu1 }
 0x2d8   : > { %3378 = vmatpush.bf16.xpose.msrb.mxu3 %v3368_v56  ;;  %v9241_v56 = vld [vmem:[#allocation49_spill] sm:$0xff] }
 0x2d9   : > { %5000 = vmatmul.msk.bf16.gmra.mxu0 %vm9058_vm0, %v6846_v5 }
 0x2db   : > { %v1659_v49 = vpop.f32.mrf.mxu0 }
 0x2dc   : > { %1715 = vrot.lane.b32.xlu1 %v1659_v49, %s5926_s16 }
 0x2df   : > { %v7090_v31 = vpop.f32.mrf.mxu1 }
 0x2e0   : > { %3379 = vmatpush.bf16.xpose.msrb.mxu3 %v3365_v15 }
 0x2e3   : > { %v1662_v44 = vpop.f32.mrf.mxu0 }
 0x2e4   : > { %1719 = vrot.lane.b32.xlu2 %v1662_v44, %s5927_s4  ;;  %v7175_v44 = vadd.s32 120, %v7104_v47 }
 0x2e6   : > { %9243 = vst [vmem:[#allocation78_spill] sm:$0xff] %v7175_v44  ;;  %vm9056_vm13 = vcmp.le.s32.totalorder %v7118_v34, %v7175_v44 }
 0x2e7   : > { %4992 = vmatmul.msk.bf16.gmra.mxu3 %vm9058_vm0, %v6828_v22  ;;  %v7096_v22 = vpop.f32.mrf.mxu1 }
 0x2e8   : > { %3380 = vmatpush.bf16.xpose.msrb.mxu3 %v3362_v36  ;;  %v7172_v36 = vadd.s32 112, %v7104_v47 }
 0x2e9   : > { %5001 = vmatmul.msk.bf16.gmra.mxu0 %vm9058_vm0, %v6791_v43  ;;  %v9232_v43 = vld [vmem:[#allocation56_spill] sm:$0xff] }
 0x2ea   : > { %9238 = vst [vmem:[#allocation56_spill] sm:$0xff] %v7143_v0  ;;  %vm9063_vm12 = vcmp.le.s32.totalorder %v7118_v34, %v7172_v36 }
 0x2eb   : > { %v1664_v5 = vpop.f32.mrf.mxu0  ;;  %9242 = vst [vmem:[#allocation49_spill] sm:$0xff] %v7172_v36 }
 0x2ec   : > { %1723 = vrot.lane.b32.xlu1 %v1664_v5, %s5928_s10  ;;  %v7181_v5 = vadd.s32 1, %v7161_v26 }
 0x2ee   : > { %v7102_v59 = vpop.permute.xlu2 %1679  ;;  %9244 = vst [vmem:[#allocation79_spill] sm:$0xff] %v7181_v5  ;;  %vm1485_vm8 = vcmp.eq.s32.totalorder %v7118_v34, %v7181_v5 }
 0x2ef   : > { %v7106_v10 = vpop.f32.mrf.mxu1  ;;  %v1758_v2 = vrot.slane %v7102_v59, 1 }
 0x2f0   : > { %3381 = vmatpush.bf16.xpose.msrb.mxu3 %v3359_v32 }
 0x2f7   : > { %4993 = vmatmul.msk.bf16.gmra.mxu3 %vm9058_vm0, %v6908_v54  ;;  %v9235_v54 = vld [vmem:[#allocation53_spill] sm:$0xff]  ;;  %v2006_v28 = vpop.f32.mrf.mxu1 }
 0x2f8   : > { %3382 = vmatpush.bf16.xpose.msrb.mxu3 %v3356_v55  ;;  %9239 = vst [vmem:[#allocation53_spill] sm:$0xff] %v7147_v42 }
 0x2f9   : > { %5002 = vmatmul.msk.bf16.gmra.mxu0 %vm9058_vm0, %v9232_v43 }
 0x2fc   : > { %v1732_v46 = vpop.permute.xlu2 %1731 }
 0x2fd   : > { %v1783_v39 = vrot.slane %v1732_v46, 1 }
 0x2ff   : > { %v2008_v45 = vpop.f32.mrf.mxu1 }
 0x300   : > { %3383 = vmatpush.bf16.xpose.msrb.mxu3 %v3353_v57 }
 0x304   : > { %v1736_v18 = vpop.permute.xlu2 %1735 }
 0x305   : > { %v1785_v37 = vrot.slane %v1736_v18, 1 }
 0x307   : > { %4994 = vmatmul.msk.bf16.gmra.mxu3 %vm9058_vm0, %v9235_v54  ;;  %v7196_v54 = vadd.s32 1, %v7172_v36 }
 0x309   : > { %5003 = vmatmul.msk.bf16.gmra.mxu0 %vm9058_vm0, %v6787_v35  ;;  %9245 = vst [vmem:[#allocation80_spill] sm:$0xff] %v7196_v54  ;;  %vm9065_vm10 = vcmp.eq.s32.totalorder %v7118_v34, %v7196_v54 }
 0x30b   : > { %v7120_v53 = vpop.permute.xlu0 %1727 }
 0x30c   : > { %v9064_v58 = vrot.slane %v7120_v53, 1  ;;  %v1740_v55 = vpop.permute.xlu2 %1739 }
 0x30e   : > { %v1784_v60 = vsel %vm1757_vm3, %v9064_v58, %v1783_v39 }
 0x30f   : > { %v1819_v35 = vsel %vm9062_vm1, 0.0, %v1784_v60 }
 0x310   : > { %v1835_v29 = vsel %vm9061_vm2, %v7120_v53, %v1819_v35 }
 0x311   : > { %v7140_v33 = vadd.f32 %v2006_v28, %v1835_v29  ;;  %v7199_v28 = vadd.s32 1, %v7175_v44 }
 0x313   : > { %v1684_v25 = vpop.permute.xlu0 %1683  ;;  %2040 = vmax.xlane.f32.xlu2 %v7140_v33  ;;  %9246 = vst [vmem:[#allocation81_spill] sm:$0xff] %v7199_v28  ;;  %vm9057_vm11 = vcmp.eq.s32.totalorder %v7118_v34, %v7199_v28 }
 0x314   : > { %v1759_v20 = vrot.slane %v1684_v25, 1 }
 0x316   : > { %v1688_v4 = vpop.permute.xlu1 %1687  ;;  %v7154_v13 = vsel %vm1757_vm3, %v1758_v2, %v1759_v20 }
 0x317   : > { %v1761_v1 = vrot.slane %v1688_v4, 1  ;;  %4995 = vmatmul.msk.bf16.gmra.mxu3 %vm9058_vm0, %v9241_v56 }
 0x319   : > { %5004 = vmatmul.msk.bf16.gmra.mxu0 %vm9058_vm0, %v6752_v8  ;;  %v1762_v15 = vsel %vm1757_vm3, %v1759_v20, %v1761_v1  ;;  %v1786_v8 = vsel %vm1757_vm3, %v1783_v39, %v1785_v37  ;;  %v1787_v39 = vrot.slane %v1740_v55, 1 }
 0x31a   : > { %v1808_v49 = vsel %vm9095_vm4, 0.0, %v1762_v15  ;;  %v1820_v9 = vsel %vm9060_vm6, 0.0, %v1786_v8 }
 0x31b   : > { %v1824_v32 = vsel %vm9092_vm5, %v1684_v25, %v1808_v49  ;;  %v1836_v29 = vsel %vm9059_vm7, %v1732_v46, %v1820_v9  ;;  %v1806_v56 = vsel %vm1757_vm3, %v1787_v39, %v1758_v2  ;;  %v7222_v46 = vadd.s32 24, %v7104_v47 }
 0x31c   : > { %v7187_v43 = vadd.f32 %v6994_v12, %v1824_v32  ;;  %v2011_v12 = vpop.f32.mrf.mxu1  ;;  %v7227_v49 = vadd.f32 %v2008_v45, %v1836_v29  ;;  %v1696_v32 = vpop.permute.xlu2 %1695  ;;  %vm9072_vm7 = vcmp.le.s32.totalorder %v7118_v34, %v7104_v47 }
 0x31d   : > { %9247 = vst [vmem:[#allocation82_spill] sm:$0xff] %v7222_v46  ;;  %v1765_v45 = vrot.slane %v1696_v32, 1  ;;  %vm9119_vm15 = vcmp.le.s32.totalorder %v7118_v34, %v7222_v46 }
 0x31e   : > { %v1692_v57 = vpop.permute.xlu1 %1691  ;;  %2018 = vmax.xlane.f32.xlu2 %v7187_v43 }
 0x31f   : > { %v1763_v60 = vrot.slane %v1692_v57, 1 }
 0x321   : > { %v1764_v35 = vsel %vm1757_vm3, %v1761_v1, %v1763_v60  ;;  %v1788_v1 = vsel %vm1757_vm3, %v1785_v37, %v1787_v39  ;;  %v7258_v39 = vadd.s32 32, %v7104_v47 }
 0x322   : > { %v1809_v25 = vsel %vm1485_vm8, 0.0, %v1764_v35  ;;  %v1821_v2 = vsel %vm9065_vm10, 0.0, %v1788_v1 }
 0x323   : > { %v1825_v20 = vsel %vm1453_vm9, %v1688_v4, %v1809_v25  ;;  %v7244_v4 = vadd.s32 1, %v7222_v46  ;;  %v1837_v37 = vsel %vm9063_vm12, %v1736_v18, %v1821_v2  ;;  %9249 = vst [vmem:[#allocation84_spill] sm:$0xff] %v7258_v39 }
 0x324   : > { %v7225_v15 = vadd.f32 %v7009_v24, %v1825_v20  ;;  %v1822_v24 = vsel %vm9057_vm11, 0.0, %v1806_v56  ;;  %v2013_v9 = vpop.f32.mrf.mxu1  ;;  %v7260_v35 = vadd.f32 %v2011_v12, %v1837_v37  ;;  %vm1455_vm11 = vcmp.le.s32.totalorder %v7118_v34, %v7258_v39 }
 0x325   : > { %9248 = vst [vmem:[#allocation83_spill] sm:$0xff] %v7244_v4  ;;  %v1838_v8 = vsel %vm9056_vm13, %v1740_v55, %v1822_v24  ;;  %vm9120_vm14 = vcmp.eq.s32.totalorder %v7118_v34, %v7244_v4 }
 0x326   : > { %2020 = vmax.xlane.f32.xlu0 %v7225_v15  ;;  %2042 = vmax.xlane.f32.xlu2 %v7227_v49 }
 0x327   : > { %4996 = vmatmul.msk.bf16.gmra.mxu3 %vm9058_vm0, %v6730_v51  ;;  %v1766_v51 = vsel %vm1757_vm3, %v1763_v60, %v1765_v45  ;;  %v7272_v60 = vadd.s32 1, %v7258_v39 }
 0x328   : > { %v1810_v18 = vsel %vm9120_vm14, 0.0, %v1766_v51 }
 0x329   : > { %5005 = vmatmul.msk.bf16.gmra.mxu0 %vm9058_vm0, %v6816_v14  ;;  %v7262_v14 = vadd.f32 %v2013_v9, %v1838_v8  ;;  %9250 = vst [vmem:[#allocation85_spill] sm:$0xff] %v7272_v60  ;;  %v1826_v12 = vsel %vm9119_vm15, %v1692_v57, %v1810_v18  ;;  %vm1487_vm13 = vcmp.eq.s32.totalorder %v7118_v34, %v7272_v60 }
 0x32a   : > { %v7281_v20 = vadd.f32 %v7024_v19, %v1826_v12 }
 0x32e   : > { %v1700_v29 = vpop.permute.xlu1 %1699  ;;  %2044 = vmax.xlane.f32.xlu0 %v7260_v35  ;;  %2046 = vmax.xlane.f32.xlu2 %v7262_v14 }
 0x32f   : > { %v1767_v55 = vrot.slane %v1700_v29, 1 }
 0x331   : > { %v1768_v25 = vsel %vm1757_vm3, %v1765_v45, %v1767_v55 }
 0x332   : > { %v1811_v1 = vsel %vm1487_vm13, 0.0, %v1768_v25 }
 0x333   : > { %v1827_v57 = vsel %vm1455_vm11, %v1696_v32, %v1811_v1  ;;  %v7322_v1 = vadd.s32 40, %v7104_v47 }
 0x334   : > { %v7295_v56 = vadd.f32 %v7038_v11, %v1827_v57 }
 0x335   : > { %vm9078_vm2 = vcmp.le.s32.totalorder %v7118_v34, %v7322_v1 }
 0x336   : > { %2022 = vmax.xlane.f32.xlu2 %v7281_v20 }
 0x337   : > { %4997 = vmatmul.msk.bf16.gmra.mxu3 %vm9058_vm0, %v6798_v17  ;;  %v7302_v17 = vadd.s32 1, %v7104_v47 }
 0x339   : > { %9251 = vst [vmem:[#allocation86_spill] sm:$0xff] %v7302_v17  ;;  %vm9069_vm0 = vcmp.eq.s32.totalorder %v7118_v34, %v7302_v17 }
 0x33a   : > { %v1807_v11 = vsel %vm9069_vm0, 0.0, %v7154_v13  ;;  %v1704_v13 = vpop.permute.xlu2 %1703 }
 0x33b   : > { %v1823_v8 = vsel %vm9072_vm7, %v7102_v59, %v1807_v11  ;;  %v7327_v59 = vadd.s32 1, %v7322_v1  ;;  %v1769_v57 = vrot.slane %v1704_v13, 1 }
 0x33c   : > { %v7318_v51 = vadd.f32 %v6986_v61, %v1823_v8 }
 0x33d   : > { %vm1488_vm6 = vcmp.eq.s32.totalorder %v7118_v34, %v7327_v59  ;;  %v1770_v61 = vsel %vm1757_vm3, %v1767_v55, %v1769_v57 }
 0x33e   : > { %2024 = vmax.xlane.f32.xlu2 %v7295_v56 }
 0x342   : > { %v1720_v17 = vpop.permute.xlu2 %1719 }
 0x343   : > { %v1777_v40 = vrot.slane %v1720_v17, 1 }
 0x34a   : > { %v2370_v19 = vpop.f32.mrf.mxu3 }
 0x34b   : > { %2412 = vrot.lane.b32.xlu1 %v2370_v19, %s5913_s1 }
 0x352   : > { %v2372_v2 = vpop.f32.mrf.mxu3 }
 0x353   : > { %2416 = vrot.lane.b32.xlu1 %v2372_v2, %s5915_s24  ;;  %v7333_v2 = vadd.s32 48, %v7104_v47 }
 0x355   : > { %v7343_v8 = vadd.s32 1, %v7333_v2  ;;  %vm9073_vm12 = vcmp.le.s32.totalorder %v7118_v34, %v7333_v2 }
 0x357   : > { %vm9074_vm1 = vcmp.eq.s32.totalorder %v7118_v34, %v7343_v8 }
 0x35a   : > { %v2375_v24 = vpop.f32.mrf.mxu3 }
 0x362   : > { %v2377_v45 = vpop.f32.mrf.mxu3 }
 0x36a   : > { %v2380_v37 = vpop.f32.mrf.mxu3 }
 0x36b   : > { %2428 = vrot.lane.b32.xlu0 %v2380_v37, %s5921_s28  ;;  %v1708_v37 = vpop.permute.xlu0 %1707 }
 0x36c   : > { %v1771_v11 = vrot.slane %v1708_v37, 1 }
 0x372   : > { %v2382_v32 = vpop.f32.mrf.mxu3 }
 0x37a   : > { %v2385_v9 = vpop.f32.mrf.mxu3 }
 0x37b   : > { %2436 = vrot.lane.b32.xlu0 %v2385_v9, %s5923_s11  ;;  %v1772_v9 = vsel %vm1757_vm3, %v1769_v57, %v1771_v11 }
 0x37d   : > { %2016 = vmax.xlane.f32.xlu1 %v7318_v51 }
 0x382   : > { %v2387_v18 = vpop.f32.mrf.mxu3 }
 0x38a   : > { %v2390_v12 = vpop.f32.mrf.mxu3 }
 0x392   : > { %v2392_v25 = vpop.f32.mrf.mxu3 }
 0x393   : > { %2448 = vrot.lane.b32.xlu2 %v2392_v25, %s5926_s16 }
 0x396   : > { %2420 = vrot.lane.b32.xlu1 %v2375_v24, %s5917_s17  ;;  %v1812_v24 = vsel %vm1488_vm6, 0.0, %v1770_v61 }
 0x397   : > { %v1828_v55 = vsel %vm9078_vm2, %v1700_v29, %v1812_v24 }
 0x398   : > { %v7352_v25 = vadd.f32 %v7049_v23, %v1828_v55  ;;  %v1716_v23 = vpop.permute.xlu1 %1715 }
 0x39a   : > { %v2395_v19 = vpop.f32.mrf.mxu3 }
 0x39b   : > { %2452 = vrot.lane.b32.xlu2 %v2395_v19, %s5927_s4 }
 0x39e   : > { %2424 = vrot.lane.b32.xlu1 %v2377_v45, %s5919_s15  ;;  %v1813_v45 = vsel %vm9074_vm1, 0.0, %v1772_v9  ;;  %vm9132_vm1 = vcmp.eq.s32.totalorder %v7118_v34, %v7434_v3 }
 0x39f   : > { %v1829_v29 = vsel %vm9073_vm12, %v1704_v13, %v1813_v45  ;;  %v1712_v13 = vpop.permute.xlu0 %1711 }
 0x3a0   : > { %v7365_v57 = vadd.f32 %v7064_v27, %v1829_v29  ;;  %v7369_v19 = vpop.permute.xlu1 %1723  ;;  %v1773_v9 = vrot.slane %v1712_v13, 1  ;;  %v2660_v29 = vpop.f32.mrf.mxu0 }
 0x3a5   : > { %2026 = vmax.xlane.f32.xlu0 %v7352_v25 }
 0x3a6   : > { %2432 = vrot.lane.b32.xlu1 %v2382_v32, %s5922_s13  ;;  %v7377_v32 = vadd.s32 56, %v7104_v47 }
 0x3a8   : > { %9253 = vst [vmem:[#allocation88_spill] sm:$0xff] %v7377_v32 }
 0x3ad   : > { %2028 = vmax.xlane.f32.xlu0 %v7365_v57 }
 0x3ae   : > { %2440 = vrot.lane.b32.xlu1 %v2387_v18, %s5924_s5 }
 0x3bd   : > { %v7371_v61 = vpop.permute.xlu1 %2412 }
 0x3be   : > { %9252 = vst [vmem:[#allocation87_spill] sm:$0xff] %v7371_v61  ;;  %v9066_v27 = vrot.slane %v7371_v61, 1 }
 0x3c1   : > { %2444 = vrot.lane.b32.xlu0 %v2390_v12, %s5925_s26  ;;  %v7388_v12 = vadd.s32 1, %v7377_v32 }
 0x3c3   : > { %9254 = vst [vmem:[#allocation89_spill] sm:$0xff] %v7388_v12  ;;  %vm1490_vm10 = vcmp.eq.s32.totalorder %v7118_v34, %v7388_v12 }
 0x3c5   : > { %v7374_v24 = vpop.permute.xlu1 %2416 }
 0x3c6   : > { %v2491_v55 = vrot.slane %v7374_v24, 1 }
 0x3c8   : > { %v2492_v18 = vsel %vm1757_vm3, %v9066_v27, %v2491_v55  ;;  %v1774_v27 = vsel %vm1757_vm3, %v1771_v11, %v1773_v9 }
 0x3c9   : > { %v2539_v45 = vsel %vm9069_vm0, 0.0, %v2492_v18  ;;  %v7401_v18 = vadd.s32 72, %v7104_v47  ;;  %vm1458_vm0 = vcmp.le.s32.totalorder %v7118_v34, %v7377_v32 }
 0x3ca   : > { %v2555_v58 = vsel %vm9072_vm7, %v7371_v61, %v2539_v45  ;;  %v1814_v45 = vsel %vm1490_vm10, 0.0, %v1774_v27  ;;  %v7430_v27 = vadd.s32 64, %v7104_v47 }
 0x3cb   : > { %v7394_v16 = vadd.f32 %v2660_v29, %v2555_v58  ;;  %v1775_v58 = vrot.slane %v1716_v23, 1  ;;  %v7409_v29 = vadd.s32 1, %v7401_v18  ;;  %v1830_v11 = vsel %vm1458_vm0, %v1708_v37, %v1814_v45 }
 0x3cc   : > { %v7421_v38 = vadd.f32 %v7075_v30, %v1830_v11  ;;  %vm9077_vm12 = vcmp.le.s32.totalorder %v7118_v34, %v7401_v18  ;;  %9255 = vst [vmem:[#allocation90_spill] sm:$0xff] %v7430_v27  ;;  %v1779_v45 = vrot.slane %v7369_v19, 1  ;;  %v7440_v11 = vadd.s32 1, %v7430_v27 }
 0x3cd   : > { %2700 = vmax.xlane.f32.xlu2 %v7394_v16  ;;  %vm9076_vm7 = vcmp.eq.s32.totalorder %v7118_v34, %v7409_v29  ;;  %v1778_v6 = vsel %vm1757_vm3, %v1775_v58, %v1777_v40  ;;  %vm1459_vm2 = vcmp.le.s32.totalorder %v7118_v34, %v7430_v27 }
 0x3ce   : > { %v1816_v37 = vsel %vm9076_vm7, 0.0, %v1778_v6  ;;  %v1780_v6 = vsel %vm1757_vm3, %v1777_v40, %v1779_v45  ;;  %vm9127_vm7 = vcmp.le.s32.totalorder %v7118_v34, %v7418_v7 }
 0x3cf   : > { %v1832_v30 = vsel %vm9077_vm12, %v1716_v23, %v1816_v37  ;;  %v1817_v23 = vsel %vm9132_vm1, 0.0, %v1780_v6  ;;  %vm1491_vm12 = vcmp.eq.s32.totalorder %v7118_v34, %v7440_v11  ;;  %v1776_v37 = vsel %vm1757_vm3, %v1773_v9, %v1775_v58  ;;  %v2041_v58 = vpop.xlane.xlu2 %2040 }
 0x3d0   : > { %v7446_v52 = vadd.f32 %v7090_v31, %v1832_v30  ;;  %v1833_v40 = vsel %vm9127_vm7, %v1720_v17, %v1817_v23  ;;  %v1815_v31 = vsel %vm1491_vm12, 0.0, %v1776_v37  ;;  %v2397_v17 = vpop.f32.mrf.mxu3 }
 0x3d1   : > { %v7466_v30 = vadd.f32 %v7096_v22, %v1833_v40  ;;  %v1831_v6 = vsel %vm1459_vm2, %v1712_v13, %v1815_v31  ;;  %v2021_v22 = vpop.xlane.xlu0 %2020  ;;  %v2060_v31 = vsub.f32 %v7140_v33, %v2041_v58 }
 0x3d2   : > { %v7473_v9 = vadd.f32 %v7081_v21, %v1831_v6  ;;  %v2662_v21 = vpop.f32.mrf.mxu0 }
 0x3d3   : > { %v2088_v61 = vmul.f32 1.442695, %v2060_v31  ;;  %v7497_v31 = vadd.s32 88, %v7104_v47 }
 0x3d5   : > { %5287 = vpow2.f32 %v2088_v61 }
 0x3d7   : > { %v2019_v40 = vpop.xlane.xlu2 %2018 }
 0x3d8   : > { %2030 = vmax.xlane.f32.xlu1 %v7421_v38  ;;  %v2400_v23 = vpop.f32.mrf.mxu3 }
 0x3d9   : > { %v2045_v62 = vpop.xlane.xlu0 %2044 }
 0x3df   : > { %v2043_v33 = vpop.xlane.xlu2 %2042 }
 0x3e0   : > { %2034 = vmax.xlane.f32.xlu1 %v7446_v52  ;;  %v2402_v44 = vpop.f32.mrf.mxu3 }
 0x3e1   : > { %v7501_v50 = vpop.permute.xlu0 %2428 }
 0x3e8   : > { %2036 = vmax.xlane.f32.xlu1 %v7466_v30 }
 0x3eb   : > { %2032 = vmax.xlane.f32.xlu0 %v7473_v9 }
 0x3f0   : > { %v7477_v37 = vpop.xlane.xlu1 %2016 }
 0x3ff   : > { %2456 = vrot.lane.b32.xlu0 %v2397_v17, %s5928_s10 }
 0x401   : > { %2460 = vrot.lane.b32.xlu1 %v2400_v23, %s5914_s25 }
 0x408   : > { %v2421_v13 = vpop.permute.xlu1 %2420 }
 0x409   : > { %v2493_v28 = vrot.slane %v2421_v13, 1  ;;  %2464 = vrot.lane.b32.xlu1 %v2402_v44, %s5916_s14  ;;  %v2049_v44 = vsub.f32 %v7187_v43, %v2019_v40  ;;  %v7508_v43 = vadd.s32 1, %v7497_v31 }
 0x40b   : > { %v2494_v6 = vsel %vm1757_vm3, %v2491_v55, %v2493_v28  ;;  %v2665_v55 = vpop.f32.mrf.mxu0  ;;  %v2066_v58 = vmul.f32 1.442695, %v2049_v44 }
 0x40c   : > { %v2540_v17 = vsel %vm9095_vm4, 0.0, %v2494_v6  ;;  %v7499_v6 = vpop.eup %5287  ;;  %vm1462_vm4 = vcmp.le.s32.totalorder %v7118_v34, %v7497_v31 }
 0x40d   : > { %v2556_v23 = vsel %vm9092_vm5, %v7374_v24, %v2540_v17  ;;  %9257 = vst [vmem:[#allocation92_spill] sm:$0xff] %v7499_v6  ;;  %5289 = vpow2.f32 %v2066_v58  ;;  %vm1494_vm5 = vcmp.eq.s32.totalorder %v7118_v34, %v7508_v43  ;;  %v9258_v17 = vrot.slane %v7120_v53, 1  ;;  %v7522_v58 = vpop.permute.xlu0 %2436 }
 0x40e   : > { %v7490_v0 = vadd.f32 %v2662_v21, %v2556_v23  ;;  %v7505_v21 = vpop.xlane.xlu2 %2046 }
 0x40f   : > { %v1782_v23 = vsel %vm1757_vm3, %v1779_v45, %v9258_v17  ;;  %v2061_v17 = vsub.f32 %v7227_v49, %v2043_v33 }
 0x410   : > { %2702 = vmax.xlane.f32.xlu2 %v7490_v0  ;;  %v7494_v63 = vpop.permute.xlu1 %2424  ;;  %v1818_v53 = vsel %vm1494_vm5, 0.0, %v1782_v23 }
 0x411   : > { %v9096_v24 = vrot.slane %v7494_v63, 1 }
 0x413   : > { %v2496_v61 = vsel %vm1757_vm3, %v2493_v28, %v9096_v24  ;;  %v7513_v40 = vpop.f32.mrf.mxu0  ;;  %v7520_v44 = vpop.eup %5289  ;;  %v2050_v28 = vsub.f32 %v7225_v15, %v2021_v22  ;;  %v1834_v15 = vsel %vm1462_vm4, %v7369_v19, %v1818_v53 }
 0x414   : > { %v2541_v42 = vsel %vm1485_vm8, 0.0, %v2496_v61  ;;  %v7547_v47 = vadd.f32 %v7106_v10, %v1834_v15 }
 0x415   : > { %v2557_v45 = vsel %vm1453_vm9, %v2421_v13, %v2541_v42  ;;  %v2068_v22 = vmul.f32 1.442695, %v2050_v28  ;;  %v2062_v42 = vsub.f32 %v7260_v35, %v2045_v62 }
 0x416   : > { %v7538_v24 = vpop.xlane.xlu2 %2022  ;;  %v7544_v61 = vadd.f32 %v2665_v55, %v2557_v45  ;;  %v9103_v55 = vrot.slane %v7501_v50, 1 }
 0x417   : > { %5291 = vpow2.f32 %v2068_v22  ;;  %v2092_v13 = vmul.f32 1.442695, %v2062_v42 }
 0x418   : > { %2120 = vadd.xlane.f32.xlu2 %v7499_v6  ;;  %v2027_v5 = vpop.xlane.xlu0 %2026  ;;  %v2090_v6 = vmul.f32 1.442695, %v2061_v17  ;;  %v7551_v49 = vpop.permute.xlu1 %2432 }
 0x419   : > { %v9102_v19 = vrot.slane %v7551_v49, 1 }
 0x41a   : > { %5293 = vpow2.f32 %v2090_v6 }
 0x41b   : > { %v2670_v23 = vpop.f32.mrf.mxu0  ;;  %v2500_v62 = vsel %vm1757_vm3, %v9103_v55, %v9102_v19  ;;  %5295 = vpow2.f32 %v2092_v13  ;;  %v2053_v13 = vsub.f32 %v7352_v25, %v2027_v5 }
 0x41c   : > { %v2543_v45 = vsel %vm1487_vm13, 0.0, %v2500_v62  ;;  %v2405_v62 = vpop.f32.mrf.mxu3 }
 0x41d   : > { %v7556_v10 = vpop.eup %5291  ;;  %v2559_v22 = vsel %vm1455_vm11, %v7501_v50, %v2543_v45 }
 0x41e   : > { %v2025_v33 = vpop.xlane.xlu2 %2024  ;;  %v7582_v19 = vadd.f32 %v2670_v23, %v2559_v22 }
 0x41f   : > { %v2052_v35 = vsub.f32 %v7295_v56, %v2025_v33 }
 0x420   : > { %2098 = vadd.xlane.f32.xlu2 %v7520_v44  ;;  %v2029_v6 = vpop.xlane.xlu0 %2028  ;;  %v7565_v28 = vpop.eup %5293 }
 0x421   : > { %v2054_v17 = vsub.f32 %v7365_v57, %v2029_v6  ;;  %v2072_v15 = vmul.f32 1.442695, %v2052_v35  ;;  %v7578_v56 = vpop.eup %5295  ;;  %v7584_v55 = vpop.permute.xlu1 %2440  ;;  %v2074_v6 = vmul.f32 1.442695, %v2053_v13 }
 0x422   : > { %v9104_v45 = vrot.slane %v7584_v55, 1 }
 0x423   : > { %v7567_v53 = vpop.f32.mrf.mxu0  ;;  %v2076_v42 = vmul.f32 1.442695, %v2054_v17  ;;  %5297 = vpow2.f32 %v2072_v15 }
 0x424   : > { %v2407_v22 = vpop.f32.mrf.mxu3 }
 0x425   : > { %5299 = vpow2.f32 %v2076_v42 }
 0x426   : > { %5301 = vpow2.f32 %v2074_v6  ;;  %v7599_v23 = vpop.permute.xlu2 %2448 }
 0x427   : > { %v9113_v13 = vrot.slane %v7599_v23, 1 }
 0x428   : > { %2704 = vmax.xlane.f32.xlu2 %v7544_v61 }
 0x429   : > { %2038 = vmax.xlane.f32.xlu0 %v7547_v47  ;;  %v7591_v17 = vpop.eup %5297 }
 0x42b   : > { %v7587_v57 = vpop.f32.mrf.mxu0  ;;  %v7597_v25 = vpop.eup %5299 }
 0x42c   : > { %v7611_v6 = vpop.eup %5301 }
 0x430   : > { %2100 = vadd.xlane.f32.xlu2 %v7556_v10 }
 0x433   : > { %2122 = vadd.xlane.f32.xlu1 %v7565_v28  ;;  %v2445_v33 = vpop.permute.xlu0 %2444  ;;  %v2677_v42 = vpop.f32.mrf.mxu0 }
 0x434   : > { %v2505_v35 = vrot.slane %v2445_v33, 1 }
 0x436   : > { %v2506_v5 = vsel %vm1757_vm3, %v9104_v45, %v2505_v35  ;;  %v2508_v45 = vsel %vm1757_vm3, %v2505_v35, %v9113_v13  ;;  %v9260_v13 = vrot.slane %v7494_v63, 1 }
 0x437   : > { %v2546_v15 = vsel %vm1490_vm10, 0.0, %v2506_v5 }
 0x438   : > { %2124 = vadd.xlane.f32.xlu2 %v7578_v56 }
 0x43b   : > { %2708 = vmax.xlane.f32.xlu1 %v7582_v19  ;;  %v2680_v12 = vpop.f32.mrf.mxu0 }
 0x43d   : > { %2468 = vrot.lane.b32.xlu0 %v2405_v62, %s5918_s18  ;;  %v2562_v62 = vsel %vm1458_vm0, %v7584_v55, %v2546_v15 }
 0x43e   : > { %v7617_v5 = vadd.f32 %v2677_v42, %v2562_v62 }
 0x440   : > { %2104 = vadd.xlane.f32.xlu2 %v7591_v17 }
 0x443   : > { %2108 = vadd.xlane.f32.xlu1 %v7597_v25 }
 0x445   : > { %2472 = vrot.lane.b32.xlu0 %v2407_v22, %s5920_s30  ;;  %v2547_v22 = vsel %vm1491_vm12, 0.0, %v2508_v45 }
 0x446   : > { %v2563_v15 = vsel %vm1459_vm2, %v2445_v33, %v2547_v22  ;;  %v2048_v33 = vsub.f32 %v7318_v51, %v7477_v37  ;;  %v2063_v37 = vsub.f32 %v7262_v14, %v7505_v21 }
 0x447   : > { %v7627_v35 = vadd.f32 %v2680_v12, %v2563_v15  ;;  %v9259_v15 = vrot.slane %v7501_v50, 1 }
 0x448   : > { %2106 = vadd.xlane.f32.xlu2 %v7611_v6 }
 0x44b   : > { %2714 = vmax.xlane.f32.xlu1 %v7617_v5  ;;  %v2031_v39 = vpop.xlane.xlu1 %2030 }
 0x44c   : > { %v2055_v32 = vsub.f32 %v7421_v38, %v2031_v39 }
 0x44e   : > { %v2078_v60 = vmul.f32 1.442695, %v2055_v32  ;;  %v7638_v32 = vpop.f32.mrf.mxu0 }
 0x450   : > { %5303 = vpow2.f32 %v2078_v60  ;;  %v2064_v60 = vmul.f32 1.442695, %v2048_v33 }
 0x453   : > { %2716 = vmax.xlane.f32.xlu1 %v7627_v35  ;;  %v7630_v42 = vpop.xlane.xlu1 %2034 }
 0x456   : > { %v7632_v62 = vpop.eup %5303 }
 0x457   : > { %2110 = vadd.xlane.f32.xlu2 %v7632_v62 }
 0x45b   : > { %v2037_v45 = vpop.xlane.xlu1 %2036 }
 0x45c   : > { %v2058_v38 = vsub.f32 %v7466_v30, %v2037_v45  ;;  %v2498_v30 = vsel %vm1757_vm3, %v9260_v13, %v9259_v15  ;;  %v7662_v13 = vpop.permute.xlu2 %2452 }
 0x45d   : > { %v2542_v51 = vsel %vm9120_vm14, 0.0, %v2498_v30  ;;  %v2051_v30 = vsub.f32 %v7281_v20, %v7538_v24  ;;  %v9261_v20 = vrot.slane %v7551_v49, 1  ;;  %vm9264_vm14 = vcmp.eq.s32.totalorder %v7118_v34, %v7343_v8 }
 0x45e   : > { %v2084_v39 = vmul.f32 1.442695, %v2058_v38  ;;  %v2033_v22 = vpop.xlane.xlu0 %2032  ;;  %v7650_v38 = vpop.f32.mrf.mxu0  ;;  %v2558_v50 = vsel %vm9119_vm15, %v7494_v63, %v2542_v51  ;;  %vm9262_vm15 = vcmp.le.s32.totalorder %v7118_v34, %v7322_v1 }
 0x45f   : > { %v7668_v4 = vadd.f32 %v7513_v40, %v2558_v50  ;;  %v2070_v50 = vmul.f32 1.442695, %v2051_v30  ;;  %v2056_v46 = vsub.f32 %v7473_v9, %v2033_v22 }
 0x460   : > { %5305 = vpow2.f32 %v2084_v39 }
 0x461   : > { %5307 = vpow2.f32 %v2064_v60  ;;  %v2094_v60 = vmul.f32 1.442695, %v2063_v37 }
 0x463   : > { %5309 = vpow2.f32 %v2094_v60  ;;  %v2501_v60 = vrot.slane %v7522_v58, 1 }
 0x464   : > { %v7684_v37 = vpop.xlane.xlu2 %2700  ;;  %5311 = vpow2.f32 %v2070_v50 }
 0x465   : > { %v2502_v24 = vsel %vm1757_vm3, %v9261_v20, %v2501_v60 }
 0x466   : > { %v7640_v12 = vpop.eup %5305  ;;  %v2687_v21 = vpop.f32.mrf.mxu0 }
 0x467   : > { %2116 = vadd.xlane.f32.xlu2 %v7640_v12  ;;  %v7648_v45 = vpop.eup %5307 }
 0x46f   : > { %2096 = vadd.xlane.f32.xlu0 %v7648_v45 }
 0x471   : > { %v2457_v39 = vpop.permute.xlu0 %2456 }
 0x472   : > { %v2511_v15 = vrot.slane %v2457_v39, 1 }
 0x473   : > { %v7664_v33 = vpop.permute.xlu1 %2460 }
 0x474   : > { %v9118_v27 = vrot.slane %v7664_v33, 1 }
 0x476   : > { %v2514_v14 = vsel %vm1757_vm3, %v2511_v15, %v9118_v27  ;;  %v7687_v27 = vpop.eup %5309 }
 0x477   : > { %2706 = vmax.xlane.f32.xlu0 %v7668_v4  ;;  %v2550_v63 = vsel %vm1494_vm5, 0.0, %v2514_v14 }
 0x478   : > { %v2566_v40 = vsel %vm1462_vm4, %v2457_v39, %v2550_v63  ;;  %v7696_v39 = vpop.eup %5311  ;;  %v2544_v63 = vsel %vm1488_vm6, 0.0, %v2502_v24 }
 0x479   : > { %v7682_v51 = vadd.f32 %v2687_v21, %v2566_v40  ;;  %v2560_v21 = vsel %vm9262_vm15, %v7551_v49, %v2544_v63  ;;  %v9263_v40 = vrot.slane %v7584_v55, 1  ;;  %vm9265_vm15 = vcmp.le.s32.totalorder %v7118_v34, %v7333_v2 }
 0x47a   : > { %v7712_v20 = vadd.f32 %v7567_v53, %v2560_v21  ;;  %v2080_v55 = vmul.f32 1.442695, %v2056_v46  ;;  %v2509_v53 = vrot.slane %v7662_v13, 1 }
 0x47b   : > { %2722 = vmax.xlane.f32.xlu1 %v7682_v51  ;;  %v2504_v50 = vsel %vm1757_vm3, %v2501_v60, %v9263_v40  ;;  %v9266_v40 = vrot.slane %v7599_v23, 1 }
 0x47c   : > { %v2545_v24 = vsel %vm9264_vm14, 0.0, %v2504_v50  ;;  %5313 = vpow2.f32 %v2080_v55  ;;  %vm9267_vm14 = vcmp.eq.s32.totalorder %v7118_v34, %v7409_v29 }
 0x47d   : > { %v2561_v49 = vsel %vm9265_vm15, %v7522_v58, %v2545_v24  ;;  %v2510_v9 = vsel %vm1757_vm3, %v9266_v40, %v2509_v53  ;;  %vm9268_vm15 = vcmp.le.s32.totalorder %v7118_v34, %v7401_v18  ;;  %v2690_v40 = vpop.f32.mrf.mxu0 }
 0x47e   : > { %v7726_v60 = vadd.f32 %v7587_v57, %v2561_v49  ;;  %v2548_v46 = vsel %vm9267_vm14, 0.0, %v2510_v9  ;;  %v2057_v57 = vsub.f32 %v7446_v52, %v7630_v42  ;;  %v2512_v52 = vsel %vm1757_vm3, %v2509_v53, %v2511_v15 }
 0x47f   : > { %2126 = vadd.xlane.f32.xlu0 %v7687_v27  ;;  %v2564_v24 = vsel %vm9268_vm15, %v7599_v23, %v2548_v46  ;;  %v2549_v23 = vsel %vm9132_vm1, 0.0, %v2512_v52  ;;  %v2732_v53 = vsub.f32 %v7394_v16, %v7684_v37  ;;  %vm9269_vm14 = vcmp.eq.s32.totalorder %v7118_v34, %v7196_v54 }
 0x480   : > { %v2082_v49 = vmul.f32 1.442695, %v2057_v57  ;;  %v2565_v46 = vsel %vm9127_vm7, %v7662_v13, %v2549_v23  ;;  %vm9271_vm15 = vcmp.le.s32.totalorder %v7118_v34, %v7172_v36 }
 0x481   : > { %v7766_v15 = vadd.f32 %v7650_v38, %v2565_v46  ;;  %v2748_v23 = vmul.f32 1.442695, %v2732_v53 }
 0x482   : > { %v7734_v50 = vpop.eup %5313 }
 0x483   : > { %v7691_v14 = vpop.xlane.xlu2 %2702 }
 0x484   : > { %v2733_v53 = vsub.f32 %v7490_v0, %v7691_v14  ;;  %v9275_v0 = vld [vmem:[#allocation77_spill] sm:$0xff] }
 0x487   : > { %2102 = vadd.xlane.f32.xlu0 %v7696_v39 }
 0x48b   : > { %v7706_v30 = vpop.xlane.xlu2 %2120 }
 0x48f   : > { %2710 = vmax.xlane.f32.xlu0 %v7712_v20 }
 0x493   : > { %v7723_v63 = vpop.xlane.xlu2 %2098 }
 0x497   : > { %2712 = vmax.xlane.f32.xlu0 %v7726_v60 }
 0x49b   : > { %v2705_v21 = vpop.xlane.xlu2 %2704 }
 0x49c   : > { %v2734_v22 = vsub.f32 %v7544_v61, %v2705_v21  ;;  %v7747_v61 = vadd.f32 %v7638_v32, %v2564_v24  ;;  %v2039_v21 = vpop.xlane.xlu0 %2038  ;;  %v2465_v32 = vpop.permute.xlu1 %2464 }
 0x49e   : > { %v2752_v58 = vmul.f32 1.442695, %v2734_v22  ;;  %v2059_v22 = vsub.f32 %v7547_v47, %v2039_v21 }
 0x49f   : > { %2112 = vadd.xlane.f32.xlu0 %v7734_v50 }
 0x4a0   : > { %5315 = vpow2.f32 %v2752_v58  ;;  %v2692_v58 = vpop.f32.mrf.mxu0  ;;  %v2086_v57 = vmul.f32 1.442695, %v2059_v22  ;;  %v9270_v22 = vrot.slane %v7664_v33, 1 }
 0x4a1   : > { %5317 = vpow2.f32 %v2082_v49  ;;  %v2515_v49 = vrot.slane %v2465_v32, 1 }
 0x4a2   : > { %5319 = vpow2.f32 %v2086_v57 }
 0x4a3   : > { %v2516_v16 = vsel %vm1757_vm3, %v9270_v22, %v2515_v49  ;;  %5321 = vpow2.f32 %v2748_v23  ;;  %v2750_v22 = vmul.f32 1.442695, %v2733_v53  ;;  %v9277_v23 = vld [vmem:[#allocation56_spill] sm:$0xff] }
 0x4a4   : > { %vm9278_vm7 = vcmp.le.s32.totalorder %v7118_v34, %v9277_v23 }
 0x4a5   : > { %5323 = vpow2.f32 %v2750_v22 }
 0x4a6   : > { %v7749_v55 = vpop.eup %5315  ;;  %v7771_v52 = vpop.xlane.xlu1 %2122  ;;  %5325 = vrcp.f32 %v7723_v63 }
 0x4a7   : > { %2718 = vmax.xlane.f32.xlu0 %v7747_v61  ;;  %2784 = vadd.xlane.f32.xlu1 %v7749_v55  ;;  %v7754_v42 = vpop.eup %5317 }
 0x4a8   : > { %v2695_v38 = vpop.f32.mrf.mxu0  ;;  %v7785_v57 = vpop.eup %5319 }
 0x4af   : > { %v2469_v9 = vpop.permute.xlu0 %2468  ;;  %2114 = vadd.xlane.f32.xlu0 %v7754_v42 }
 0x4b0   : > { %v2517_v47 = vrot.slane %v2469_v9, 1 }
 0x4b7   : > { %v2473_v24 = vpop.permute.xlu0 %2472  ;;  %2720 = vmax.xlane.f32.xlu0 %v7766_v15 }
 0x4b8   : > { %v2519_v21 = vrot.slane %v2473_v24, 1 }
 0x4ba   : > { %v2520_v3 = vsel %vm1757_vm3, %v2517_v47, %v2519_v21 }
 0x4bb   : > { %v2553_v13 = vsel %vm9269_vm14, 0.0, %v2520_v3  ;;  %vm9272_vm14 = vcmp.eq.s32.totalorder %v7118_v34, %v7114_v41 }
 0x4bc   : > { %v2569_v37 = vsel %vm9271_vm15, %v2469_v9, %v2553_v13  ;;  %v2551_v3 = vsel %vm9272_vm14, 0.0, %v2516_v16  ;;  %v7796_v9 = vpop.xlane.xlu1 %2708  ;;  %v9273_v13 = vld [vmem:[#allocation46_spill] sm:$0xff]  ;;  %v7805_v16 = vpop.eup %5321  ;;  %vm9276_vm14 = vcmp.eq.s32.totalorder %v7118_v34, %v9275_v0 }
 0x4bd   : > { %v7783_v46 = vadd.f32 %v2695_v38, %v2569_v37  ;;  %vm9274_vm15 = vcmp.le.s32.totalorder %v7118_v34, %v9273_v13  ;;  %v2518_v37 = vsel %vm1757_vm3, %v2515_v49, %v2517_v47  ;;  %v9279_v49 = vld [vmem:[#allocation87_spill] sm:$0xff]  ;;  %v9281_v13 = vld [vmem:[#allocation81_spill] sm:$0xff] }
 0x4be   : > { %v2567_v38 = vsel %vm9274_vm15, %v7664_v33, %v2551_v3  ;;  %v2552_v14 = vsel %vm9276_vm14, 0.0, %v2518_v37  ;;  %vm9282_vm15 = vcmp.eq.s32.totalorder %v7118_v34, %v9281_v13  ;;  %v2697_v37 = vpop.f32.mrf.mxu0  ;;  %v2101_v13 = vpop.xlane.xlu2 %2100  ;;  %vm9287_vm14 = vcmask 261120  }
 0x4bf   : > { %2118 = vadd.xlane.f32.xlu0 %v7785_v57  ;;  %2728 = vmax.xlane.f32.xlu2 %v7783_v46  ;;  %v7803_v36 = vadd.f32 %v2690_v40, %v2567_v38  ;;  %v2568_v33 = vsel %vm9278_vm7, %v2465_v32, %v2552_v14  ;;  %v9280_v40 = vrot.slane %v9279_v49, 1  ;;  %v7822_v38 = vpop.eup %5323  ;;  %v9283_v32 = vld [vmem:[#allocation78_spill] sm:$0xff] }
 0x4c0   : > { %3296 = vrot.lane.b32.xlu1 %v6377_v48, %s5911_s12  ;;  %v7820_v53 = vadd.f32 %v2692_v58, %v2568_v33  ;;  %vm9284_vm7 = vcmp.le.s32.totalorder %v7118_v34, %v9283_v32  ;;  %v5326_v32 = vpop.eup %5325 }
 0x4c1   : > { %v2538_v47 = vsel %vm1757_vm3, %v2519_v21, %v9280_v40 }
 0x4c2   : > { %v2554_v41 = vsel %vm9282_vm15, 0.0, %v2538_v47  ;;  %vm9289_vm15 = vmmov %vm9287_vm14 }
 0x4c3   : > { %v2570_v22 = vsel %vm9284_vm7, %v2473_v24, %v2554_v41  ;;  %vm9291_vm7 = vmmov %vm9287_vm14 }
 0x4c4   : > { %v7815_v3 = vpop.xlane.xlu1 %2108  ;;  %v7832_v14 = vadd.f32 %v2697_v37, %v2570_v22  ;;  %v2145_v37 = vmul.f32 %v5326_v32, %v7520_v44  ;;  %vm9311_vm1 = vmmov %vm9291_vm7 }
 0x4c6   : > { %v7848_v44 = vpop.xlane.xlu2 %2124 }
 0x4c7   : > { %2780 = vadd.xlane.f32.xlu2 %v7805_v16  ;;  %2724 = vmax.xlane.f32.xlu0 %v7803_v36 }
 0x4cc   : > { %v2715_v21 = vpop.xlane.xlu1 %2714 }
 0x4cd   : > { %v2739_v58 = vsub.f32 %v7617_v5, %v2715_v21  ;;  %v9285_v21 = vld [vmem:[#allocation41_spill] sm:$0xff] }
 0x4cf   : > { %2782 = vadd.xlane.f32.xlu2 %v7822_v38  ;;  %2726 = vmax.xlane.f32.xlu0 %v7820_v53  ;;  %v2762_v33 = vmul.f32 1.442695, %v2739_v58 }
 0x4d1   : > { %5327 = vpow2.f32 %v2762_v33  ;;  %v9286_v33 = vld [vmem:[#allocation75_spill] sm:$0xff] }
 0x4d4   : > { %v2717_v49 = vpop.xlane.xlu1 %2716 }
 0x4d5   : > { %v2740_v47 = vsub.f32 %v7627_v35, %v2717_v49  ;;  %v4099_v49 = vsel %vm9287_vm14, %v9286_v33, 0  ;;  %vm9293_vm14 = vmmov %vm9291_vm7 }
 0x4d7   : > { %2730 = vmax.xlane.f32.xlu0 %v7832_v14  ;;  %v2764_v41 = vmul.f32 1.442695, %v2740_v47  ;;  %v7838_v24 = vpop.eup %5327  ;;  %v2105_v47 = vpop.xlane.xlu2 %2104 }
 0x4df   : > { %v2107_v33 = vpop.xlane.xlu2 %2106 }
 0x4e2   : > { %v2097_v40 = vpop.xlane.xlu0 %2096 }
 0x4e3   : > { %5329 = vrcp.f32 %v2097_v40  ;;  %v9288_v40 = vld [vmem:[#allocation76_spill] sm:$0xff] }
 0x4e4   : > { %5331 = vpow2.f32 %v2764_v41 }
 0x4e9   : > { %v5330_v22 = vpop.eup %5329 }
 0x4ea   : > { %v2144_v54 = vmul.f32 %v5330_v22, %v7648_v45  ;;  %v2707_v5 = vpop.xlane.xlu0 %2706  ;;  %2794 = vadd.xlane.f32.xlu1 %v7838_v24  ;;  %v7850_v45 = vpop.eup %5331  ;;  %v9290_v22 = vld [vmem:[#allocation72_spill] sm:$0xff] }
 0x4eb   : > { %v2735_v63 = vsub.f32 %v7668_v4, %v2707_v5  ;;  %3737 = vrot.lane.b32.xlu0 %v9285_v21, %s5912_s29 }
 0x4ec   : > { %v2160_v35 = vpack.c.bf16 %v2145_v37, %v2144_v54  ;;  %v4096_v54 = vsel %vm9289_vm15, %v9288_v40, 0  ;;  %v4093_v37 = vsel %vm9291_vm7, %v9290_v22, 0  ;;  %v2736_v40 = vsub.f32 %v7582_v19, %v7796_v9  ;;  %vm9296_vm15 = vmmov %vm9291_vm7 }
 0x4ed   : > { %v2754_v58 = vmul.f32 1.442695, %v2735_v63 }
 0x4ee   : > { %2224 = vmatmul.bf16.vlgmr.msra.gmra.mxu2 %v2160_v35 }
 0x4ef   : > { %5333 = vpow2.f32 %v2754_v58  ;;  %4101 = vmatpush.bf16.xpose.msra.mxu2 %v4099_v49 }
 0x4f0   : > { %5335 = vrcp.f32 %v2101_v13  ;;  %v9292_v13 = vld [vmem:[#allocation74_spill] sm:$0xff] }
 0x4f2   : > { %v7852_v32 = vpop.xlane.xlu0 %2126  ;;  %2796 = vadd.xlane.f32.xlu1 %v7850_v45 }
 0x4f5   : > { %v7855_v4 = vpop.eup %5333 }
 0x4f6   : > { %2786 = vadd.xlane.f32.xlu2 %v7855_v4  ;;  %v5336_v5 = vpop.eup %5335 }
 0x4f7   : > { %4102 = vmatpush.bf16.xpose.msra.mxu2 %v4096_v54  ;;  %v2146_v35 = vmul.f32 %v5336_v5, %v7556_v10  ;;  %v4090_v54 = vsel %vm9293_vm14, %v9292_v13, 0  ;;  %v9295_v5 = vld [vmem:[#allocation73_spill] sm:$0xff]  ;;  %vm9299_vm14 = vmmov %vm9291_vm7 }
 0x4fa   : > { %v2103_v41 = vpop.xlane.xlu0 %2102 }
 0x4fb   : > { %5337 = vrcp.f32 %v2103_v41  ;;  %v2756_v41 = vmul.f32 1.442695, %v2736_v40 }
 0x4fc   : > { %5339 = vrcp.f32 %v2107_v33 }
 0x4fd   : > { %5341 = vrcp.f32 %v2105_v47 }
 0x4fe   : > { %5343 = vpow2.f32 %v2756_v41  ;;  %v9298_v41 = vld [vmem:[#allocation68_spill] sm:$0xff] }
 0x4ff   : > { %4103 = vmatpush.bf16.xpose.msra.mxu2 %v4093_v37  ;;  %v9294_v37 = vld [vmem:[#allocation38_spill] sm:$0xff] }
 0x501   : > { %v5338_v63 = vpop.eup %5337 }
 0x502   : > { %v2711_v21 = vpop.xlane.xlu0 %2710  ;;  %v2147_v58 = vmul.f32 %v5338_v63, %v7696_v39  ;;  %v5340_v10 = vpop.eup %5339  ;;  %v4087_v63 = vsel %vm9296_vm15, %v9295_v5, 0  ;;  %vm9301_vm15 = vmmov %vm9291_vm7 }
 0x503   : > { %v2737_v39 = vsub.f32 %v7712_v20, %v2711_v21  ;;  %v5342_v19 = vpop.eup %5341  ;;  %v2149_v9 = vmul.f32 %v5340_v10, %v7611_v6  ;;  %v9297_v21 = vld [vmem:[#allocation71_spill] sm:$0xff]  ;;  %v4081_v10 = vsel %vm9299_vm14, %v9298_v41, 0  ;;  %vm9307_vm14 = vmmov %vm9291_vm7 }
 0x504   : > { %v2161_v49 = vpack.c.bf16 %v2147_v58, %v2146_v35  ;;  %v2148_v58 = vmul.f32 %v5342_v19, %v7591_v17  ;;  %v7877_v33 = vpop.eup %5343 }
 0x505   : > { %v2758_v47 = vmul.f32 1.442695, %v2737_v39 }
 0x506   : > { %2229 = vmatmul.bf16.gmra.mxu2 %v2161_v49  ;;  %v2111_v49 = vpop.xlane.xlu2 %2110  ;;  %v2162_v40 = vpack.c.bf16 %v2149_v9, %v2148_v58  ;;  %v9300_v9 = vld [vmem:[#allocation66_spill] sm:$0xff] }
 0x507   : > { %4104 = vmatpush.bf16.xpose.msra.mxu2 %v4090_v54  ;;  %5345 = vpow2.f32 %v2758_v47  ;;  %v4078_v47 = vsel %vm9301_vm15, %v9300_v9, 0  ;;  %vm9309_vm15 = vmmov %vm9291_vm7 }
 0x508   : > { %5347 = vrcp.f32 %v2111_v49 }
 0x509   : > { %5349 = vrcp.f32 %v7815_v3 }
 0x50a   : > { %v2713_v22 = vpop.xlane.xlu0 %2712 }
 0x50b   : > { %3298 = vrot.lane.b32.xlu1 %v9294_v37, %s5911_s12  ;;  %v2738_v20 = vsub.f32 %v7726_v60, %v2713_v22 }
 0x50d   : > { %v2760_v6 = vmul.f32 1.442695, %v2738_v20  ;;  %v7884_v17 = vpop.eup %5345 }
 0x50e   : > { %4021 = vrot.lane.b32.xlu2 %v6377_v48, %s5912_s29  ;;  %v4084_v48 = vsel %vm9291_vm7, %v9297_v21, 0  ;;  %v5348_v54 = vpop.eup %5347 }
 0x50f   : > { %4105 = vmatpush.bf16.xpose.msra.mxu2 %v4087_v63  ;;  %5351 = vpow2.f32 %v2760_v6  ;;  %v5350_v60 = vpop.eup %5349  ;;  %v2151_v22 = vmul.f32 %v5348_v54, %v7632_v62  ;;  %v7891_v63 = vpop.xlane.xlu1 %2722 }
 0x510   : > { %v2150_v5 = vmul.f32 %v5350_v60, %v7597_v25  ;;  %v2117_v62 = vpop.xlane.xlu2 %2116 }
 0x512   : > { %v2113_v35 = vpop.xlane.xlu0 %2112  ;;  %v2163_v19 = vpack.c.bf16 %v2151_v22, %v2150_v5 }
 0x515   : > { %2788 = vadd.xlane.f32.xlu0 %v7877_v33  ;;  %v7893_v3 = vpop.eup %5351 }
 0x516   : > { %2234 = vmatmul.bf16.gmra.mxu2 %v2162_v40 }
 0x517   : > { %4106 = vmatpush.bf16.xpose.msra.mxu2 %v4084_v48 }
 0x51a   : > { %v2719_v13 = vpop.xlane.xlu0 %2718  ;;  %v7899_v40 = vpop.xlane.xlu1 %2784 }
 0x51b   : > { %v2741_v58 = vsub.f32 %v7747_v61, %v2719_v13  ;;  %v9302_v13 = vld [vmem:[#allocation31_spill] sm:$0xff] }
 0x51d   : > { %2790 = vadd.xlane.f32.xlu0 %v7884_v17  ;;  %v2766_v25 = vmul.f32 1.442695, %v2741_v58 }
 0x51f   : > { %4107 = vmatpush.bf16.xpose.msra.mxu2 %v4081_v10 }
 0x522   : > { %v2115_v39 = vpop.xlane.xlu0 %2114 }
 0x523   : > { %5353 = vrcp.f32 %v2115_v39 }
 0x524   : > { %5355 = vrcp.f32 %v2113_v35 }
 0x525   : > { %2792 = vadd.xlane.f32.xlu0 %v7893_v3  ;;  %5357 = vpow2.f32 %v2766_v25 }
 0x526   : > { %2239 = vmatmul.bf16.gmra.mxu2 %v2163_v19 }
 0x527   : > { %4108 = vmatpush.bf16.xpose.msra.mxu2 %v4078_v47 }
 0x529   : > { %v5354_v20 = vpop.eup %5353 }
 0x52a   : > { %v2721_v49 = vpop.xlane.xlu0 %2720  ;;  %v5356_v21 = vpop.eup %5355  ;;  %v2153_v48 = vmul.f32 %v5354_v20, %v7754_v42 }
 0x52b   : > { %v2152_v41 = vmul.f32 %v5356_v21, %v7734_v50  ;;  %v7906_v35 = vpop.eup %5357 }
 0x52d   : > { %v2164_v61 = vpack.c.bf16 %v2153_v48, %v2152_v41  ;;  %v9303_v41 = vld [vmem:[#allocation92_spill] sm:$0xff] }
 0x532   : > { %v2119_v6 = vpop.xlane.xlu0 %2118  ;;  %v7902_v54 = vpop.xlane.xlu2 %2728 }
 0x533   : > { %v3297_v10 = vpop.permute.xlu1 %3296  ;;  %5359 = vrcp.f32 %v2119_v6 }
 0x534   : > { %5014 = vmatmul.msk.bf16.vlgmr.msrb.gmra.mxu3 %vm9291_vm7, %v3297_v10  ;;  %5361 = vrcp.f32 %v2117_v62 }
 0x536   : > { %2244 = vmatmul.bf16.gmra.mxu2 %v2164_v61 }
 0x537   : > { %2798 = vadd.xlane.f32.xlu2 %v7906_v35 }
 0x539   : > { %3739 = vrot.lane.b32.xlu0 %v9302_v13, %s5912_s29  ;;  %v5360_v39 = vpop.eup %5359 }
 0x53a   : > { %v2781_v42 = vpop.xlane.xlu2 %2780  ;;  %v2725_v60 = vpop.xlane.xlu0 %2724  ;;  %v2155_v19 = vmul.f32 %v5360_v39, %v7785_v57 }
 0x53b   : > { %v2744_v22 = vsub.f32 %v7803_v36, %v2725_v60  ;;  %v5362_v5 = vpop.eup %5361 }
 0x53c   : > { %v2154_v47 = vmul.f32 %v5362_v5, %v7640_v12 }
 0x53d   : > { %v2772_v50 = vmul.f32 1.442695, %v2744_v22 }
 0x53e   : > { %v2165_v58 = vpack.c.bf16 %v2155_v19, %v2154_v47 }
 0x53f   : > { %5363 = vpow2.f32 %v2772_v50  ;;  %v9306_v50 = vld [vmem:[#allocation34_spill] sm:$0xff] }
 0x540   : > { %5365 = vrcp.f32 %v2781_v42 }
 0x542   : > { %v2783_v9 = vpop.xlane.xlu2 %2782 }
 0x543   : > { %5367 = vrcp.f32 %v2783_v9 }
 0x544   : > { %5369 = vrcp.f32 %v7771_v52  ;;  %v2742_v52 = vsub.f32 %v7766_v15, %v2721_v49 }
 0x545   : > { %v7914_v62 = vpop.eup %5363  ;;  %5371 = vrcp.f32 %v7706_v30 }
 0x546   : > { %2249 = vmatmul.bf16.gmra.mxu2 %v2165_v58  ;;  %2804 = vadd.xlane.f32.xlu1 %v7914_v62  ;;  %v5366_v25 = vpop.eup %5365  ;;  %5373 = vrcp.f32 %v7852_v32  ;;  %v2768_v30 = vmul.f32 1.442695, %v2742_v52  ;;  %v2727_v32 = vpop.xlane.xlu0 %2726  ;;  %v9308_v58 = vld [vmem:[#allocation59_spill] sm:$0xff] }
 0x547   : > { %v2828_v20 = vmul.f32 %v5366_v25, %v7805_v16  ;;  %5375 = vrcp.f32 %v7848_v44  ;;  %v2743_v16 = vsub.f32 %v7682_v51, %v7891_v63  ;;  %v9305_v51 = vld [vmem:[#allocation42_spill] sm:$0xff]  ;;  %v2745_v63 = vsub.f32 %v7820_v53, %v2727_v32 }
 0x548   : > { %5377 = vpow2.f32 %v2768_v30  ;;  %v2746_v30 = vsub.f32 %v7783_v46, %v7902_v54 }
 0x549   : > { %v5368_v36 = vpop.eup %5367 }
 0x54a   : > { %v2829_v57 = vmul.f32 %v5368_v36, %v7822_v38  ;;  %v5370_v48 = vpop.eup %5369  ;;  %v9310_v36 = vld [vmem:[#allocation39_spill] sm:$0xff] }
 0x54b   : > { %v5372_v12 = vpop.eup %5371  ;;  %v2157_v6 = vmul.f32 %v5370_v48, %v7565_v28  ;;  %v2770_v28 = vmul.f32 1.442695, %v2743_v16  ;;  %v9313_v48 = vld [vmem:[#allocation63_spill] sm:$0xff] }
 0x54c   : > { %v2844_v21 = vpack.c.bf16 %v2829_v57, %v2828_v20  ;;  %v2156_v10 = vmul.f32 %v5372_v12, %v9303_v41  ;;  %v5374_v38 = vpop.eup %5373  ;;  %v9315_v12 = vld [vmem:[#allocation32_spill] sm:$0xff] }
 0x54d   : > { %v5376_v13 = vpop.eup %5375  ;;  %v2159_v42 = vmul.f32 %v5374_v38, %v7687_v27  ;;  %5379 = vpow2.f32 %v2770_v28  ;;  %v2776_v38 = vmul.f32 1.442695, %v2746_v30 }
 0x54e   : > { %2884 = vmatmul.bf16.vlgmr.msrb.gmra.mxu1 %v2844_v21  ;;  %v2166_v61 = vpack.c.bf16 %v2157_v6, %v2156_v10  ;;  %v7933_v15 = vpop.eup %5377  ;;  %v2158_v49 = vmul.f32 %v5376_v13, %v7578_v56  ;;  %5381 = vrcp.f32 %v7899_v40  ;;  %v2774_v56 = vmul.f32 1.442695, %v2745_v63  ;;  %v2731_v20 = vpop.xlane.xlu0 %2730  ;;  %v9317_v10 = vld [vmem:[#allocation37_spill] sm:$0xff]  ;;  %v9318_v13 = vld [vmem:[#allocation60_spill] sm:$0xff] }
 0x54f   : > { %4023 = vrot.lane.b32.xlu2 %v9294_v37, %s5912_s29  ;;  %v9304_v37 = vld [vmem:[#allocation44_spill] sm:$0xff] }
 0x550   : > { %v2167_v44 = vpack.c.bf16 %v2159_v42, %v2158_v49  ;;  %v9320_v42 = vld [vmem:[#allocation40_spill] sm:$0xff] }
 0x553   : > { %v7941_v22 = vpop.eup %5379 }
 0x554   : > { %v5382_v39 = vpop.eup %5381 }
 0x555   : > { %v2830_v9 = vmul.f32 %v5382_v39, %v7749_v55 }
 0x556   : > { %2254 = vmatmul.bf16.gmra.mxu2 %v2166_v61 }
 0x55d   : > { %v2795_v27 = vpop.xlane.xlu1 %2794  ;;  %v7960_v21 = vpop.permute.xlu0 %3737 }
 0x55f   : > { %3300 = vrot.lane.b32.xlu1 %v9304_v37, %s5911_s12 }
 0x563   : > { %2800 = vadd.xlane.f32.xlu0 %v7933_v15 }
 0x565   : > { %v2797_v47 = vpop.xlane.xlu1 %2796 }
 0x566   : > { %2259 = vmatmul.bf16.gmra.mxu2 %v2167_v44 }
 0x567   : > { %3302 = vrot.lane.b32.xlu1 %v9305_v51, %s5911_s12 }
 0x569   : > { %v2787_v60 = vpop.xlane.xlu2 %2786 }
 0x56a   : > { %5383 = vrcp.f32 %v2787_v60  ;;  %v9323_v60 = vld [vmem:[#allocation70_spill] sm:$0xff] }
 0x56b   : > { %2802 = vadd.xlane.f32.xlu0 %v7941_v22  ;;  %5385 = vpow2.f32 %v2774_v56 }
 0x56f   : > { %3304 = vrot.lane.b32.xlu1 %v9306_v50, %s5911_s12 }
 0x570   : > { %v5384_v5 = vpop.eup %5383 }
 0x571   : > { %v2225_v19 = vpop.f32.mrf.mxu2  ;;  %v2831_v40 = vmul.f32 %v5384_v5, %v7855_v4  ;;  %v7951_v25 = vpop.eup %5385  ;;  %v9312_v4 = vld [vmem:[#allocation35_spill] sm:$0xff] }
 0x572   : > { %2265 = vst.msk [vmem:[#allocation2] sm:$0xff] %vm9307_vm14, %v2225_v19  ;;  %vm9314_vm14 = vmmov %vm9311_vm1 }
 0x573   : > { %v2845_v53 = vpack.c.bf16 %v2831_v40, %v2830_v9  ;;  %v2747_v9 = vsub.f32 %v7832_v14, %v2731_v20  ;;  %v9329_v14 = vld [vmem:[#allocation43_spill] sm:$0xff] }
 0x575   : > { %2889 = vmatmul.bf16.gmra.mxu1 %v2845_v53  ;;  %v2778_v53 = vmul.f32 1.442695, %v2747_v9 }
 0x576   : > { %5006 = vmatmul.msk.bf16.vlgmr.msrb.gmra.mxu2 %vm9309_vm15, %v9308_v58  ;;  %vm9316_vm15 = vmmov %vm9311_vm1 }
 0x577   : > { %4033 = vrot.lane.b32.xlu1 %v9310_v36, %s5912_s29 }
 0x578   : > { %2806 = vadd.xlane.f32.xlu2 %v7951_v25 }
 0x579   : > { %v2227_v57 = vpop.f32.mrf.mxu2 }
 0x57a   : > { %2266 = vst.msk [vmem:[#allocation2 + $0x8] sm:$0xff] %vm9291_vm7, %v2227_v57  ;;  %vm9319_vm7 = vmmov %vm9311_vm1  ;;  %v9328_v57 = vld [vmem:[#allocation67_spill] sm:$0xff] }
 0x57d   : > { %v3299_v55 = vpop.permute.xlu1 %3298 }
 0x57e   : > { %5015 = vmatmul.msk.bf16.gmra.mxu3 %vm9311_vm1, %v3299_v55 }
 0x57f   : > { %3741 = vrot.lane.b32.xlu0 %v9312_v4, %s5912_s29  ;;  %v9330_v4 = vld [vmem:[#allocation58_spill] sm:$0xff] }
 0x586   : > { %5007 = vmatmul.msk.bf16.gmra.mxu2 %vm9314_vm14, %v9313_v48  ;;  %vm9321_vm14 = vmmov %vm9311_vm1  ;;  %v9333_v48 = vld [vmem:[#allocation64_spill] sm:$0xff] }
 0x587   : > { %3743 = vrot.lane.b32.xlu0 %v9315_v12, %s5912_s29 }
 0x588   : > { %v2789_v6 = vpop.xlane.xlu0 %2788 }
 0x589   : > { %v2230_v41 = vpop.f32.mrf.mxu2  ;;  %5387 = vrcp.f32 %v2789_v6 }
 0x58a   : > { %2267 = vst.msk [vmem:[#allocation2 + $0x10] sm:$0xff] %vm9316_vm15, %v2230_v41  ;;  %vm9322_vm15 = vmmov %vm9311_vm1  ;;  %v9336_v41 = vld [vmem:[#allocation45_spill] sm:$0xff] }
 0x58f   : > { %3745 = vrot.lane.b32.xlu0 %v9317_v10, %s5912_s29  ;;  %v5388_v16 = vpop.eup %5387 }
 0x590   : > { %4025 = vrot.lane.b32.xlu2 %v9304_v37, %s5912_s29  ;;  %v2791_v52 = vpop.xlane.xlu0 %2790  ;;  %v2832_v37 = vmul.f32 %v5388_v16, %v7877_v33  ;;  %v7988_v33 = vpop.permute.xlu2 %4021 }
 0x591   : > { %5389 = vrcp.f32 %v2791_v52  ;;  %v2232_v61 = vpop.f32.mrf.mxu2  ;;  %v9337_v52 = vld [vmem:[#allocation48_spill] sm:$0xff] }
 0x592   : > { %2268 = vst.msk [vmem:[#allocation2 + $0x18] sm:$0xff] %vm9311_vm1, %v2232_v61  ;;  %5391 = vpow2.f32 %v2776_v38  ;;  %v9339_v38 = vld [vmem:[#allocation47_spill] sm:$0xff] }
 0x596   : > { %5008 = vmatmul.msk.bf16.gmra.mxu2 %vm9319_vm7, %v9318_v13  ;;  %vm9324_vm7 = vmmov %vm9311_vm1  ;;  %v9341_v13 = vld [vmem:[#allocation33_spill] sm:$0xff] }
 0x597   : > { %v5390_v28 = vpop.eup %5389  ;;  %3306 = vrot.lane.b32.xlu0 %v9320_v42, %s5911_s12 }
 0x598   : > { %4027 = vrot.lane.b32.xlu2 %v9305_v51, %s5912_s29  ;;  %v2833_v49 = vmul.f32 %v5390_v28, %v7884_v17  ;;  %v2793_v46 = vpop.xlane.xlu0 %2792  ;;  %v7983_v32 = vpop.eup %5391 }
 0x599   : > { %v2235_v44 = vpop.f32.mrf.mxu2  ;;  %5393 = vrcp.f32 %v2793_v46 }
 0x59a   : > { %2269 = vst.msk [vmem:[#allocation2 + $0x20] sm:$0xff] %vm9321_vm14, %v2235_v44  ;;  %v2846_v54 = vpack.c.bf16 %v2833_v49, %v2832_v37  ;;  %5395 = vrcp.f32 %v2795_v27  ;;  %vm9325_vm14 = vmmov %vm9311_vm1 }
 0x59c   : > { %2894 = vmatmul.bf16.gmra.mxu1 %v2846_v54 }
 0x59f   : > { %v5394_v17 = vpop.eup %5393 }
 0x5a0   : > { %4029 = vrot.lane.b32.xlu2 %v9306_v50, %s5912_s29  ;;  %v5396_v51 = vpop.eup %5395  ;;  %v2834_v56 = vmul.f32 %v5394_v17, %v7893_v3  ;;  %v9345_v17 = vld [vmem:[#allocation61_spill] sm:$0xff] }
 0x5a1   : > { %v2237_v63 = vpop.f32.mrf.mxu2  ;;  %2808 = vadd.xlane.f32.xlu1 %v7983_v32  ;;  %v2835_v27 = vmul.f32 %v5396_v51, %v7838_v24  ;;  %v9326_v24 = vld [vmem:[#allocation51_spill] sm:$0xff] }
 0x5a2   : > { %2270 = vst.msk [vmem:[#allocation2 + $0x28] sm:$0xff] %vm9322_vm15, %v2237_v63  ;;  %vm9327_vm15 = vmmov %vm9311_vm1  ;;  %v9346_v51 = vld [vmem:[#allocation55_spill] sm:$0xff] }
 0x5a3   : > { %v2847_v5 = vpack.c.bf16 %v2835_v27, %v2834_v56 }
 0x5a6   : > { %5009 = vmatmul.msk.bf16.gmra.mxu2 %vm9311_vm1, %v9323_v60 }
 0x5a8   : > { %4031 = vrot.lane.b32.xlu2 %v9320_v42, %s5912_s29  ;;  %v9343_v42 = vld [vmem:[#allocation36_spill] sm:$0xff] }
 0x5a9   : > { %v2240_v39 = vpop.f32.mrf.mxu2 }
 0x5aa   : > { %2271 = vst.msk [vmem:[#allocation2 + $0x30] sm:$0xff] %vm9324_vm7, %v2240_v39  ;;  %v2799_v50 = vpop.xlane.xlu2 %2798  ;;  %vm9331_vm7 = vmmov %vm9311_vm1 }
 0x5ab   : > { %5397 = vrcp.f32 %v2799_v50  ;;  %v8026_v10 = vpop.permute.xlu0 %3739 }
 0x5ac   : > { %2899 = vmatmul.bf16.gmra.mxu1 %v2847_v5  ;;  %5399 = vrcp.f32 %v2797_v47 }
 0x5ad   : > { %5401 = vpow2.f32 %v2778_v53 }
 0x5b0   : > { %3308 = vrot.lane.b32.xlu2 %v9310_v36, %s5911_s12 }
 0x5b1   : > { %v2242_v19 = vpop.f32.mrf.mxu2  ;;  %v5398_v3 = vpop.eup %5397 }
 0x5b2   : > { %2272 = vst.msk [vmem:[#allocation2 + $0x38] sm:$0xff] %vm9325_vm14, %v2242_v19  ;;  %v5400_v40 = vpop.eup %5399  ;;  %v2837_v58 = vmul.f32 %v5398_v3, %v7906_v35  ;;  %vm9334_vm14 = vmmov %vm9311_vm1  ;;  %v4024_v54 = vpop.permute.xlu2 %4023 }
 0x5b3   : > { %v2836_v47 = vmul.f32 %v5400_v40, %v7850_v45  ;;  %v8011_v20 = vpop.eup %5401  ;;  %v9332_v45 = vld [vmem:[#allocation62_spill] sm:$0xff] }
 0x5b5   : > { %v2848_v36 = vpack.c.bf16 %v2837_v58, %v2836_v47 }
 0x5b6   : > { %5010 = vmatmul.msk.bf16.gmra.mxu2 %vm9327_vm15, %v9326_v24  ;;  %vm9335_vm15 = vmmov %vm9311_vm1 }
 0x5b8   : > { %3591 = vrot.lane.b32.xlu2 %v9328_v57, %s5911_s12 }
 0x5b9   : > { %v2245_v55 = vpop.f32.mrf.mxu2  ;;  %v2805_v12 = vpop.xlane.xlu1 %2804 }
 0x5ba   : > { %2273 = vst.msk [vmem:[#allocation2 + $0x40] sm:$0xff] %vm9311_vm1, %v2245_v55  ;;  %3310 = vrot.lane.b32.xlu1 %v9329_v14, %s5911_s12 }
 0x5bc   : > { %2904 = vmatmul.bf16.gmra.mxu1 %v2848_v36 }
 0x5c0   : > { %4310 = vrot.lane.b32.xlu2 %v9330_v4, %s5912_s29 }
 0x5c1   : > { %v2247_v35 = vpop.f32.mrf.mxu2  ;;  %2810 = vadd.xlane.f32.xlu0 %v8011_v20 }
 0x5c2   : > { %2274 = vst.msk [vmem:[#allocation2 + $0x48] sm:$0xff] %vm9331_vm7, %v2247_v35  ;;  %4312 = vrot.lane.b32.xlu1 %v9332_v45, %s5912_s29  ;;  %vm9338_vm7 = vmmov %vm9311_vm1 }
 0x5c6   : > { %5011 = vmatmul.msk.bf16.gmra.mxu2 %vm9334_vm14, %v9333_v48  ;;  %vm9340_vm14 = vmmov %vm9311_vm1 }
 0x5c8   : > { %3587 = vrot.lane.b32.xlu2 %v9332_v45, %s5911_s12 }
 0x5c9   : > { %v2250_v6 = vpop.f32.mrf.mxu2 }
 0x5ca   : > { %2275 = vst.msk [vmem:[#allocation2 + $0x50] sm:$0xff] %vm9335_vm15, %v2250_v6  ;;  %4308 = vrot.lane.b32.xlu1 %v9336_v41, %s5912_s29  ;;  %vm9342_vm15 = vmmov %vm9311_vm1 }
 0x5d0   : > { %3581 = vrot.lane.b32.xlu2 %v9337_v52, %s5911_s12 }
 0x5d1   : > { %v2252_v61 = vpop.f32.mrf.mxu2  ;;  %v3301_v30 = vpop.permute.xlu1 %3300 }
 0x5d2   : > { %2276 = vst.msk [vmem:[#allocation2 + $0x58] sm:$0xff] %vm9311_vm1, %v2252_v61  ;;  %3585 = vrot.lane.b32.xlu1 %v9330_v4, %s5911_s12  ;;  %5016 = vmatmul.msk.bf16.gmra.mxu3 %vm9338_vm7, %v3301_v30  ;;  %vm9344_vm7 = vmmov %vm9311_vm1 }
 0x5d5   : > { %4035 = vrot.lane.b32.xlu0 %v9329_v14, %s5912_s29 }
 0x5d6   : > { %v2801_v16 = vpop.xlane.xlu0 %2800  ;;  %5012 = vmatmul.msk.bf16.gmra.mxu2 %vm9340_vm14, %v9339_v38  ;;  %vm9347_vm14 = vmmov %vm9311_vm1 }
 0x5d7   : > { %5403 = vrcp.f32 %v2801_v16 }
 0x5d8   : > { %4302 = vrot.lane.b32.xlu2 %v9341_v13, %s5912_s29 }
 0x5d9   : > { %v2255_v28 = vpop.f32.mrf.mxu2  ;;  %v3303_v49 = vpop.permute.xlu1 %3302 }
 0x5da   : > { %2277 = vst.msk [vmem:[#allocation2 + $0x60] sm:$0xff] %vm9342_vm15, %v2255_v28  ;;  %4304 = vrot.lane.b32.xlu1 %v9343_v42, %s5912_s29  ;;  %vm9348_vm15 = vmmov %vm9311_vm1 }
 0x5dd   : > { %4316 = vrot.lane.b32.xlu0 %v9328_v57, %s5912_s29  ;;  %v5404_v46 = vpop.eup %5403 }
 0x5de   : > { %v2803_v37 = vpop.xlane.xlu0 %2802  ;;  %v2838_v60 = vmul.f32 %v5404_v46, %v7933_v15 }
 0x5df   : > { %5405 = vrcp.f32 %v2803_v37 }
 0x5e0   : > { %3579 = vrot.lane.b32.xlu2 %v9343_v42, %s5911_s12 }
 0x5e1   : > { %v2257_v44 = vpop.f32.mrf.mxu2  ;;  %v3305_v5 = vpop.permute.xlu1 %3304 }
 0x5e2   : > { %2278 = vst.msk [vmem:[#allocation2 + $0x68] sm:$0xff] %vm9311_vm1, %v2257_v44  ;;  %5017 = vmatmul.msk.bf16.gmra.mxu3 %vm9344_vm7, %v3303_v49  ;;  %vm9349_vm7 = vmmov %vm9311_vm1 }
 0x5e5   : > { %v5406_v63 = vpop.eup %5405  ;;  %4314 = vrot.lane.b32.xlu0 %v9345_v17, %s5912_s29 }
 0x5e6   : > { %5013 = vmatmul.msk.bf16.gmra.mxu2 %vm9347_vm14, %v9346_v51  ;;  %v2839_v56 = vmul.f32 %v5406_v63, %v7941_v22  ;;  %vm9350_vm14 = vmmov %vm9311_vm1 }
 0x5e8   : > { %v2849_v27 = vpack.c.bf16 %v2839_v56, %v2838_v60 }
 0x5e9   : > { %v2260_v39 = vpop.f32.mrf.mxu2 }
 0x5ea   : > { %2279 = vst.msk [vmem:[#allocation2 + $0x70] sm:$0xff] %vm9348_vm15, %v2260_v39  ;;  %2909 = vmatmul.bf16.gmra.mxu1 %v2849_v27  ;;  %vm9351_vm15 = vmmov %vm9311_vm1  ;;  %v9360_v27 = vld [vmem:[#allocation54_spill] sm:$0xff] }
 0x5eb   : > { %v2807_v50 = vpop.xlane.xlu2 %2806 }
 0x5ec   : > { %5407 = vrcp.f32 %v2807_v50 }
 0x5ed   : > { %5409 = vrcp.f32 %v2805_v12  ;;  %3589 = vrot.lane.b32.xlu0 %v9345_v17, %s5911_s12  ;;  %v4034_v12 = vpop.permute.xlu1 %4033 }
 0x5f1   : > { %v2262_v19 = vpop.f32.mrf.mxu2  ;;  %v8058_v9 = vpop.permute.xlu0 %3741 }
 0x5f2   : > { %v5408_v3 = vpop.eup %5407  ;;  %2280 = vst.msk [vmem:[#allocation2 + $0x78] sm:$0xff] %vm9311_vm1, %v2262_v19  ;;  %5018 = vmatmul.msk.bf16.gmra.mxu3 %vm9349_vm7, %v3305_v5  ;;  %vm9352_vm7 = vmmov %vm9311_vm1 }
 0x5f3   : > { %v5410_v15 = vpop.eup %5409  ;;  %v4026_v22 = vpop.permute.xlu2 %4025  ;;  %v2841_v40 = vmul.f32 %v5408_v3, %v7951_v25 }
 0x5f4   : > { %v2840_v53 = vmul.f32 %v5410_v15, %v7914_v62 }
 0x5f5   : > { %4306 = vrot.lane.b32.xlu0 %v9337_v52, %s5912_s29 }
 0x5f6   : > { %5030 = vmatmul.msk.bf16.vlgmr.msra.gmra.mxu2 %vm9350_vm14, %v7988_v33  ;;  %v2850_v24 = vpack.c.bf16 %v2841_v40, %v2840_v53  ;;  %vm9353_vm14 = vmmov %vm9311_vm1  ;;  %v9364_v40 = vld [vmem:[#allocation65_spill] sm:$0xff] }
 0x5f9   : > { %v3095_v58 = vpop.f32.mrf.mxu2  ;;  %v8068_v57 = vpop.permute.xlu0 %3743 }
 0x5fa   : > { %3137 = vrot.lane.b32.xlu2 %v3095_v58, %s5913_s1  ;;  %2914 = vmatmul.bf16.gmra.mxu1 %v2850_v24 }
 0x5fb   : > { %v4028_v47 = vpop.permute.xlu2 %4027 }
 0x5fd   : > { %3583 = vrot.lane.b32.xlu0 %v9336_v41, %s5911_s12 }
 0x601   : > { %v3097_v25 = vpop.f32.mrf.mxu2  ;;  %v8073_v55 = vpop.permute.xlu0 %3745 }
 0x603   : > { %v4030_v14 = vpop.permute.xlu2 %4029 }
 0x605   : > { %3577 = vrot.lane.b32.xlu0 %v9341_v13, %s5911_s12  ;;  %v8091_v13 = vpop.f32.mrf.mxu1 }
 0x606   : > { %5031 = vmatmul.msk.bf16.gmra.mxu2 %vm9351_vm15, %v4024_v54  ;;  %vm9354_vm15 = vmmov %vm9311_vm1  ;;  %9356 = vst [vmem:[#allocation77_spill] sm:$0xff] %v8091_v13 }
 0x609   : > { %v3100_v62 = vpop.f32.mrf.mxu2  ;;  %v3307_v33 = vpop.permute.xlu0 %3306 }
 0x60a   : > { %3145 = vrot.lane.b32.xlu1 %v3100_v62, %s5917_s17  ;;  %5019 = vmatmul.msk.bf16.gmra.mxu3 %vm9311_vm1, %v3307_v33 }
 0x60b   : > { %v4032_v36 = vpop.permute.xlu2 %4031 }
 0x60d   : > { %3141 = vrot.lane.b32.xlu0 %v3097_v25, %s5915_s24  ;;  %v8097_v54 = vpop.f32.mrf.mxu1 }
 0x60e   : > { %9357 = vst [vmem:[#allocation56_spill] sm:$0xff] %v8097_v54 }
 0x611   : > { %v3102_v4 = vpop.f32.mrf.mxu2 }
 0x612   : > { %3149 = vrot.lane.b32.xlu1 %v3102_v4, %s5919_s15  ;;  %v9368_v4 = vld [vmem:[#allocation69_spill] sm:$0xff] }
 0x613   : > { %v3309_v35 = vpop.permute.xlu2 %3308 }
 0x614   : > { %v2809_v41 = vpop.xlane.xlu1 %2808 }
 0x615   : > { %5411 = vrcp.f32 %v2809_v41  ;;  %v8101_v51 = vpop.f32.mrf.mxu1 }
 0x616   : > { %5032 = vmatmul.msk.bf16.gmra.mxu2 %vm9352_vm7, %v4026_v22  ;;  %vm9355_vm7 = vmmov %vm9311_vm1  ;;  %9359 = vst [vmem:[#allocation87_spill] sm:$0xff] %v8101_v51 }
 0x619   : > { %v3105_v45 = vpop.f32.mrf.mxu2 }
 0x61a   : > { %3153 = vrot.lane.b32.xlu2 %v3105_v45, %s5921_s28  ;;  %5020 = vmatmul.msk.bf16.gmra.mxu3 %vm9353_vm14, %v3309_v35  ;;  %vm9358_vm14 = vmmov %vm9311_vm1 }
 0x61b   : > { %v3592_v48 = vpop.permute.xlu2 %3591  ;;  %v5412_v38 = vpop.eup %5411 }
 0x61c   : > { %3601 = vmatpush.bf16.msrb.mxu0 %v3592_v48  ;;  %v2842_v37 = vmul.f32 %v5412_v38, %v7983_v32 }
 0x61d   : > { %v8106_v39 = vpop.f32.mrf.mxu1 }
 0x61e   : > { %9362 = vst [vmem:[#allocation41_spill] sm:$0xff] %v8106_v39 }
 0x621   : > { %v3107_v6 = vpop.f32.mrf.mxu2 }
 0x622   : > { %3157 = vrot.lane.b32.xlu2 %v3107_v6, %s5922_s13 }
 0x623   : > { %v4311_v56 = vpop.permute.xlu2 %4310 }
 0x625   : > { %v8110_v15 = vpop.f32.mrf.mxu1 }
 0x626   : > { %5033 = vmatmul.msk.bf16.gmra.mxu2 %vm9354_vm15, %v4028_v47  ;;  %vm9361_vm15 = vmmov %vm9311_vm1  ;;  %9363 = vst [vmem:[#allocation75_spill] sm:$0xff] %v8110_v15 }
 0x629   : > { %v3110_v52 = vpop.f32.mrf.mxu2 }
 0x62a   : > { %3161 = vrot.lane.b32.xlu0 %v3110_v52, %s5923_s11 }
 0x62b   : > { %v3588_v19 = vpop.permute.xlu2 %3587 }
 0x62c   : > { %v3311_v61 = vpop.permute.xlu1 %3310 }
 0x62d   : > { %5021 = vmatmul.msk.bf16.gmra.mxu3 %vm9311_vm1, %v3311_v61  ;;  %v8116_v47 = vpop.f32.mrf.mxu1 }
 0x62e   : > { %9367 = vst [vmem:[#allocation76_spill] sm:$0xff] %v8116_v47 }
 0x631   : > { %v3112_v30 = vpop.f32.mrf.mxu2 }
 0x632   : > { %3165 = vrot.lane.b32.xlu2 %v3112_v30, %s5924_s5 }
 0x633   : > { %v3582_v58 = vpop.permute.xlu2 %3581 }
 0x634   : > { %v2811_v16 = vpop.xlane.xlu0 %2810  ;;  %v4313_v60 = vpop.permute.xlu1 %4312 }
 0x635   : > { %5413 = vrcp.f32 %v2811_v16  ;;  %v8121_v35 = vpop.f32.mrf.mxu1 }
 0x636   : > { %5034 = vmatmul.msk.bf16.gmra.mxu2 %vm9355_vm7, %v4030_v14  ;;  %vm9365_vm7 = vmmov %vm9311_vm1  ;;  %9370 = vst [vmem:[#allocation72_spill] sm:$0xff] %v8121_v35 }
 0x639   : > { %v3115_v28 = vpop.f32.mrf.mxu2 }
 0x63a   : > { %3169 = vrot.lane.b32.xlu1 %v3115_v28, %s5925_s26 }
 0x63b   : > { %v5414_v42 = vpop.eup %5413  ;;  %v4303_v33 = vpop.permute.xlu2 %4302 }
 0x63c   : > { %v2843_v49 = vmul.f32 %v5414_v42, %v8011_v20  ;;  %v4309_v5 = vpop.permute.xlu1 %4308 }
 0x63d   : > { %v8123_v48 = vpop.f32.mrf.mxu1 }
 0x63e   : > { %v2851_v44 = vpack.c.bf16 %v2843_v49, %v2842_v37  ;;  %9371 = vst [vmem:[#allocation74_spill] sm:$0xff] %v8123_v48 }
 0x640   : > { %2919 = vmatmul.bf16.gmra.mxu1 %v2851_v44 }
 0x641   : > { %v3117_v46 = vpop.f32.mrf.mxu2 }
 0x642   : > { %3173 = vrot.lane.b32.xlu2 %v3117_v46, %s5926_s16 }
 0x643   : > { %v3580_v45 = vpop.permute.xlu2 %3579 }
 0x644   : > { %v3586_v24 = vpop.permute.xlu1 %3585 }
 0x645   : > { %v8129_v41 = vpop.f32.mrf.mxu1 }
 0x646   : > { %5035 = vmatmul.msk.bf16.gmra.mxu2 %vm9358_vm14, %v4032_v36  ;;  %vm9366_vm14 = vmmov %vm9311_vm1  ;;  %9373 = vst [vmem:[#allocation73_spill] sm:$0xff] %v8129_v41 }
 0x647   : > { %v4036_v63 = vpop.permute.xlu0 %4035 }
 0x649   : > { %v3120_v17 = vpop.f32.mrf.mxu2 }
 0x64a   : > { %3177 = vrot.lane.b32.xlu1 %v3120_v17, %s5927_s4 }
 0x64c   : > { %v4305_v62 = vpop.permute.xlu1 %4304 }
 0x64d   : > { %v8133_v61 = vpop.f32.mrf.mxu1 }
 0x64e   : > { %9374 = vst [vmem:[#allocation71_spill] sm:$0xff] %v8133_v61 }
 0x64f   : > { %v4317_v32 = vpop.permute.xlu0 %4316 }
 0x650   : > { %5022 = vmatmul.msk.bf16.vlgmr.msra.gmra.mxu1 %vm9361_vm15, %v9360_v27  ;;  %4326 = vmatpush.bf16.msra.mxu3 %v4317_v32  ;;  %vm9369_vm15 = vmmov %vm9311_vm1 }
 0x651   : > { %v3122_v20 = vpop.f32.mrf.mxu2 }
 0x652   : > { %3181 = vrot.lane.b32.xlu2 %v3122_v20, %s5928_s10 }
 0x654   : > { %v8127_v6 = vpop.permute.xlu2 %3137 }
 0x655   : > { %9372 = vst [vmem:[#allocation38_spill] sm:$0xff] %v8127_v6 }
 0x656   : > { %5036 = vmatmul.msk.bf16.gmra.mxu2 %vm9311_vm1, %v4034_v12 }
 0x657   : > { %v4315_v50 = vpop.permute.xlu0 %4314 }
 0x658   : > { %4327 = vmatpush.bf16.msra.mxu3 %v4315_v50 }
 0x659   : > { %v3125_v3 = vpop.f32.mrf.mxu2 }
 0x65a   : > { %3185 = vrot.lane.b32.xlu2 %v3125_v3, %s5914_s25 }
 0x65c   : > { %4328 = vmatpush.bf16.msra.mxu3 %v4313_v60 }
 0x65f   : > { %v3590_v22 = vpop.permute.xlu0 %3589 }
 0x660   : > { %3602 = vmatpush.bf16.msrb.mxu0 %v3590_v22  ;;  %5023 = vmatmul.msk.bf16.gmra.mxu1 %vm9365_vm7, %v9364_v40  ;;  %vm9375_vm7 = vmmov %vm9311_vm1 }
 0x661   : > { %4329 = vmatpush.bf16.msra.mxu3 %v4311_v56  ;;  %v3127_v53 = vpop.f32.mrf.mxu2 }
 0x662   : > { %3189 = vrot.lane.b32.xlu2 %v3127_v53, %s5916_s14 }
 0x664   : > { %3603 = vmatpush.bf16.msrb.mxu0 %v3588_v19 }
 0x665   : > { %4330 = vmatpush.bf16.msra.mxu3 %v4309_v5 }
 0x666   : > { %5037 = vmatmul.msk.bf16.gmra.mxu2 %vm9366_vm14, %v4036_v63  ;;  %vm9377_vm14 = vmmov %vm9311_vm1 }
 0x667   : > { %v4307_v25 = vpop.permute.xlu0 %4306  ;;  %v8141_v38 = vpop.f32.mrf.mxu1 }
 0x668   : > { %3604 = vmatpush.bf16.msrb.mxu0 %v3586_v24  ;;  %9376 = vst [vmem:[#allocation68_spill] sm:$0xff] %v8141_v38 }
 0x669   : > { %4331 = vmatpush.bf16.msra.mxu3 %v4307_v25  ;;  %v3130_v14 = vpop.f32.mrf.mxu2 }
 0x66a   : > { %3193 = vrot.lane.b32.xlu0 %v3130_v14, %s5918_s18 }
 0x66d   : > { %4332 = vmatpush.bf16.msra.mxu3 %v4305_v62 }
 0x66f   : > { %v3584_v36 = vpop.permute.xlu0 %3583  ;;  %v8157_v44 = vpop.f32.mrf.mxu1 }
 0x670   : > { %3605 = vmatpush.bf16.msrb.mxu0 %v3584_v36  ;;  %5024 = vmatmul.msk.bf16.gmra.mxu1 %vm9369_vm15, %v9368_v4  ;;  %9378 = vst [vmem:[#allocation66_spill] sm:$0xff] %v8157_v44  ;;  %vm9379_vm15 = vcmp.le.s32.totalorder %v7118_v34, %v7322_v1  ;;  %v3385_v4 = vpop.f32.mrf.mxu3 }
 0x671   : > { %4333 = vmatpush.bf16.msra.mxu3 %v4303_v33 }
 0x674   : > { %3606 = vmatpush.bf16.msrb.mxu0 %v3582_v58  ;;  %v8131_v52 = vpop.permute.xlu2 %3153 }
 0x677   : > { %v3578_v12 = vpop.permute.xlu0 %3577  ;;  %v8169_v60 = vpop.f32.mrf.mxu1 }
 0x678   : > { %3607 = vmatpush.bf16.msrb.mxu0 %v3580_v45  ;;  %9380 = vst [vmem:[#allocation31_spill] sm:$0xff] %v8169_v60 }
 0x67c   : > { %3608 = vmatpush.bf16.msrb.mxu0 %v3578_v12  ;;  %v8137_v30 = vpop.permute.xlu2 %3157  ;;  %v8165_v63 = vpop.permute.xlu1 %3145 }
 0x67d   : > { %v9134_v42 = vrot.slane %v8137_v30, 1 }
 0x67f   : > { %v8139_v16 = vpop.permute.xlu0 %3141  ;;  %v8179_v20 = vpop.f32.mrf.mxu1 }
 0x680   : > { %5025 = vmatmul.msk.bf16.gmra.mxu1 %vm9311_vm1, %v7960_v21  ;;  %9381 = vst [vmem:[#allocation92_spill] sm:$0xff] %v8179_v20 }
 0x684   : > { %v8171_v56 = vpop.permute.xlu1 %3149 }
 0x68c   : > { %v8143_v28 = vpop.permute.xlu2 %3165 }
 0x690   : > { %5026 = vmatmul.msk.bf16.gmra.mxu1 %vm9375_vm7, %v8026_v10  ;;  %vm9383_vm7 = vmmov %vm9311_vm1 }
 0x69c   : > { %v8145_v21 = vpop.permute.xlu0 %3161  ;;  %v8167_v17 = vpop.permute.xlu2 %3173 }
 0x69d   : > { %v3226_v37 = vrot.slane %v8145_v21, 1  ;;  %v3232_v40 = vrot.slane %v8167_v17, 1 }
 0x69f   : > { %v3227_v49 = vsel %vm1757_vm3, %v9134_v42, %v3226_v37 }
 0x6a0   : > { %5027 = vmatmul.msk.bf16.gmra.mxu1 %vm9377_vm14, %v8058_v9  ;;  %v3269_v10 = vsel %vm1488_vm6, 0.0, %v3227_v49  ;;  %vm9384_vm14 = vcmp.eq.s32.totalorder %v7118_v34, %v7409_v29 }
 0x6a1   : > { %v8163_v46 = vsel %vm9379_vm15, %v8137_v30, %v3269_v10  ;;  %vm9385_vm15 = vcmp.le.s32.totalorder %v7118_v34, %v7401_v18 }
 0x6ac   : > { %v3182_v9 = vpop.permute.xlu2 %3181  ;;  %v8175_v32 = vpop.permute.xlu1 %3169 }
 0x6ad   : > { %v3236_v50 = vrot.slane %v3182_v9, 1  ;;  %v3230_v44 = vrot.slane %v8175_v32, 1 }
 0x6b0   : > { %5028 = vmatmul.msk.bf16.gmra.mxu1 %vm9311_vm1, %v8068_v57 }
 0x6b4   : > { %v8177_v27 = vpop.permute.xlu2 %3185 }
 0x6b5   : > { %v9133_v5 = vrot.slane %v8177_v27, 1 }
 0x6b7   : > { %v3239_v19 = vsel %vm1757_vm3, %v3236_v50, %v9133_v5 }
 0x6b8   : > { %v3275_v3 = vsel %vm1494_vm5, 0.0, %v3239_v19 }
 0x6b9   : > { %v8191_v57 = vsel %vm1462_vm4, %v3182_v9, %v3275_v3 }
 0x6bc   : > { %v8193_v22 = vpop.permute.xlu1 %3177 }
 0x6bd   : > { %v3234_v53 = vrot.slane %v8193_v22, 1  ;;  %v8197_v24 = vpop.f32.mrf.mxu1 }
 0x6be   : > { %9382 = vst [vmem:[#allocation44_spill] sm:$0xff] %v8197_v24 }
 0x6bf   : > { %v3235_v58 = vsel %vm1757_vm3, %v3232_v40, %v3234_v53  ;;  %v8201_v25 = vsel %vm1757_vm3, %v3234_v53, %v3236_v50  ;;  %v9135_v50 = vrot.slane %v8127_v6, 1  ;;  %v9387_v53 = vld [vmem:[#allocation86_spill] sm:$0xff] }
 0x6c0   : > { %5029 = vmatmul.msk.bf16.gmra.mxu1 %vm9383_vm7, %v8073_v55  ;;  %v3273_v14 = vsel %vm9384_vm14, 0.0, %v3235_v58  ;;  %v3387_v55 = vpop.f32.mrf.mxu3  ;;  %vm9388_vm1 = vcmp.eq.s32.totalorder %v7118_v34, %v9387_v53 }
 0x6c1   : > { %v8212_v62 = vsel %vm9385_vm15, %v8167_v17, %v3273_v14  ;;  %v3216_v17 = vrot.slane %v8139_v16, 1  ;;  %v3218_v14 = vrot.slane %v8165_v63, 1 }
 0x6c3   : > { %v3217_v3 = vsel %vm1757_vm3, %v9135_v50, %v3216_v17  ;;  %v9391_v50 = vld [vmem:[#allocation53_spill] sm:$0xff] }
 0x6c4   : > { %v3264_v58 = vsel %vm9388_vm1, 0.0, %v3217_v3  ;;  %vm9392_vm14 = vcmp.eq.s32.totalorder %v7118_v34, %v9391_v50  ;;  %v3220_v3 = vrot.slane %v8171_v56, 1  ;;  %vm9395_vm1 = vcmp.eq.s32.totalorder %v7118_v34, %v7343_v8 }
 0x6c5   : > { %v8214_v33 = vpop.f32.mrf.mxu1 }
 0x6c6   : > { %9386 = vst [vmem:[#allocation42_spill] sm:$0xff] %v8214_v33  ;;  %v3228_v33 = vrot.slane %v8143_v28, 1 }
 0x6c8   : > { %v3390_v49 = vpop.f32.mrf.mxu3 }
 0x6cd   : > { %v3820_v36 = vpop.f32.mrf.mxu1 }
 0x6ce   : > { %3862 = vrot.lane.b32.xlu2 %v3820_v36, %s5913_s1  ;;  %v9389_v36 = vld [vmem:[#allocation52_spill] sm:$0xff] }
 0x6cf   : > { %vm9390_vm7 = vcmp.le.s32.totalorder %v7118_v34, %v9389_v36 }
 0x6d0   : > { %v3392_v9 = vpop.f32.mrf.mxu3 }
 0x6d5   : > { %v3822_v45 = vpop.f32.mrf.mxu1 }
 0x6d6   : > { %3866 = vrot.lane.b32.xlu0 %v3822_v45, %s5915_s24  ;;  %v3280_v45 = vsel %vm9390_vm7, %v8127_v6, %v3264_v58  ;;  %v9393_v58 = vld [vmem:[#allocation57_spill] sm:$0xff]  ;;  %vm9397_vm7 = vcmp.le.s32.totalorder %v7118_v34, %v7333_v2  ;;  %s8907_s24 = scalar_lea.vmem [#allocation18], %s6230_s27  ;;  %s5119_s27 = sshll.u32 %s6032_s22, 7 }
 0x6d7   : > { %v8236_v42 = vadd.f32 %v3385_v4, %v3280_v45  ;;  %vm9394_vm15 = vcmp.le.s32.totalorder %v7118_v34, %v9393_v58  ;;  %v3221_v4 = vsel %vm1757_vm3, %v3218_v14, %v3220_v3 }
 0x6d8   : > { %v3395_v19 = vpop.f32.mrf.mxu3 }
 0x6dd   : > { %v3825_v12 = vpop.f32.mrf.mxu1 }
 0x6de   : > { %3870 = vrot.lane.b32.xlu1 %v3825_v12, %s5917_s17  ;;  %s9473_s17 = sld [smem:[#allocation102_spill]] }
 0x6e0   : > { %v8234_v5 = vpop.f32.mrf.mxu3 }
 0x6e5   : > { %v3827_v10 = vpop.f32.mrf.mxu1 }
 0x6e6   : > { %3874 = vrot.lane.b32.xlu2 %v3827_v10, %s5919_s15  ;;  %v3219_v10 = vsel %vm1757_vm3, %v3216_v17, %v3218_v14  ;;  %v3229_v17 = vsel %vm1757_vm3, %v3226_v37, %v3228_v33  ;;  %v9398_v14 = vrot.slane %v8137_v30, 1  ;;  %s4626_s15 = sshll.u32 %s8907_s24, 4  ;;  %s4627_s15 = int_to_ptr.vmem [resolvable:$true] %s4626_s15 }
 0x6e7   : > { %v3265_v24 = vsel %vm9392_vm14, 0.0, %v3219_v10  ;;  %v3270_v10 = vsel %vm9395_vm1, 0.0, %v3229_v17  ;;  %vm9408_vm1 = vcmp.eq.s32.totalorder %v7118_v34, %v9391_v50 }
 0x6e8   : > { %v3281_v20 = vsel %vm9394_vm15, %v8139_v16, %v3265_v24  ;;  %v3400_v38 = vpop.f32.mrf.mxu3  ;;  %v3266_v16 = vsel %vm1485_vm8, 0.0, %v3221_v4  ;;  %v3286_v37 = vsel %vm9397_vm7, %v8145_v21, %v3270_v10  ;;  %vm9409_vm7 = vcmp.le.s32.totalorder %v7118_v34, %v9393_v58 }
 0x6e9   : > { %v8250_v45 = vadd.f32 %v3387_v55, %v3281_v20  ;;  %v3222_v20 = vrot.slane %v8131_v52, 1  ;;  %v3282_v24 = vsel %vm1453_vm9, %v8165_v63, %v3266_v16  ;;  %v3231_v55 = vsel %vm1757_vm3, %v3228_v33, %v3230_v44 }
 0x6ea   : > { %v8273_v41 = vadd.f32 %v3400_v38, %v3286_v37  ;;  %v8275_v4 = vadd.f32 %v3390_v49, %v3282_v24  ;;  %v3271_v10 = vsel %vm1490_vm10, 0.0, %v3231_v55  ;;  %v3233_v24 = vsel %vm1757_vm3, %v3230_v44, %v3232_v40 }
 0x6eb   : > { %v3225_v17 = vsel %vm1757_vm3, %v3222_v20, %v9398_v14  ;;  %v3287_v49 = vsel %vm1458_vm0, %v8143_v28, %v3271_v10  ;;  %v9426_v28 = vld [vmem:[#allocation80_spill] sm:$0xff] }
 0x6ec   : > { %v3268_v33 = vsel %vm1487_vm13, 0.0, %v3225_v17  ;;  %v3272_v17 = vsel %vm1491_vm12, 0.0, %v3233_v24 }
 0x6ed   : > { %v3830_v12 = vpop.f32.mrf.mxu1  ;;  %v3284_v37 = vsel %vm1455_vm11, %v8131_v52, %v3268_v33  ;;  %v3288_v52 = vsel %vm1459_vm2, %v8175_v32, %v3272_v17  ;;  %v3223_v33 = vsel %vm1757_vm3, %v3220_v3, %v3222_v20  ;;  %v9406_v32 = vld [vmem:[#allocation82_spill] sm:$0xff]  ;;  %v8328_v3 = vpop.permute.xlu0 %3193 }
 0x6ee   : > { %v8297_v14 = vadd.f32 %v3395_v19, %v3284_v37  ;;  %vm9407_vm15 = vcmp.le.s32.totalorder %v7118_v34, %v9406_v32 }
 0x6f0   : > { %v3402_v30 = vpop.f32.mrf.mxu3 }
 0x6f1   : > { %v8295_v55 = vadd.f32 %v3402_v30, %v3287_v49  ;;  %v9404_v30 = vld [vmem:[#allocation83_spill] sm:$0xff] }
 0x6f2   : > { %vm9405_vm14 = vcmp.eq.s32.totalorder %v7118_v34, %v9404_v30 }
 0x6f3   : > { %v3267_v49 = vsel %vm9405_vm14, 0.0, %v3223_v33 }
 0x6f4   : > { %v3283_v24 = vsel %vm9407_vm15, %v8171_v56, %v3267_v49 }
 0x6f5   : > { %v3832_v60 = vpop.f32.mrf.mxu1  ;;  %v8321_v17 = vadd.f32 %v3392_v9, %v3283_v24 }
 0x6f8   : > { %v3405_v40 = vpop.f32.mrf.mxu3 }
 0x6fd   : > { %v3835_v48 = vpop.f32.mrf.mxu1 }
 0x700   : > { %3425 = vmax.xlane.f32.xlu0 %v8236_v42 }
 0x705   : > { %v3837_v44 = vpop.f32.mrf.mxu1 }
 0x708   : > { %3427 = vmax.xlane.f32.xlu1 %v8250_v45 }
 0x70d   : > { %v3840_v19 = vpop.f32.mrf.mxu1 }
 0x70f   : > { %3437 = vmax.xlane.f32.xlu2 %v8273_v41 }
 0x710   : > { %3429 = vmax.xlane.f32.xlu1 %v8275_v4 }
 0x714   : > { %3878 = vrot.lane.b32.xlu0 %v3830_v12, %s5921_s28  ;;  %v8308_v12 = vadd.f32 %v3405_v40, %v3288_v52  ;;  %v8323_v52 = vpop.permute.xlu2 %3189  ;;  %s4614_s28 = scalar_lea.sflag [#allocation5], %s6227_s23 }
 0x715   : > { %v3842_v10 = vpop.f32.mrf.mxu1 }
 0x717   : > { %3439 = vmax.xlane.f32.xlu2 %v8295_v55 }
 0x718   : > { %3433 = vmax.xlane.f32.xlu1 %v8297_v14 }
 0x71d   : > { %v3845_v37 = vpop.f32.mrf.mxu1 }
 0x71f   : > { %3441 = vmax.xlane.f32.xlu2 %v8308_v12 }
 0x725   : > { %v3847_v50 = vpop.f32.mrf.mxu1 }
 0x728   : > { %v8330_v20 = vpop.permute.xlu2 %3862 }
 0x731   : > { %3886 = vrot.lane.b32.xlu1 %v3835_v48, %s5923_s11  ;;  %v8326_v48 = vpop.f32.mrf.mxu2 }
 0x739   : > { %3902 = vrot.lane.b32.xlu1 %v3845_v37, %s5927_s4  ;;  %v4110_v40 = vpop.f32.mrf.mxu2 }
 0x73e   : > { %3431 = vmax.xlane.f32.xlu0 %v8321_v17 }
 0x740   : > { %v3875_v33 = vpop.permute.xlu2 %3874 }
 0x741   : > { %v3945_v15 = vrot.slane %v3875_v33, 1  ;;  %v4112_v39 = vpop.f32.mrf.mxu2 }
 0x748   : > { %v3867_v47 = vpop.permute.xlu0 %3866 }
 0x749   : > { %v3941_v56 = vrot.slane %v3867_v47, 1 }
 0x750   : > { %v3871_v35 = vpop.permute.xlu1 %3870 }
 0x751   : > { %v3943_v49 = vrot.slane %v3871_v35, 1 }
 0x752   : > { %3882 = vrot.lane.b32.xlu0 %v3832_v60, %s5922_s13 }
 0x753   : > { %v3944_v9 = vsel %vm1757_vm3, %v3941_v56, %v3943_v49  ;;  %v3946_v37 = vsel %vm1757_vm3, %v3943_v49, %v3945_v15  ;;  %v3407_v49 = vpop.f32.mrf.mxu3 }
 0x754   : > { %v3991_v24 = vsel %vm1485_vm8, 0.0, %v3946_v37  ;;  %v3990_v51 = vsel %vm9408_vm1, 0.0, %v3944_v9  ;;  %v8351_v61 = vadd.f32 %v3407_v49, %v8212_v62  ;;  %v8356_v9 = vadd.f32 %v8234_v5, %v8163_v46  ;;  %vm9411_vm8 = vmmov %vm9405_vm14 }
 0x755   : > { %v4007_v54 = vsel %vm1453_vm9, %v3871_v35, %v3991_v24  ;;  %v4006_v60 = vsel %vm9409_vm7, %v3867_v47, %v3990_v51  ;;  %v3850_v51 = vpop.f32.mrf.mxu1  ;;  %vm9412_vm9 = vmmov %vm9407_vm15  ;;  %vm9413_vm14 = vcmp.eq.s32.totalorder %v7118_v34, %v9387_v53  ;;  %vm9414_vm15 = vcmp.le.s32.totalorder %v7118_v34, %v9389_v36 }
 0x756   : > { %v8347_v13 = vadd.f32 %v4112_v39, %v4006_v60  ;;  %9410 = vst [vmem:[#allocation34_spill] sm:$0xff] %v8351_v61  ;;  %v4115_v39 = vpop.f32.mrf.mxu2  ;;  %vm9415_vm1 = vcmp.le.s32.totalorder %v7118_v34, %v7322_v1  ;;  %vm9420_vm7 = vcmp.le.s32.totalorder %v7118_v34, %v9277_v23 }
 0x758   : > { %4152 = vmax.xlane.f32.xlu2 %v8347_v13 }
 0x75d   : > { %v3852_v62 = vpop.f32.mrf.mxu1 }
 0x75e   : > { %v4117_v46 = vpop.f32.mrf.mxu2 }
 0x763   : > { %3443 = vmax.xlane.f32.xlu1 %v8351_v61  ;;  %v9421_v61 = vld [vmem:[#allocation91_spill] sm:$0xff] }
 0x765   : > { %v3855_v60 = vpop.f32.mrf.mxu1 }
 0x76d   : > { %v3857_v30 = vpop.f32.mrf.mxu1 }
 0x773   : > { %v3426_v26 = vpop.xlane.xlu0 %3425 }
 0x77c   : > { %3435 = vmax.xlane.f32.xlu0 %v8356_v9  ;;  %3906 = vrot.lane.b32.xlu1 %v3847_v50, %s5928_s10 }
 0x784   : > { %3910 = vrot.lane.b32.xlu1 %v3850_v51, %s5914_s25  ;;  %s9471_s25 = sld [smem:[#allocation99_spill]] }
 0x786   : > { %v3879_v47 = vpop.permute.xlu0 %3878 }
 0x787   : > { %v3947_v35 = vrot.slane %v3879_v47, 1 }
 0x789   : > { %v3948_v58 = vsel %vm1757_vm3, %v3945_v15, %v3947_v35  ;;  %v3428_v15 = vpop.xlane.xlu1 %3427 }
 0x78a   : > { %v3992_v37 = vsel %vm9411_vm8, 0.0, %v3948_v58  ;;  %vm9422_vm8 = vcmp.eq.s32.totalorder %v7118_v34, %v9421_v61 }
 0x78b   : > { %v4008_v5 = vsel %vm9412_vm9, %v3875_v33, %v3992_v37  ;;  %v9136_v33 = vrot.slane %v8330_v20, 1  ;;  %vm9425_vm9 = vcmp.le.s32.totalorder %v7118_v34, %v7401_v18 }
 0x78c   : > { %3914 = vrot.lane.b32.xlu1 %v3852_v62, %s5916_s14  ;;  %v8369_v24 = vadd.f32 %v4117_v46, %v4008_v5 }
 0x78d   : > { %v3942_v49 = vsel %vm1757_vm3, %v9136_v33, %v3941_v56  ;;  %v4120_v56 = vpop.f32.mrf.mxu2 }
 0x78e   : > { %4156 = vmax.xlane.f32.xlu2 %v8369_v24 }
 0x790   : > { %3890 = vrot.lane.b32.xlu0 %v3837_v44, %s5924_s5  ;;  %v3989_v44 = vsel %vm9413_vm14, 0.0, %v3942_v49  ;;  %v3458_v49 = vsub.f32 %v8250_v45, %v3428_v15  ;;  %vm9430_vm14 = vmmov %vm9422_vm8 }
 0x791   : > { %v8377_v32 = vpop.xlane.xlu1 %3429 }
 0x794   : > { %3918 = vrot.lane.b32.xlu1 %v3855_v60, %s5918_s18  ;;  %s4625_s18 = scalar_lea.hbm %s9473_s17, %s5119_s27 }
 0x798   : > { %3894 = vrot.lane.b32.xlu0 %v3840_v19, %s5925_s26  ;;  %v3457_v19 = vsub.f32 %v8236_v42, %v3426_v26  ;;  %s5833_s26 = scalar_lea.hbm %s9473_s17, 256 }
 0x799   : > { %v8391_v50 = vpop.xlane.xlu1 %3433 }
 0x79a   : > { %v3473_v51 = vmul.f32 1.442695, %v3457_v19  ;;  %v8412_v19 = vadd.f32 %v4115_v39, %v4007_v54 }
 0x79c   : > { %5415 = vpow2.f32 %v3473_v51  ;;  %v8434_v51 = vpop.xlane.xlu2 %3437 }
 0x7a0   : > { %3898 = vrot.lane.b32.xlu0 %v3842_v10, %s5926_s16  ;;  %v4005_v10 = vsel %vm9414_vm15, %v8330_v20, %v3989_v44  ;;  %v3475_v44 = vmul.f32 1.442695, %v3458_v49 }
 0x7a1   : > { %v8395_v58 = vadd.f32 %v4110_v40, %v4005_v10  ;;  %v4122_v40 = vpop.f32.mrf.mxu2 }
 0x7a2   : > { %v8398_v46 = vpop.eup %5415  ;;  %5417 = vpow2.f32 %v3475_v44 }
 0x7a3   : > { %v3887_v53 = vpop.permute.xlu1 %3886 }
 0x7a4   : > { %v3951_v42 = vrot.slane %v3887_v53, 1  ;;  %v8442_v16 = vpop.xlane.xlu2 %3439 }
 0x7a8   : > { %3922 = vrot.lane.b32.xlu0 %v3857_v30, %s5920_s30  ;;  %v8416_v10 = vpop.eup %5417 }
 0x7a9   : > { %v4125_v63 = vpop.f32.mrf.mxu2 }
 0x7ab   : > { %v8425_v15 = vpop.permute.xlu1 %3902 }
 0x7ac   : > { %v8454_v33 = vpop.xlane.xlu2 %3441  ;;  %v3959_v21 = vrot.slane %v8425_v15, 1 }
 0x7b1   : > { %v8393_v62 = vpop.xlane.xlu0 %3431 }
 0x7be   : > { %4150 = vmax.xlane.f32.xlu1 %v8395_v58 }
 0x7c4   : > { %v3883_v37 = vpop.permute.xlu0 %3882 }
 0x7c5   : > { %v3949_v26 = vrot.slane %v3883_v37, 1 }
 0x7c6   : > { %3505 = vadd.xlane.f32.xlu1 %v8398_v46 }
 0x7c7   : > { %v3952_v36 = vsel %vm1757_vm3, %v3949_v26, %v3951_v42  ;;  %v3950_v59 = vsel %vm1757_vm3, %v3947_v35, %v3949_v26 }
 0x7c8   : > { %v3994_v5 = vsel %vm1488_vm6, 0.0, %v3952_v36  ;;  %v3993_v1 = vsel %vm1487_vm13, 0.0, %v3950_v59  ;;  %vm9417_vm6 = vcmp.eq.s32.totalorder %v7118_v34, %v7343_v8  ;;  %vm9419_vm13 = vcmp.eq.s32.totalorder %v7118_v34, %v9275_v0 }
 0x7c9   : > { %v4010_v60 = vsel %vm9415_vm1, %v3883_v37, %v3994_v5  ;;  %v4009_v45 = vsel %vm1455_vm11, %v3879_v47, %v3993_v1  ;;  %vm9418_vm11 = vcmp.le.s32.totalorder %v7118_v34, %v7333_v2  ;;  %v3464_v0 = vsub.f32 %v8295_v55, %v8442_v16 }
 0x7ca   : > { %v8408_v30 = vadd.f32 %v4122_v40, %v4010_v60  ;;  %v8427_v54 = vadd.f32 %v4120_v56, %v4009_v45  ;;  %v4127_v56 = vpop.f32.mrf.mxu2 }
 0x7cb   : > { %v3487_v23 = vmul.f32 1.442695, %v3464_v0 }
 0x7cc   : > { %4160 = vmax.xlane.f32.xlu2 %v8408_v30 }
 0x7d2   : > { %4154 = vmax.xlane.f32.xlu0 %v8412_v19 }
 0x7d6   : > { %v8430_v39 = vpop.xlane.xlu1 %3443 }
 0x7d7   : > { %9416 = vst [vmem:[#allocation59_spill] sm:$0xff] %v8430_v39 }
 0x7da   : > { %3507 = vadd.xlane.f32.xlu0 %v8416_v10 }
 0x7e2   : > { %4158 = vmax.xlane.f32.xlu0 %v8427_v54 }
 0x7ee   : > { %v8432_v35 = vpop.permute.xlu1 %3906 }
 0x7ef   : > { %v8438_v26 = vpop.xlane.xlu0 %3435 }
 0x7f6   : > { %v8436_v37 = vpop.permute.xlu1 %3910 }
 0x7fe   : > { %v8440_v36 = vpop.permute.xlu1 %3914 }
 0x7ff   : > { %v9138_v44 = vrot.slane %v8440_v36, 1 }
 0x802   : > { %v3891_v47 = vpop.permute.xlu0 %3890 }
 0x803   : > { %v3953_v5 = vrot.slane %v3891_v47, 1 }
 0x805   : > { %v3954_v40 = vsel %vm1757_vm3, %v3951_v42, %v3953_v5 }
 0x806   : > { %v3919_v60 = vpop.permute.xlu1 %3918  ;;  %v3995_v49 = vsel %vm9417_vm6, 0.0, %v3954_v40 }
 0x807   : > { %v3967_v59 = vrot.slane %v3919_v60, 1  ;;  %v4011_v1 = vsel %vm9418_vm11, %v3887_v53, %v3995_v49  ;;  %v4130_v53 = vpop.f32.mrf.mxu2 }
 0x808   : > { %v8452_v45 = vadd.f32 %v4125_v63, %v4011_v1 }
 0x809   : > { %v3968_v42 = vsel %vm1757_vm3, %v9138_v44, %v3967_v59 }
 0x80a   : > { %v3895_v6 = vpop.permute.xlu0 %3894  ;;  %4162 = vmax.xlane.f32.xlu2 %v8452_v45  ;;  %v4002_v8 = vsel %vm9419_vm13, 0.0, %v3968_v42  ;;  %v4153_v42 = vpop.xlane.xlu2 %4152 }
 0x80b   : > { %v3955_v40 = vrot.slane %v3895_v6, 1  ;;  %v8467_v2 = vsel %vm9420_vm7, %v8440_v36, %v4002_v8  ;;  %v3274_v8 = vsel %vm9422_vm8, 0.0, %v8201_v25  ;;  %v4183_v38 = vsub.f32 %v8347_v13, %v4153_v42 }
 0x80d   : > { %v3956_v63 = vsel %vm1757_vm3, %v3953_v5, %v3955_v40  ;;  %v3461_v5 = vsub.f32 %v8297_v14, %v8391_v50  ;;  %v3410_v50 = vpop.f32.mrf.mxu3 }
 0x80e   : > { %v3996_v49 = vsel %vm1490_vm10, 0.0, %v3956_v63  ;;  %vm9424_vm10 = vcmp.eq.s32.totalorder %v7118_v34, %v7409_v29 }
 0x80f   : > { %v4012_v1 = vsel %vm1458_vm0, %v3891_v47, %v3996_v49  ;;  %vm9423_vm0 = vcmp.le.s32.totalorder %v7118_v34, %v7418_v7  ;;  %v3481_v13 = vmul.f32 1.442695, %v3461_v5 }
 0x810   : > { %v8476_v44 = vadd.f32 %v4127_v56, %v4012_v1  ;;  %v3290_v47 = vsel %vm9423_vm0, %v8193_v22, %v3274_v8  ;;  %v4132_v1 = vpop.f32.mrf.mxu2  ;;  %v4200_v8 = vmul.f32 1.442695, %v4183_v38  ;;  %vm9432_vm15 = vmmov %vm9423_vm0 }
 0x811   : > { %5419 = vpow2.f32 %v3481_v13 }
 0x812   : > { %v3899_v39 = vpop.permute.xlu0 %3898  ;;  %4164 = vmax.xlane.f32.xlu0 %v8476_v44  ;;  %5421 = vpow2.f32 %v4200_v8 }
 0x813   : > { %v3957_v63 = vrot.slane %v3899_v39, 1 }
 0x815   : > { %v3958_v56 = vsel %vm1757_vm3, %v3955_v40, %v3957_v63  ;;  %v3960_v25 = vsel %vm1757_vm3, %v3957_v63, %v3959_v21  ;;  %v8505_v40 = vadd.f32 %v3410_v50, %v3290_v47  ;;  %v3460_v50 = vsub.f32 %v8321_v17, %v8393_v62 }
 0x816   : > { %v3998_v49 = vsel %vm9424_vm10, 0.0, %v3960_v25  ;;  %v3997_v14 = vsel %vm1491_vm12, 0.0, %v3958_v56  ;;  %v3963_v62 = vrot.slane %v8436_v37, 1 }
 0x817   : > { %v4014_v42 = vsel %vm9425_vm9, %v3899_v39, %v3998_v49  ;;  %v4013_v22 = vsel %vm1459_vm2, %v3895_v6, %v3997_v14  ;;  %vm9427_vm2 = vcmp.eq.s32.totalorder %v7118_v34, %v9426_v28  ;;  %v8528_v38 = vpop.eup %5419  ;;  %v3459_v49 = vsub.f32 %v8275_v4, %v8377_v32 }
 0x818   : > { %v8507_v29 = vadd.f32 %v4132_v1, %v4014_v42  ;;  %v8509_v63 = vadd.f32 %v4130_v53, %v4013_v22  ;;  %v9428_v53 = vld [vmem:[#allocation49_spill] sm:$0xff]  ;;  %v8530_v47 = vpop.eup %5421  ;;  %v4135_v1 = vpop.f32.mrf.mxu2  ;;  %v3479_v13 = vmul.f32 1.442695, %v3460_v50  ;;  %v3961_v4 = vrot.slane %v8432_v35, 1  ;;  %vm9452_vm10 = vmmov %vm9427_vm2 }
 0x819   : > { %vm9429_vm12 = vcmp.le.s32.totalorder %v7118_v34, %v9428_v53  ;;  %v3477_v14 = vmul.f32 1.442695, %v3459_v49  ;;  %v9433_v49 = vld [vmem:[#allocation50_spill] sm:$0xff]  ;;  %v3412_v50 = vpop.f32.mrf.mxu3 }
 0x81a   : > { %v8511_v11 = vpop.permute.xlu0 %3922  ;;  %4166 = vmax.xlane.f32.xlu1 %v8509_v63  ;;  %3445 = vmax.xlane.f32.xlu0 %v8505_v40  ;;  %v3962_v8 = vsel %vm1757_vm3, %v3959_v21, %v3961_v4  ;;  %vm9434_vm1 = vcmp.eq.s32.totalorder %v7118_v34, %v9433_v49 }
 0x81b   : > { %v3969_v18 = vrot.slane %v8511_v11, 1  ;;  %4168 = vmax.xlane.f32.xlu2 %v8507_v29  ;;  %vm9440_vm11 = vmmov %vm9434_vm1 }
 0x81d   : > { %v3970_v6 = vsel %vm1757_vm3, %v3967_v59, %v3969_v18 }
 0x81e   : > { %v4003_v39 = vsel %vm9427_vm2, 0.0, %v3970_v6  ;;  %vm2989_vm2 = vcmask 523520  }
 0x81f   : > { %v8526_v5 = vsel %vm9429_vm12, %v3919_v60, %v4003_v39 }
 0x820   : > { %v4137_v17 = vpop.f32.mrf.mxu2 }
 0x822   : > { %3513 = vadd.xlane.f32.xlu0 %v8528_v38 }
 0x823   : > { %4232 = vadd.xlane.f32.xlu2 %v8530_v47 }
 0x831   : > { %v4151_v56 = vpop.xlane.xlu1 %4150 }
 0x832   : > { %v4182_v59 = vsub.f32 %v8395_v58, %v4151_v56  ;;  %v3999_v56 = vsel %vm9430_vm14, 0.0, %v3962_v8  ;;  %v3462_v8 = vsub.f32 %v8356_v9, %v8438_v26  ;;  %v3415_v9 = vpop.f32.mrf.mxu3  ;;  %vm4439_vm14 = vcmask 1048320  }
 0x834   : > { %v4198_v25 = vmul.f32 1.442695, %v4182_v59 }
 0x836   : > { %5423 = vpow2.f32 %v4198_v25  ;;  %v4015_v25 = vsel %vm9432_vm15, %v8425_v15, %v3999_v56 }
 0x837   : > { %5425 = vpow2.f32 %v3477_v14 }
 0x838   : > { %5427 = vpow2.f32 %v3479_v13  ;;  %v8570_v13 = vadd.f32 %v4135_v1, %v4015_v25  ;;  %v8588_v25 = vadd.f32 %v3412_v50, %v8191_v57 }
 0x839   : > { %v3506_v22 = vpop.xlane.xlu1 %3505 }
 0x83b   : > { %3197 = vrot.lane.b32.xlu2 %v8326_v48, %s5920_s30  ;;  %s4628_s30 = sshll.u32 %s4625_s18, 4  ;;  %s4629_s30 = int_to_ptr.hbm [resolvable:$true] %s4628_s30 }
 0x83c   : > { %v8539_v60 = vpop.eup %5423  ;;  %s5827_s13 = sshra.s32 %s4629_s30, 4  ;;  %s5828_s13 = int_to_ptr.hbm [resolvable:$true] %s5827_s13 }
 0x83d   : > { %4230 = vadd.xlane.f32.xlu1 %v8539_v60  ;;  %v8544_v58 = vpop.eup %5425  ;;  %s5829_s22 = scalar_lea.hbm %s5828_s13, 128  ;;  %p5834_p2 = scmp.lt.s32.totalorder %s5828_s13, %s9473_s17 }
 0x83e   : > { %v8550_v6 = vpop.eup %5427  ;;  %p5830_p4 = scmp.ne.s32.totalorder %s5828_s13, %s5829_s22  ;;  %p5835_p10 = scmp.lt.s32.totalorder %s5833_s26, %s5829_s22 }
 0x840   : > { %p5831_p1 = pnand %p5830_p4, %p6103_p7  ;;  %p5836_p13 = por %p5835_p10, %p5834_p2 }
 0x842   : > { %p5832_p11 = pneg %p5831_p1 }
 0x844   : > { %p5837_p8 = pnand %p5836_p13, %p5832_p11 }
 0x845   : > { %v4155_v42 = vpop.xlane.xlu0 %4154  ;;  %3509 = vadd.xlane.f32.xlu1 %v8544_v58 }
 0x846   : > { %v4184_v48 = vsub.f32 %v8412_v19, %v4155_v42  ;;  %v9431_v19 = vrot.slane %v8440_v36, 1  ;;  %v9435_v42 = vld [vmem:[#allocation46_spill] sm:$0xff] }
 0x847   : > { %vm9436_vm6 = vcmp.le.s32.totalorder %v7118_v34, %v9435_v42  ;;  %v3463_v42 = vsub.f32 %v8273_v41, %v8434_v51 }
 0x848   : > { %v4202_v32 = vmul.f32 1.442695, %v4184_v48  ;;  %v3966_v59 = vsel %vm1757_vm3, %v3963_v62, %v9431_v19 }
 0x849   : > { %v4001_v14 = vsel %vm9434_vm1, 0.0, %v3966_v59  ;;  %v3964_v59 = vsel %vm1757_vm3, %v3961_v4, %v3963_v62 }
 0x84a   : > { %5429 = vpow2.f32 %v4202_v32  ;;  %v4017_v48 = vsel %vm9436_vm6, %v8436_v37, %v4001_v14  ;;  %v4157_v37 = vpop.xlane.xlu2 %4156  ;;  %v4000_v26 = vsel %vm1494_vm5, 0.0, %v3964_v59  ;;  %vm9438_vm5 = vmmov %vm9419_vm13 }
 0x84b   : > { %5431 = vrcp.f32 %v3506_v22  ;;  %v4140_v22 = vpop.f32.mrf.mxu2  ;;  %v4185_v62 = vsub.f32 %v8369_v24, %v4157_v37  ;;  %v4016_v57 = vsel %vm1462_vm4, %v8432_v35, %v4000_v26  ;;  %vm9439_vm4 = vmmov %vm9420_vm7  ;;  %v9442_v26 = vrot.slane %v8330_v20, 1 }
 0x84c   : > { %v8582_v56 = vadd.f32 %v4140_v22, %v4017_v48  ;;  %v8612_v48 = vadd.f32 %v4137_v17, %v4016_v57  ;;  %v3417_v17 = vpop.f32.mrf.mxu3  ;;  %vm9441_vm13 = vmmov %vm9436_vm6 }
 0x84d   : > { %v3508_v39 = vpop.xlane.xlu0 %3507  ;;  %3511 = vadd.xlane.f32.xlu1 %v8550_v6 }
 0x84e   : > { %5433 = vrcp.f32 %v3508_v39 }
 0x850   : > { %v8560_v21 = vpop.eup %5429 }
 0x851   : > { %4234 = vadd.xlane.f32.xlu0 %v8560_v21  ;;  %v5432_v61 = vpop.eup %5431 }
 0x852   : > { %v3553_v32 = vmul.f32 %v5432_v61, %v8398_v46  ;;  %v3242_v46 = vrot.slane %v8328_v3, 1  ;;  %v9437_v61 = vrot.slane %v8177_v27, 1  ;;  %v4161_v49 = vpop.xlane.xlu2 %4160 }
 0x853   : > { %v4187_v55 = vsub.f32 %v8408_v30, %v4161_v49  ;;  %v4142_v16 = vpop.f32.mrf.mxu2 }
 0x854   : > { %v5434_v36 = vpop.eup %5433 }
 0x855   : > { %v3554_v7 = vmul.f32 %v5434_v36, %v8416_v10  ;;  %v4159_v15 = vpop.xlane.xlu0 %4158  ;;  %4170 = vmax.xlane.f32.xlu1 %v8570_v13  ;;  %v3483_v10 = vmul.f32 1.442695, %v3462_v8  ;;  %v4204_v36 = vmul.f32 1.442695, %v4185_v62  ;;  %v4208_v22 = vmul.f32 1.442695, %v4187_v55 }
 0x856   : > { %v4186_v1 = vsub.f32 %v8427_v54, %v4159_v15  ;;  %v3240_v54 = vrot.slane %v8323_v52, 1 }
 0x857   : > { %v3569_v39 = vpack.c.bf16 %v3554_v7, %v3553_v32 }
 0x858   : > { %v4206_v19 = vmul.f32 1.442695, %v4186_v1  ;;  %v3243_v4 = vsel %vm1757_vm3, %v3240_v54, %v3242_v46  ;;  %v3241_v43 = vsel %vm1757_vm3, %v9437_v61, %v3240_v54  ;;  %v3485_v1 = vmul.f32 1.442695, %v3463_v42  ;;  %v9449_v42 = vld [vmem:[#allocation38_spill] sm:$0xff] }
 0x859   : > { %4174 = vmax.xlane.f32.xlu0 %v8582_v56  ;;  %3609 = vmatmul.bf16.vlgmr.msrb.gmra.mxu0 %v3569_v39  ;;  %v3277_v50 = vsel %vm9438_vm5, 0.0, %v3243_v4  ;;  %v3276_v35 = vsel %vm9440_vm11, 0.0, %v3241_v43 }
 0x85a   : > { %5435 = vpow2.f32 %v4206_v19  ;;  %v3293_v31 = vsel %vm9439_vm4, %v8323_v52, %v3277_v50  ;;  %v3292_v7 = vsel %vm9441_vm13, %v8177_v27, %v3276_v35  ;;  %v8644_v27 = vadd.f32 %v4142_v16, %v8467_v2  ;;  %v9443_v50 = vld [vmem:[#allocation81_spill] sm:$0xff] }
 0x85b   : > { %5437 = vpow2.f32 %v3483_v10  ;;  %v8627_v32 = vadd.f32 %v3417_v17, %v3293_v31  ;;  %v8634_v52 = vadd.f32 %v3415_v9, %v3292_v7  ;;  %v4145_v9 = vpop.f32.mrf.mxu2  ;;  %vm9444_vm7 = vcmp.eq.s32.totalorder %v7118_v34, %v9443_v50  ;;  %v3420_v7 = vpop.f32.mrf.mxu3 }
 0x85c   : > { %5439 = vpow2.f32 %v4204_v36  ;;  %vm9451_vm0 = vmmov %vm9444_vm7 }
 0x85d   : > { %3447 = vmax.xlane.f32.xlu1 %v8588_v25  ;;  %5441 = vpow2.f32 %v3487_v23 }
 0x85e   : > { %5443 = vpow2.f32 %v4208_v22 }
 0x85f   : > { %5445 = vpow2.f32 %v3485_v1  ;;  %v9450_v1 = vrot.slane %v9449_v42, 1 }
 0x860   : > { %v8603_v14 = vpop.eup %5435 }
 0x861   : > { %4238 = vadd.xlane.f32.xlu0 %v8603_v14  ;;  %v8614_v24 = vpop.eup %5437 }
 0x862   : > { %v8636_v15 = vpop.eup %5439 }
 0x863   : > { %v8641_v8 = vpop.eup %5441 }
 0x864   : > { %4172 = vmax.xlane.f32.xlu2 %v8612_v48  ;;  %v8650_v39 = vpop.eup %5443 }
 0x865   : > { %3515 = vadd.xlane.f32.xlu1 %v8614_v24  ;;  %v8654_v2 = vpop.eup %5445 }
 0x869   : > { %3451 = vmax.xlane.f32.xlu0 %v8627_v32 }
 0x86c   : > { %3449 = vmax.xlane.f32.xlu2 %v8634_v52 }
 0x86d   : > { %4236 = vadd.xlane.f32.xlu1 %v8636_v15 }
 0x874   : > { %3519 = vadd.xlane.f32.xlu2 %v8641_v8 }
 0x875   : > { %4176 = vmax.xlane.f32.xlu1 %v8644_v27 }
 0x87d   : > { %v4163_v19 = vpop.xlane.xlu2 %4162  ;;  %4240 = vadd.xlane.f32.xlu1 %v8650_v39 }
 0x87e   : > { %v4188_v30 = vsub.f32 %v8452_v45, %v4163_v19  ;;  %v3988_v45 = vsel %vm1757_vm3, %v3969_v18, %v9442_v26 }
 0x87f   : > { %v4004_v36 = vsel %vm9444_vm7, 0.0, %v3988_v45 }
 0x880   : > { %v4210_v59 = vmul.f32 1.442695, %v4188_v30 }
 0x882   : > { %5447 = vpow2.f32 %v4210_v59 }
 0x885   : > { %v4165_v10 = vpop.xlane.xlu0 %4164  ;;  %3517 = vadd.xlane.f32.xlu1 %v8654_v2 }
 0x886   : > { %v4189_v37 = vsub.f32 %v8476_v44, %v4165_v10  ;;  %v8669_v44 = vadd.f32 %v4145_v9, %v8526_v5  ;;  %v4147_v5 = vpop.f32.mrf.mxu2  ;;  %v3422_v10 = vpop.f32.mrf.mxu3 }
 0x888   : > { %v8658_v41 = vpop.eup %5447  ;;  %v4212_v51 = vmul.f32 1.442695, %v4189_v37 }
 0x889   : > { %4242 = vadd.xlane.f32.xlu0 %v8658_v41 }
 0x88a   : > { %5449 = vpow2.f32 %v4212_v51 }
 0x88d   : > { %v4167_v54 = vpop.xlane.xlu1 %4166  ;;  %v3446_v51 = vpop.xlane.xlu0 %3445 }
 0x88e   : > { %v4169_v4 = vpop.xlane.xlu2 %4168  ;;  %v4190_v62 = vsub.f32 %v8509_v63, %v4167_v54  ;;  %v3465_v63 = vsub.f32 %v8308_v12, %v8454_v33  ;;  %v9447_v33 = vld [vmem:[#allocation59_spill] sm:$0xff]  ;;  %v3467_v45 = vsub.f32 %v8505_v40, %v3446_v51 }
 0x88f   : > { %v4191_v57 = vsub.f32 %v8507_v29, %v4169_v4  ;;  %v9445_v29 = vld [vmem:[#allocation78_spill] sm:$0xff] }
 0x890   : > { %v8671_v61 = vpop.eup %5449  ;;  %v4214_v43 = vmul.f32 1.442695, %v4190_v62  ;;  %vm9446_vm8 = vcmp.le.s32.totalorder %v7118_v34, %v9445_v29  ;;  %v3489_v35 = vmul.f32 1.442695, %v3465_v63  ;;  %v3493_v28 = vmul.f32 1.442695, %v3467_v45 }
 0x891   : > { %v4216_v20 = vmul.f32 1.442695, %v4191_v57  ;;  %4178 = vmax.xlane.f32.xlu0 %v8669_v44  ;;  %4244 = vadd.xlane.f32.xlu1 %v8671_v61  ;;  %v4020_v18 = vsel %vm9446_vm8, %v8511_v11, %v4004_v36  ;;  %v9448_v11 = vld [vmem:[#allocation34_spill] sm:$0xff]  ;;  %vm9453_vm9 = vmmov %vm9446_vm8 }
 0x892   : > { %v8684_v0 = vadd.f32 %v4147_v5, %v4020_v18  ;;  %v3466_v49 = vsub.f32 %v9448_v11, %v9447_v33 }
 0x893   : > { %5451 = vpow2.f32 %v4216_v20 }
 0x894   : > { %5453 = vpow2.f32 %v4214_v43  ;;  %v3491_v37 = vmul.f32 1.442695, %v3466_v49 }
 0x895   : > { %5455 = vpow2.f32 %v3489_v35  ;;  %v3514_v36 = vpop.xlane.xlu0 %3513 }
 0x896   : > { %v4233_v31 = vpop.xlane.xlu2 %4232  ;;  %5457 = vpow2.f32 %v3491_v37 }
 0x897   : > { %5459 = vpow2.f32 %v3493_v28 }
 0x898   : > { %5461 = vrcp.f32 %v4233_v31 }
 0x899   : > { %v8686_v17 = vpop.eup %5451  ;;  %4180 = vmax.xlane.f32.xlu1 %v8684_v0 }
 0x89a   : > { %v8689_v23 = vpop.eup %5453  ;;  %4248 = vadd.xlane.f32.xlu0 %v8686_v17 }
 0x89b   : > { %4246 = vadd.xlane.f32.xlu2 %v8689_v23  ;;  %v8695_v16 = vpop.eup %5455 }
 0x89c   : > { %v8724_v4 = vpop.eup %5457 }
 0x89e   : > { %v3198_v12 = vpop.permute.xlu2 %3197 }
 0x89f   : > { %v3244_v55 = vrot.slane %v3198_v12, 1 }
 0x8a1   : > { %v3245_v22 = vsel %vm1757_vm3, %v3242_v46, %v3244_v55  ;;  %v3263_v19 = vsel %vm1757_vm3, %v3244_v55, %v9450_v1  ;;  %vm9454_vm3 = vmmov %vm9429_vm12  ;;  %vm3714_vm12 = vcmask 785920  }
 0x8a2   : > { %v3279_v30 = vsel %vm9451_vm0, 0.0, %v3263_v19  ;;  %3521 = vadd.xlane.f32.xlu0 %v8695_v16  ;;  %v3278_v59 = vsel %vm9452_vm10, 0.0, %v3245_v22 }
 0x8a3   : > { %v3295_v46 = vsel %vm9453_vm9, %v3198_v12, %v3279_v30  ;;  %v3294_v9 = vsel %vm9454_vm3, %v8328_v3, %v3278_v59  ;;  %v8727_v3 = vpop.eup %5459 }
 0x8a4   : > { %v8717_v54 = vadd.f32 %v3422_v10, %v3295_v46  ;;  %v8719_v26 = vadd.f32 %v3420_v7, %v3294_v9  ;;  %v5462_v53 = vpop.eup %5461 }
 0x8a5   : > { %v4279_v62 = vmul.f32 %v5462_v53, %v8530_v47 }
 0x8a6   : > { %3453 = vmax.xlane.f32.xlu1 %v8719_v26  ;;  %3455 = vmax.xlane.f32.xlu2 %v8717_v54 }
 0x8ae   : > { %3523 = vadd.xlane.f32.xlu1 %v8724_v4 }
 0x8b0   : > { %v4231_v34 = vpop.xlane.xlu1 %4230 }
 0x8b1   : > { %5463 = vrcp.f32 %v4231_v34 }
 0x8b6   : > { %3525 = vadd.xlane.f32.xlu1 %v8727_v3 }
 0x8b7   : > { %v5464_v40 = vpop.eup %5463 }
 0x8b8   : > { %v4278_v57 = vmul.f32 %v5464_v40, %v8539_v60  ;;  %v3510_v43 = vpop.xlane.xlu1 %3509 }
 0x8b9   : > { %5465 = vrcp.f32 %v3510_v43 }
 0x8ba   : > { %v4294_v50 = vpack.c.bf16 %v4279_v62, %v4278_v57 }
 0x8bc   : > { %4334 = vmatmul.bf16.vlgmr.msra.gmra.mxu3 %v4294_v50 }
 0x8bf   : > { %v5466_v29 = vpop.eup %5465 }
 0x8c0   : > { %v3512_v20 = vpop.xlane.xlu1 %3511  ;;  %v3555_v31 = vmul.f32 %v5466_v29, %v8544_v58 }
 0x8c1   : > { %5467 = vrcp.f32 %v3512_v20 }
 0x8c4   : > { %v4235_v63 = vpop.xlane.xlu0 %4234 }
 0x8c7   : > { %v5468_v18 = vpop.eup %5467 }
 0x8c8   : > { %v4171_v5 = vpop.xlane.xlu1 %4170  ;;  %v3556_v35 = vmul.f32 %v5468_v18, %v8550_v6 }
 0x8c9   : > { %v4192_v7 = vsub.f32 %v8570_v13, %v4171_v5 }
 0x8ca   : > { %v3570_v47 = vpack.c.bf16 %v3556_v35, %v3555_v31 }
 0x8cb   : > { %v4218_v12 = vmul.f32 1.442695, %v4192_v7 }
 0x8cc   : > { %3614 = vmatmul.bf16.gmra.mxu0 %v3570_v47  ;;  %v4175_v60 = vpop.xlane.xlu0 %4174 }
 0x8cd   : > { %5469 = vpow2.f32 %v4218_v12  ;;  %v4194_v19 = vsub.f32 %v8582_v56, %v4175_v60 }
 0x8cf   : > { %v4222_v59 = vmul.f32 1.442695, %v4194_v19 }
 0x8d0   : > { %v3448_v33 = vpop.xlane.xlu1 %3447 }
 0x8d1   : > { %v3468_v11 = vsub.f32 %v8588_v25, %v3448_v33 }
 0x8d3   : > { %v8736_v49 = vpop.eup %5469  ;;  %v3495_v55 = vmul.f32 1.442695, %v3468_v11 }
 0x8d4   : > { %4250 = vadd.xlane.f32.xlu2 %v8736_v49  ;;  %v4239_v58 = vpop.xlane.xlu0 %4238 }
 0x8d5   : > { %5471 = vpow2.f32 %v3495_v55 }
 0x8d6   : > { %5473 = vrcp.f32 %v3514_v36 }
 0x8d7   : > { %v4173_v22 = vpop.xlane.xlu2 %4172 }
 0x8d8   : > { %v4193_v6 = vsub.f32 %v8612_v48, %v4173_v22  ;;  %v3516_v13 = vpop.xlane.xlu1 %3515 }
 0x8d9   : > { %5475 = vrcp.f32 %v3516_v13 }
 0x8da   : > { %v4220_v42 = vmul.f32 1.442695, %v4193_v6 }
 0x8db   : > { %v8740_v1 = vpop.eup %5471 }
 0x8dc   : > { %5477 = vpow2.f32 %v4220_v42  ;;  %3527 = vadd.xlane.f32.xlu2 %v8740_v1  ;;  %v5474_v25 = vpop.eup %5473  ;;  %v3452_v9 = vpop.xlane.xlu0 %3451 }
 0x8dd   : > { %5479 = vrcp.f32 %v4235_v63  ;;  %v3557_v48 = vmul.f32 %v5474_v25, %v8528_v38  ;;  %v3470_v34 = vsub.f32 %v8627_v32, %v3452_v9 }
 0x8df   : > { %v5476_v30 = vpop.eup %5475  ;;  %v3450_v10 = vpop.xlane.xlu2 %3449  ;;  %v3499_v40 = vmul.f32 1.442695, %v3470_v34 }
 0x8e0   : > { %v3469_v37 = vsub.f32 %v8634_v52, %v3450_v10  ;;  %v4237_v51 = vpop.xlane.xlu1 %4236  ;;  %v3558_v46 = vmul.f32 %v5476_v30, %v8614_v24 }
 0x8e1   : > { %5481 = vrcp.f32 %v4237_v51 }
 0x8e2   : > { %v8747_v45 = vpop.eup %5477  ;;  %v3497_v28 = vmul.f32 1.442695, %v3469_v37  ;;  %v3571_v56 = vpack.c.bf16 %v3558_v46, %v3557_v48  ;;  %5483 = vpow2.f32 %v4222_v59 }
 0x8e3   : > { %4252 = vadd.xlane.f32.xlu0 %v8747_v45  ;;  %v5480_v53 = vpop.eup %5479 }
 0x8e4   : > { %5485 = vpow2.f32 %v3497_v28  ;;  %3619 = vmatmul.bf16.gmra.mxu0 %v3571_v56  ;;  %v4280_v57 = vmul.f32 %v5480_v53, %v8560_v21 }
 0x8e5   : > { %5487 = vpow2.f32 %v3499_v40 }
 0x8e7   : > { %v5482_v52 = vpop.eup %5481  ;;  %v3520_v21 = vpop.xlane.xlu2 %3519 }
 0x8e8   : > { %v4177_v62 = vpop.xlane.xlu1 %4176  ;;  %v8751_v38 = vpop.eup %5483  ;;  %v4281_v43 = vmul.f32 %v5482_v52, %v8636_v15 }
 0x8e9   : > { %v4195_v24 = vsub.f32 %v8644_v27, %v4177_v62 }
 0x8ea   : > { %v8756_v50 = vpop.eup %5485  ;;  %v4295_v32 = vpack.c.bf16 %v4281_v43, %v4280_v57  ;;  %v9455_v57 = vld [vmem:[#allocation77_spill] sm:$0xff]  ;;  %v3610_v43 = vpop.f32.mrf.mxu0 }
 0x8eb   : > { %v4224_v36 = vmul.f32 1.442695, %v4195_v24  ;;  %4254 = vadd.xlane.f32.xlu0 %v8751_v38  ;;  %3529 = vadd.xlane.f32.xlu2 %v8756_v50  ;;  %v8760_v63 = vpop.eup %5487 }
 0x8ec   : > { %4339 = vmatmul.bf16.gmra.mxu3 %v4295_v32 }
 0x8ed   : > { %5489 = vpow2.f32 %v4224_v36  ;;  %v9456_v36 = vld [vmem:[#allocation56_spill] sm:$0xff] }
 0x8ee   : > { %5491 = vrcp.f32 %v4239_v58 }
 0x8f0   : > { %v4241_v20 = vpop.xlane.xlu1 %4240 }
 0x8f1   : > { %5493 = vrcp.f32 %v4241_v20 }
 0x8f2   : > { %5495 = vrcp.f32 %v3520_v21  ;;  %v3612_v20 = vpop.f32.mrf.mxu0 }
 0x8f3   : > { %v8762_v27 = vpop.eup %5489  ;;  %3531 = vadd.xlane.f32.xlu0 %v8760_v63 }
 0x8f4   : > { %4256 = vadd.xlane.f32.xlu1 %v8762_v27  ;;  %v5492_v15 = vpop.eup %5491 }
 0x8f5   : > { %v4282_v5 = vmul.f32 %v5492_v15, %v8603_v14 }
 0x8f7   : > { %v5494_v29 = vpop.eup %5493 }
 0x8f8   : > { %v3518_v18 = vpop.xlane.xlu1 %3517  ;;  %v4283_v31 = vmul.f32 %v5494_v29, %v8650_v39  ;;  %v5496_v47 = vpop.eup %5495  ;;  %v9458_v29 = vld [vmem:[#allocation87_spill] sm:$0xff] }
 0x8f9   : > { %5497 = vrcp.f32 %v3518_v18  ;;  %v3560_v33 = vmul.f32 %v5496_v47, %v8641_v8 }
 0x8fa   : > { %v4296_v35 = vpack.c.bf16 %v4283_v31, %v4282_v5 }
 0x8fc   : > { %v4243_v7 = vpop.xlane.xlu0 %4242  ;;  %4344 = vmatmul.bf16.gmra.mxu3 %v4296_v35 }
 0x8fd   : > { %5499 = vrcp.f32 %v4243_v7 }
 0x8ff   : > { %v5498_v12 = vpop.eup %5497 }
 0x900   : > { %v3559_v60 = vmul.f32 %v5498_v12, %v8654_v2 }
 0x902   : > { %v3572_v11 = vpack.c.bf16 %v3560_v33, %v3559_v60 }
 0x903   : > { %v5500_v39 = vpop.eup %5499 }
 0x904   : > { %v4179_v55 = vpop.xlane.xlu0 %4178  ;;  %3624 = vmatmul.bf16.gmra.mxu0 %v3572_v11  ;;  %v4245_v58 = vpop.xlane.xlu1 %4244  ;;  %v4284_v42 = vmul.f32 %v5500_v39, %v8658_v41  ;;  %v9459_v11 = vld [vmem:[#allocation75_spill] sm:$0xff] }
 0x905   : > { %v4196_v22 = vsub.f32 %v8669_v44, %v4179_v55  ;;  %5501 = vrcp.f32 %v4245_v58 }
 0x907   : > { %v4226_v14 = vmul.f32 1.442695, %v4196_v22 }
 0x909   : > { %5503 = vpow2.f32 %v4226_v14 }
 0x90b   : > { %v5502_v6 = vpop.eup %5501 }
 0x90c   : > { %v4181_v13 = vpop.xlane.xlu1 %4180  ;;  %v4285_v19 = vmul.f32 %v5502_v6, %v8671_v61 }
 0x90d   : > { %v4249_v2 = vpop.xlane.xlu0 %4248  ;;  %v4197_v8 = vsub.f32 %v8684_v0, %v4181_v13 }
 0x90e   : > { %v4247_v25 = vpop.xlane.xlu2 %4246  ;;  %v4297_v30 = vpack.c.bf16 %v4285_v19, %v4284_v42  ;;  %5505 = vrcp.f32 %v4249_v2 }
 0x90f   : > { %v8774_v59 = vpop.eup %5503  ;;  %v4228_v10 = vmul.f32 1.442695, %v4197_v8  ;;  %5507 = vrcp.f32 %v4247_v25 }
 0x910   : > { %4258 = vadd.xlane.f32.xlu1 %v8774_v59  ;;  %4349 = vmatmul.bf16.gmra.mxu3 %v4297_v30 }
 0x911   : > { %5509 = vpow2.f32 %v4228_v10 }
 0x914   : > { %v5506_v44 = vpop.eup %5505 }
 0x915   : > { %v5508_v37 = vpop.eup %5507  ;;  %v4287_v9 = vmul.f32 %v5506_v44, %v8686_v17  ;;  %v3522_v34 = vpop.xlane.xlu0 %3521 }
 0x916   : > { %v4286_v46 = vmul.f32 %v5508_v37, %v8689_v23 }
 0x917   : > { %v8777_v51 = vpop.eup %5509 }
 0x918   : > { %4260 = vadd.xlane.f32.xlu2 %v8777_v51  ;;  %v4298_v53 = vpack.c.bf16 %v4287_v9, %v4286_v46 }
 0x919   : > { %v3456_v41 = vpop.xlane.xlu2 %3455  ;;  %v3454_v61 = vpop.xlane.xlu1 %3453 }
 0x91a   : > { %v3472_v0 = vsub.f32 %v8717_v54, %v3456_v41  ;;  %v3471_v48 = vsub.f32 %v8719_v26, %v3454_v61 }
 0x91c   : > { %v3503_v28 = vmul.f32 1.442695, %v3472_v0  ;;  %v3501_v56 = vmul.f32 1.442695, %v3471_v48  ;;  %v9460_v0 = vld [vmem:[#allocation72_spill] sm:$0xff] }
 0x91e   : > { %5511 = vpow2.f32 %v3503_v28  ;;  %v9462_v28 = vld [vmem:[#allocation74_spill] sm:$0xff] }
 0x91f   : > { %5513 = vpow2.f32 %v3501_v56 }
 0x920   : > { %5515 = vrcp.f32 %v3522_v34  ;;  %4354 = vmatmul.bf16.gmra.mxu3 %v4298_v53  ;;  %v5117_v34 = vld [vmem:[#allocation17 + $0x30] sm:$0xff] }
 0x921   : > { %v3524_v52 = vpop.xlane.xlu1 %3523 }
 0x922   : > { %5517 = vrcp.f32 %v3524_v52  ;;  %v5116_v52 = vld [vmem:[#allocation17 + $0x28] sm:$0xff] }
 0x924   : > { %v8784_v40 = vpop.eup %5511 }
 0x925   : > { %v8786_v62 = vpop.eup %5513  ;;  %3535 = vadd.xlane.f32.xlu1 %v8784_v40 }
 0x926   : > { %v5516_v54 = vpop.eup %5515  ;;  %3533 = vadd.xlane.f32.xlu0 %v8786_v62 }
 0x927   : > { %v3561_v23 = vmul.f32 %v5516_v54, %v8695_v16 }
 0x928   : > { %v5518_v17 = vpop.eup %5517 }
 0x929   : > { %v3562_v26 = vmul.f32 %v5518_v17, %v8724_v4  ;;  %v9457_v4 = vld [vmem:[#allocation41_spill] sm:$0xff]  ;;  %v3526_v18 = vpop.xlane.xlu1 %3525 }
 0x92a   : > { %5519 = vrcp.f32 %v3526_v18 }
 0x92b   : > { %v3573_v24 = vpack.c.bf16 %v3562_v26, %v3561_v23  ;;  %v9463_v23 = vld [vmem:[#allocation73_spill] sm:$0xff]  ;;  %v5115_v26 = vld [vmem:[#allocation17 + $0x20] sm:$0xff] }
 0x92d   : > { %3629 = vmatmul.bf16.gmra.mxu0 %v3573_v24 }
 0x930   : > { %2941 = vrot.lane.b32.xlu2 %v9455_v57, %s5912_s29  ;;  %v5520_v35 = vpop.eup %5519 }
 0x931   : > { %v3563_v12 = vmul.f32 %v5520_v35, %v8727_v3 }
 0x93a   : > { %2943 = vrot.lane.b32.xlu0 %v9456_v36, %s5912_s29 }
 0x93e   : > { %3666 = vrot.lane.b32.xlu1 %v3610_v43, %s5911_s12 }
 0x93f   : > { %v4335_v32 = vpop.f32.mrf.mxu3 }
 0x940   : > { %4391 = vrot.lane.b32.xlu2 %v4335_v32, %s5910_s7 }
 0x942   : > { %3668 = vrot.lane.b32.xlu0 %v3612_v20, %s5911_s12  ;;  %v5114_v20 = vld [vmem:[#allocation17 + $0x18] sm:$0xff] }
 0x947   : > { %v4337_v16 = vpop.f32.mrf.mxu3  ;;  %v4251_v21 = vpop.xlane.xlu2 %4250 }
 0x948   : > { %4393 = vrot.lane.b32.xlu1 %v4337_v16, %s5910_s7  ;;  %2947 = vrot.lane.b32.xlu2 %v9457_v4, %s5912_s29  ;;  %v5113_v4 = vld [vmem:[#allocation17 + $0x10] sm:$0xff] }
 0x949   : > { %v3615_v15 = vpop.f32.mrf.mxu0 }
 0x94a   : > { %2945 = vrot.lane.b32.xlu0 %v9458_v29, %s5912_s29 }
 0x94f   : > { %v3528_v5 = vpop.xlane.xlu2 %3527 }
 0x950   : > { %5521 = vrcp.f32 %v3528_v5  ;;  %3670 = vrot.lane.b32.xlu1 %v3615_v15, %s5911_s12 }
 0x951   : > { %v3617_v31 = vpop.f32.mrf.mxu0  ;;  %5523 = vrcp.f32 %v4251_v21 }
 0x952   : > { %3672 = vrot.lane.b32.xlu0 %v3617_v31, %s5911_s12 }
 0x956   : > { %v5522_v7 = vpop.eup %5521  ;;  %v4253_v47 = vpop.xlane.xlu0 %4252 }
 0x957   : > { %5525 = vrcp.f32 %v4253_v47  ;;  %v3564_v60 = vmul.f32 %v5522_v7, %v8740_v1  ;;  %v5524_v55 = vpop.eup %5523  ;;  %v5111_v7 = vld [vmem:[#allocation17] sm:$0xff] }
 0x958   : > { %v4288_v14 = vmul.f32 %v5524_v55, %v8736_v49  ;;  %v9465_v55 = vld [vmem:[#allocation66_spill] sm:$0xff] }
 0x959   : > { %v3574_v33 = vpack.c.bf16 %v3564_v60, %v3563_v12 }
 0x95a   : > { %2949 = vrot.lane.b32.xlu0 %v9459_v11, %s5912_s29 }
 0x95b   : > { %3634 = vmatmul.bf16.gmra.mxu0 %v3574_v33 }
 0x95d   : > { %v5526_v58 = vpop.eup %5525 }
 0x95e   : > { %v4255_v22 = vpop.xlane.xlu0 %4254  ;;  %v4289_v39 = vmul.f32 %v5526_v58, %v8747_v45  ;;  %v3530_v42 = vpop.xlane.xlu2 %3529 }
 0x95f   : > { %5527 = vrcp.f32 %v3530_v42 }
 0x960   : > { %v4299_v6 = vpack.c.bf16 %v4289_v39, %v4288_v14  ;;  %5529 = vrcp.f32 %v4255_v22  ;;  %v9466_v39 = vld [vmem:[#allocation68_spill] sm:$0xff] }
 0x961   : > { %v3620_v13 = vpop.f32.mrf.mxu0 }
 0x962   : > { %4359 = vmatmul.bf16.gmra.mxu3 %v4299_v6 }
 0x965   : > { %v5528_v2 = vpop.eup %5527 }
 0x966   : > { %v3532_v3 = vpop.xlane.xlu0 %3531  ;;  %v5530_v8 = vpop.eup %5529  ;;  %v3565_v49 = vmul.f32 %v5528_v2, %v8756_v50  ;;  %v9461_v50 = vld [vmem:[#allocation76_spill] sm:$0xff] }
 0x967   : > { %5531 = vrcp.f32 %v3532_v3  ;;  %v4257_v1 = vpop.xlane.xlu1 %4256  ;;  %v4290_v10 = vmul.f32 %v5530_v8, %v8751_v38 }
 0x968   : > { %5533 = vrcp.f32 %v4257_v1 }
 0x969   : > { %v3622_v19 = vpop.f32.mrf.mxu0 }
 0x96a   : > { %3676 = vrot.lane.b32.xlu0 %v3622_v19, %s5911_s12 }
 0x96d   : > { %v5532_v25 = vpop.eup %5531 }
 0x96e   : > { %v5534_v30 = vpop.eup %5533  ;;  %v3566_v45 = vmul.f32 %v5532_v25, %v8760_v63 }
 0x96f   : > { %v4291_v44 = vmul.f32 %v5534_v30, %v8762_v27  ;;  %v4340_v37 = vpop.f32.mrf.mxu3  ;;  %v5118_v27 = vld [vmem:[#allocation17 + $0x38] sm:$0xff] }
 0x970   : > { %v3575_v41 = vpack.c.bf16 %v3566_v45, %v3565_v49  ;;  %4395 = vrot.lane.b32.xlu2 %v4340_v37, %s5910_s7  ;;  %4548 = vmatpush.bf16.msra.mxu0 %v5118_v27 }
 0x971   : > { %v4300_v61 = vpack.c.bf16 %v4291_v44, %v4290_v10 }
 0x972   : > { %3639 = vmatmul.bf16.gmra.mxu0 %v3575_v41  ;;  %2953 = vrot.lane.b32.xlu0 %v9460_v0, %s5912_s29 }
 0x973   : > { %4364 = vmatmul.bf16.gmra.mxu3 %v4300_v61  ;;  %v9467_v61 = vld [vmem:[#allocation31_spill] sm:$0xff] }
 0x974   : > { %4549 = vmatpush.bf16.msra.mxu0 %v5117_v34 }
 0x977   : > { %v4342_v48 = vpop.f32.mrf.mxu3 }
 0x978   : > { %4397 = vrot.lane.b32.xlu1 %v4342_v48, %s5910_s7  ;;  %2951 = vrot.lane.b32.xlu2 %v9461_v50, %s5912_s29  ;;  %v9468_v50 = vld [vmem:[#allocation92_spill] sm:$0xff] }
 0x979   : > { %4550 = vmatpush.bf16.msra.mxu0 %v5116_v52 }
 0x97d   : > { %4551 = vmatpush.bf16.msra.mxu0 %v5115_v26  ;;  %v9469_v26 = vld [vmem:[#allocation42_spill] sm:$0xff] }
 0x97f   : > { %v4345_v63 = vpop.f32.mrf.mxu3 }
 0x980   : > { %3674 = vrot.lane.b32.xlu1 %v3620_v13, %s5911_s12  ;;  %4399 = vrot.lane.b32.xlu2 %v4345_v63, %s5910_s7 }
 0x981   : > { %v3625_v38 = vpop.f32.mrf.mxu0  ;;  %4552 = vmatpush.bf16.msra.mxu0 %v5114_v20 }
 0x983   : > { %v4259_v46 = vpop.xlane.xlu1 %4258 }
 0x984   : > { %5535 = vrcp.f32 %v4259_v46 }
 0x985   : > { %4553 = vmatpush.bf16.msra.mxu0 %v5113_v4 }
 0x987   : > { %v4347_v9 = vpop.f32.mrf.mxu3 }
 0x988   : > { %4401 = vrot.lane.b32.xlu1 %v4347_v9, %s5910_s7  ;;  %2955 = vrot.lane.b32.xlu2 %v9462_v28, %s5912_s29 }
 0x989   : > { %v3627_v56 = vpop.f32.mrf.mxu0 }
 0x98a   : > { %3680 = vrot.lane.b32.xlu0 %v3627_v56, %s5911_s12  ;;  %v5536_v54 = vpop.eup %5535 }
 0x98b   : > { %v4261_v53 = vpop.xlane.xlu2 %4260  ;;  %v4292_v43 = vmul.f32 %v5536_v54, %v8774_v59  ;;  %v9464_v59 = vld [vmem:[#allocation71_spill] sm:$0xff] }
 0x98c   : > { %5537 = vrcp.f32 %v4261_v53 }
 0x990   : > { %3678 = vrot.lane.b32.xlu1 %v3625_v38, %s5911_s12 }
 0x992   : > { %v5538_v17 = vpop.eup %5537  ;;  %2957 = vrot.lane.b32.xlu0 %v9463_v23, %s5912_s29 }
 0x993   : > { %v4350_v24 = vpop.f32.mrf.mxu3  ;;  %v2942_v57 = vpop.permute.xlu2 %2941  ;;  %v4293_v36 = vmul.f32 %v5538_v17, %v8777_v51  ;;  %v5112_v51 = vld [vmem:[#allocation17 + $0x8] sm:$0xff] }
 0x994   : > { %2990 = vst.msk [vmem:[#allocation2] sm:$0xff] %vm2989_vm2, %v2942_v57  ;;  %4403 = vrot.lane.b32.xlu2 %v4350_v24, %s5910_s7  ;;  %4554 = vmatpush.bf16.msra.mxu0 %v5112_v51  ;;  %v9470_v24 = vld [vmem:[#allocation44_spill] sm:$0xff] }
 0x995   : > { %v4301_v32 = vpack.c.bf16 %v4293_v36, %v4292_v43 }
 0x997   : > { %4369 = vmatmul.bf16.gmra.mxu3 %v4301_v32 }
 0x998   : > { %v3536_v16 = vpop.xlane.xlu1 %3535  ;;  %4555 = vmatpush.bf16.msra.mxu0 %v5111_v7 }
 0x999   : > { %v3534_v21 = vpop.xlane.xlu0 %3533  ;;  %5539 = vrcp.f32 %v3536_v16 }
 0x99a   : > { %5541 = vrcp.f32 %v3534_v21 }
 0x99b   : > { %v4352_v15 = vpop.f32.mrf.mxu3  ;;  %v4392_v29 = vpop.permute.xlu2 %4391 }
 0x99c   : > { %4405 = vrot.lane.b32.xlu1 %v4352_v15, %s5910_s7  ;;  %2959 = vrot.lane.b32.xlu2 %v9464_v59, %s5912_s29 }
 0x99f   : > { %v5540_v18 = vpop.eup %5539 }
 0x9a0   : > { %v5542_v5 = vpop.eup %5541  ;;  %v3568_v31 = vmul.f32 %v5540_v18, %v8784_v40 }
 0x9a1   : > { %v3567_v35 = vmul.f32 %v5542_v5, %v8786_v62 }
 0x9a3   : > { %v4355_v47 = vpop.f32.mrf.mxu3  ;;  %v2948_v12 = vpop.permute.xlu2 %2947  ;;  %v3576_v60 = vpack.c.bf16 %v3568_v31, %v3567_v35 }
 0x9a4   : > { %2993 = vst.msk [vmem:[#allocation2 + $0x18] sm:$0xff] %vm2989_vm2, %v2948_v12  ;;  %4407 = vrot.lane.b32.xlu2 %v4355_v47, %s5910_s7 }
 0x9a5   : > { %3644 = vmatmul.bf16.gmra.mxu0 %v3576_v60 }
 0x9aa   : > { %v3630_v33 = vpop.f32.mrf.mxu0 }
 0x9ab   : > { %3682 = vrot.lane.b32.xlu1 %v3630_v33, %s5911_s12  ;;  %v4357_v62 = vpop.f32.mrf.mxu3 }
 0x9ac   : > { %v2944_v11 = vpop.permute.xlu0 %2943  ;;  %2963 = vrot.lane.b32.xlu2 %v9465_v55, %s5912_s29 }
 0x9ad   : > { %2991 = vst.msk [vmem:[#allocation2 + $0x8] sm:$0xff] %vm2989_vm2, %v2944_v11  ;;  %v8903_v11 = vld [vmem:[%s9471_s25] ss:$0 sm:$0xff] }
 0x9b0   : > { %v3667_v40 = vpop.permute.xlu1 %3666 }
 0x9b1   : > { %3715 = vst.msk [vmem:[#allocation2] sm:$0xff] %vm3714_vm12, %v3667_v40 }
 0x9b2   : > { %4440 = vst.msk [vmem:[#allocation2] sm:$0xff] %vm4439_vm14, %v4392_v29  ;;  %v3632_v58 = vpop.f32.mrf.mxu0 }
 0x9b3   : > { %4409 = vrot.lane.b32.xlu1 %v4357_v62, %s5910_s7  ;;  %3684 = vrot.lane.b32.xlu0 %v3632_v58, %s5911_s12 }
 0x9b4   : > { %v3669_v22 = vpop.permute.xlu0 %3668 }
 0x9b5   : > { %3716 = vst.msk [vmem:[#allocation2 + $0x8] sm:$0xff] %vm3714_vm12, %v3669_v22 }
 0x9b9   : > { %v4456_v42 = vld [vmem:[#allocation2] sm:$0xff] }
 0x9ba   : > { %v4394_v14 = vpop.permute.xlu1 %4393 }
 0x9bb   : > { %2961 = vrot.lane.b32.xlu0 %v9466_v39, %s5912_s29  ;;  %4441 = vst.msk [vmem:[#allocation2 + $0x8] sm:$0xff] %vm4439_vm14, %v4394_v14 }
 0x9bc   : > { %v2946_v6 = vpop.permute.xlu0 %2945 }
 0x9bd   : > { %2992 = vst.msk [vmem:[#allocation2 + $0x10] sm:$0xff] %vm2989_vm2, %v2946_v6 }
 0x9c2   : > { %v3671_v13 = vpop.permute.xlu1 %3670  ;;  %v4457_v3 = vld [vmem:[#allocation2 + $0x8] sm:$0xff] }
 0x9c3   : > { %3717 = vst.msk [vmem:[#allocation2 + $0x10] sm:$0xff] %vm3714_vm12, %v3671_v13  ;;  %v4472_v1 = vpack.c.bf16 %v4457_v3, %v4456_v42 }
 0x9c4   : > { %v3673_v19 = vpop.permute.xlu0 %3672 }
 0x9c5   : > { %3718 = vst.msk [vmem:[#allocation2 + $0x18] sm:$0xff] %vm3714_vm12, %v3673_v19  ;;  %4556 = vmatmul.bf16.vlgmr.msra.gmra.mxu0 %v4472_v1 }
 0x9ca   : > { %v4396_v2 = vpop.permute.xlu2 %4395 }
 0x9cb   : > { %4442 = vst.msk [vmem:[#allocation2 + $0x10] sm:$0xff] %vm4439_vm14, %v4396_v2 }
 0x9cc   : > { %v2950_v8 = vpop.permute.xlu0 %2949 }
 0x9cd   : > { %2994 = vst.msk [vmem:[#allocation2 + $0x20] sm:$0xff] %vm2989_vm2, %v2950_v8 }
 0x9d2   : > { %v2952_v25 = vpop.permute.xlu2 %2951  ;;  %v4458_v46 = vld [vmem:[#allocation2 + $0x10] sm:$0xff] }
 0x9d3   : > { %2995 = vst.msk [vmem:[#allocation2 + $0x28] sm:$0xff] %vm2989_vm2, %v2952_v25 }
 0x9d8   : > { %v3635_v30 = vpop.f32.mrf.mxu0 }
 0x9d9   : > { %3686 = vrot.lane.b32.xlu1 %v3635_v30, %s5911_s12 }
 0x9da   : > { %v4400_v49 = vpop.permute.xlu2 %4399 }
 0x9dc   : > { %v3677_v45 = vpop.permute.xlu0 %3676 }
 0x9dd   : > { %3720 = vst.msk [vmem:[#allocation2 + $0x28] sm:$0xff] %vm3714_vm12, %v3677_v45 }
 0x9e0   : > { %v3637_v10 = vpop.f32.mrf.mxu0 }
 0x9e1   : > { %3688 = vrot.lane.b32.xlu0 %v3637_v10, %s5911_s12 }
 0x9e2   : > { %v2956_v44 = vpop.permute.xlu2 %2955 }
 0x9e3   : > { %2997 = vst.msk [vmem:[#allocation2 + $0x38] sm:$0xff] %vm2989_vm2, %v2956_v44 }
 0x9e4   : > { %v2954_v37 = vpop.permute.xlu0 %2953 }
 0x9e5   : > { %v4360_v41 = vpop.f32.mrf.mxu3  ;;  %2996 = vst.msk [vmem:[#allocation2 + $0x30] sm:$0xff] %vm2989_vm2, %v2954_v37 }
 0x9e6   : > { %4411 = vrot.lane.b32.xlu2 %v4360_v41, %s5910_s7 }
 0x9e9   : > { %2965 = vrot.lane.b32.xlu0 %v9467_v61, %s5912_s29 }
 0x9ea   : > { %v4398_v0 = vpop.permute.xlu1 %4397 }
 0x9eb   : > { %4443 = vst.msk [vmem:[#allocation2 + $0x18] sm:$0xff] %vm4439_vm14, %v4398_v0 }
 0x9ed   : > { %v4362_v48 = vpop.f32.mrf.mxu3 }
 0x9ee   : > { %2967 = vrot.lane.b32.xlu2 %v9468_v50, %s5912_s29  ;;  %4413 = vrot.lane.b32.xlu1 %v4362_v48, %s5910_s7  ;;  %v4404_v63 = vpop.permute.xlu2 %4403 }
 0x9ef   : > { %v3640_v38 = vpop.f32.mrf.mxu0 }
 0x9f2   : > { %v3675_v27 = vpop.permute.xlu1 %3674  ;;  %v4459_v9 = vld [vmem:[#allocation2 + $0x18] sm:$0xff] }
 0x9f3   : > { %3719 = vst.msk [vmem:[#allocation2 + $0x20] sm:$0xff] %vm3714_vm12, %v3675_v27  ;;  %v4473_v28 = vpack.c.bf16 %v4459_v9, %v4458_v46 }
 0x9f4   : > { %4444 = vst.msk [vmem:[#allocation2 + $0x20] sm:$0xff] %vm4439_vm14, %v4400_v49 }
 0x9f5   : > { %4561 = vmatmul.bf16.gmra.mxu0 %v4473_v28 }
 0x9f6   : > { %3690 = vrot.lane.b32.xlu1 %v3640_v38, %s5911_s12  ;;  %v2960_v56 = vpop.permute.xlu2 %2959  ;;  %v4365_v34 = vpop.f32.mrf.mxu3 }
 0x9f7   : > { %2999 = vst.msk [vmem:[#allocation2 + $0x48] sm:$0xff] %vm2989_vm2, %v2960_v56  ;;  %v3642_v53 = vpop.f32.mrf.mxu0  ;;  %4415 = vrot.lane.b32.xlu2 %v4365_v34, %s5910_s7 }
 0x9f8   : > { %3692 = vrot.lane.b32.xlu0 %v3642_v53, %s5911_s12 }
 0x9fa   : > { %v4402_v52 = vpop.permute.xlu1 %4401 }
 0x9fb   : > { %4445 = vst.msk [vmem:[#allocation2 + $0x28] sm:$0xff] %vm4439_vm14, %v4402_v52  ;;  %v4460_v43 = vld [vmem:[#allocation2 + $0x20] sm:$0xff] }
 0x9fc   : > { %v3681_v54 = vpop.permute.xlu0 %3680 }
 0x9fd   : > { %3722 = vst.msk [vmem:[#allocation2 + $0x38] sm:$0xff] %vm3714_vm12, %v3681_v54 }
 0x9fe   : > { %v4408_v17 = vpop.permute.xlu2 %4407  ;;  %v4367_v23 = vpop.f32.mrf.mxu3 }
 0x9ff   : > { %2971 = vrot.lane.b32.xlu2 %v9469_v26, %s5912_s29  ;;  %4417 = vrot.lane.b32.xlu1 %v4367_v23, %s5910_s7 }
 0xa00   : > { %2969 = vrot.lane.b32.xlu0 %v9470_v24, %s5912_s29 }
 0xa02   : > { %v3679_v57 = vpop.permute.xlu1 %3678  ;;  %v4461_v36 = vld [vmem:[#allocation2 + $0x28] sm:$0xff] }
 0xa03   : > { %3721 = vst.msk [vmem:[#allocation2 + $0x30] sm:$0xff] %vm3714_vm12, %v3679_v57  ;;  %v4474_v20 = vpack.c.bf16 %v4461_v36, %v4460_v43 }
 0xa04   : > { %v2958_v32 = vpop.permute.xlu0 %2957  ;;  %4446 = vst.msk [vmem:[#allocation2 + $0x30] sm:$0xff] %vm4439_vm14, %v4404_v63 }
 0xa05   : > { %2998 = vst.msk [vmem:[#allocation2 + $0x40] sm:$0xff] %vm2989_vm2, %v2958_v32  ;;  %4566 = vmatmul.bf16.gmra.mxu0 %v4474_v20 }
 0xa06   : > { %v2964_v16 = vpop.permute.xlu2 %2963 }
 0xa07   : > { %3001 = vst.msk [vmem:[#allocation2 + $0x58] sm:$0xff] %vm2989_vm2, %v2964_v16 }
 0xa0b   : > { %v4462_v4 = vld [vmem:[#allocation2 + $0x30] sm:$0xff] }
 0xa0e   : > { %v4406_v21 = vpop.permute.xlu1 %4405 }
 0xa0f   : > { %4447 = vst.msk [vmem:[#allocation2 + $0x38] sm:$0xff] %vm4439_vm14, %v4406_v21 }
 0xa16   : > { %v4463_v15 = vld [vmem:[#allocation2 + $0x38] sm:$0xff] }
 0xa17   : > { %v4475_v29 = vpack.c.bf16 %v4463_v15, %v4462_v4 }
 0xa19   : > { %4571 = vmatmul.bf16.gmra.mxu0 %v4475_v29 }
 0xa1a   : > { %v4370_v59 = vpop.f32.mrf.mxu3 }
 0xa1b   : > { %4419 = vrot.lane.b32.xlu2 %v4370_v59, %s5910_s7 }
 0xa1d   : > { %v3683_v51 = vpop.permute.xlu1 %3682 }
 0xa1e   : > { %3723 = vst.msk [vmem:[#allocation2 + $0x40] sm:$0xff] %vm3714_vm12, %v3683_v51 }
 0xa1f   : > { %4448 = vst.msk [vmem:[#allocation2 + $0x40] sm:$0xff] %vm4439_vm14, %v4408_v17 }
 0xa22   : > { %v3645_v18 = vpop.f32.mrf.mxu0  ;;  %v4372_v35 = vpop.f32.mrf.mxu3 }
 0xa23   : > { %3694 = vrot.lane.b32.xlu1 %v3645_v18, %s5911_s12 }
 0xa25   : > { %v3685_v5 = vpop.permute.xlu0 %3684  ;;  %v4410_v31 = vpop.permute.xlu1 %4409 }
 0xa26   : > { %3724 = vst.msk [vmem:[#allocation2 + $0x48] sm:$0xff] %vm3714_vm12, %v3685_v5  ;;  %v4464_v12 = vld [vmem:[#allocation2 + $0x40] sm:$0xff] }
 0xa27   : > { %4449 = vst.msk [vmem:[#allocation2 + $0x48] sm:$0xff] %vm4439_vm14, %v4410_v31 }
 0xa2a   : > { %v3647_v7 = vpop.f32.mrf.mxu0 }
 0xa2b   : > { %4421 = vrot.lane.b32.xlu1 %v4372_v35, %s5910_s7  ;;  %3696 = vrot.lane.b32.xlu0 %v3647_v7, %s5911_s12 }
 0xa2d   : > { %v2962_v47 = vpop.permute.xlu0 %2961 }
 0xa2e   : > { %3000 = vst.msk [vmem:[#allocation2 + $0x50] sm:$0xff] %vm2989_vm2, %v2962_v47  ;;  %v4465_v60 = vld [vmem:[#allocation2 + $0x48] sm:$0xff] }
 0xa2f   : > { %v4476_v33 = vpack.c.bf16 %v4465_v60, %v4464_v12 }
 0xa31   : > { %4576 = vmatmul.bf16.gmra.mxu0 %v4476_v33 }
 0xa40   : > { %v4412_v55 = vpop.permute.xlu2 %4411 }
 0xa42   : > { %v4557_v40 = vpop.f32.mrf.mxu0 }
 0xa43   : > { %v4558_v62 = vadd.f32 %v8903_v11, %v4557_v40 }
 0xa45   : > { %4597 = vst [vmem:[%s8907_s24] sm:$0xff] %v4558_v62 }
 0xa48   : > { %v2968_v58 = vpop.permute.xlu2 %2967 }
 0xa49   : > { %3003 = vst.msk [vmem:[#allocation2 + $0x68] sm:$0xff] %vm2989_vm2, %v2968_v58 }
 0xa4a   : > { %v4559_v22 = vpop.f32.mrf.mxu0 }
 0xa4b   : > { %v4560_v14 = vadd.f32 %v8903_v11, %v4559_v22  ;;  %v3687_v39 = vpop.permute.xlu1 %3686 }
 0xa4c   : > { %3725 = vst.msk [vmem:[#allocation2 + $0x50] sm:$0xff] %vm3714_vm12, %v3687_v39 }
 0xa4d   : > { %4598 = vst [vmem:[%s8907_s24 + $0x8] sm:$0xff] %v4560_v14 }
 0xa4e   : > { %4450 = vst.msk [vmem:[#allocation2 + $0x50] sm:$0xff] %vm4439_vm14, %v4412_v55 }
 0xa51   : > { %v4416_v6 = vpop.permute.xlu2 %4415 }
 0xa53   : > { %v3689_v13 = vpop.permute.xlu0 %3688 }
 0xa54   : > { %3726 = vst.msk [vmem:[#allocation2 + $0x58] sm:$0xff] %vm3714_vm12, %v3689_v13 }
 0xa55   : > { %v4466_v2 = vld [vmem:[#allocation2 + $0x50] sm:$0xff] }
 0xa59   : > { %v2972_v42 = vpop.permute.xlu2 %2971 }
 0xa5a   : > { %3005 = vst.msk [vmem:[#allocation2 + $0x78] sm:$0xff] %vm2989_vm2, %v2972_v42 }
 0xa5b   : > { %v2966_v3 = vpop.permute.xlu0 %2965 }
 0xa5c   : > { %3002 = vst.msk [vmem:[#allocation2 + $0x60] sm:$0xff] %vm2989_vm2, %v2966_v3 }
 0xa60   : > { %v4414_v1 = vpop.permute.xlu1 %4413 }
 0xa61   : > { %4451 = vst.msk [vmem:[#allocation2 + $0x58] sm:$0xff] %vm4439_vm14, %v4414_v1 }
 0xa68   : > { %v3691_v19 = vpop.permute.xlu1 %3690  ;;  %v4467_v8 = vld [vmem:[#allocation2 + $0x58] sm:$0xff] }
 0xa69   : > { %3727 = vst.msk [vmem:[#allocation2 + $0x60] sm:$0xff] %vm3714_vm12, %v3691_v19  ;;  %v4477_v25 = vpack.c.bf16 %v4467_v8, %v4466_v2 }
 0xa6a   : > { %4452 = vst.msk [vmem:[#allocation2 + $0x60] sm:$0xff] %vm4439_vm14, %v4416_v6  ;;  %v3693_v30 = vpop.permute.xlu0 %3692 }
 0xa6b   : > { %3728 = vst.msk [vmem:[#allocation2 + $0x68] sm:$0xff] %vm3714_vm12, %v3693_v30  ;;  %4581 = vmatmul.bf16.gmra.mxu0 %v4477_v25 }
 0xa71   : > { %v4418_v49 = vpop.permute.xlu1 %4417  ;;  %v4468_v37 = vld [vmem:[#allocation2 + $0x60] sm:$0xff] }
 0xa72   : > { %v2970_v45 = vpop.permute.xlu0 %2969  ;;  %4453 = vst.msk [vmem:[#allocation2 + $0x68] sm:$0xff] %vm4439_vm14, %v4418_v49  ;;  %v4562_v10 = vpop.f32.mrf.mxu0 }
 0xa73   : > { %3004 = vst.msk [vmem:[#allocation2 + $0x70] sm:$0xff] %vm2989_vm2, %v2970_v45  ;;  %v4563_v44 = vadd.f32 %v8903_v11, %v4562_v10 }
 0xa75   : > { %4599 = vst [vmem:[%s8907_s24 + $0x10] sm:$0xff] %v4563_v44  ;;  %v4420_v9 = vpop.permute.xlu2 %4419 }
 0xa79   : > { %v4469_v41 = vld [vmem:[#allocation2 + $0x68] sm:$0xff] }
 0xa7a   : > { %v4478_v61 = vpack.c.bf16 %v4469_v41, %v4468_v37  ;;  %v4564_v0 = vpop.f32.mrf.mxu0 }
 0xa7b   : > { %v4565_v48 = vadd.f32 %v8903_v11, %v4564_v0 }
 0xa7c   : > { %4586 = vmatmul.bf16.gmra.mxu0 %v4478_v61 }
 0xa7d   : > { %4600 = vst [vmem:[%s8907_s24 + $0x18] sm:$0xff] %v4565_v48 }
 0xa82   : > { %v4567_v50 = vpop.f32.mrf.mxu0 }
 0xa83   : > { %v4568_v63 = vadd.f32 %v8903_v11, %v4567_v50 }
 0xa85   : > { %4601 = vst [vmem:[%s8907_s24 + $0x20] sm:$0xff] %v4568_v63 }
 0xa8a   : > { %v4569_v38 = vpop.f32.mrf.mxu0 }
 0xa8b   : > { %v4570_v27 = vadd.f32 %v8903_v11, %v4569_v38 }
 0xa8d   : > { %4602 = vst [vmem:[%s8907_s24 + $0x28] sm:$0xff] %v4570_v27 }
 0xa95   : > { %v3695_v46 = vpop.permute.xlu1 %3694 }
 0xa96   : > { %3729 = vst.msk [vmem:[#allocation2 + $0x70] sm:$0xff] %vm3714_vm12, %v3695_v46  ;;  %v4572_v28 = vpop.f32.mrf.mxu0 }
 0xa97   : > { %4454 = vst.msk [vmem:[#allocation2 + $0x70] sm:$0xff] %vm4439_vm14, %v4420_v9  ;;  %v4573_v56 = vadd.f32 %v8903_v11, %v4572_v28 }
 0xa99   : > { %4603 = vst [vmem:[%s8907_s24 + $0x30] sm:$0xff] %v4573_v56 }
 0xa9d   : > { %v3697_v34 = vpop.permute.xlu0 %3696  ;;  %v4422_v53 = vpop.permute.xlu1 %4421 }
 0xa9e   : > { %3730 = vst.msk [vmem:[#allocation2 + $0x78] sm:$0xff] %vm3714_vm12, %v3697_v34  ;;  %v4574_v52 = vpop.f32.mrf.mxu0  ;;  %v4470_v17 = vld [vmem:[#allocation2 + $0x70] sm:$0xff] }
 0xa9f   : > { %4455 = vst.msk [vmem:[#allocation2 + $0x78] sm:$0xff] %vm4439_vm14, %v4422_v53  ;;  %v4575_v54 = vadd.f32 %v8903_v11, %v4574_v52 }
 0xaa1   : > { %4604 = vst [vmem:[%s8907_s24 + $0x38] sm:$0xff] %v4575_v54 }
 0xaa6   : > { %v4471_v23 = vld [vmem:[#allocation2 + $0x78] sm:$0xff] }
 0xaa7   : > { %v4479_v26 = vpack.c.bf16 %v4471_v23, %v4470_v17 }
 0xaa9   : > { %4591 = vmatmul.bf16.gmra.mxu0 %v4479_v26 }
 0xaae   : > { %v4577_v24 = vpop.f32.mrf.mxu0 }
 0xaaf   : > { %v4578_v57 = vadd.f32 %v8903_v11, %v4577_v24 }
 0xab1   : > { %4605 = vst [vmem:[%s8907_s24 + $0x40] sm:$0xff] %v4578_v57 }
 0xab6   : > { %v4579_v43 = vpop.f32.mrf.mxu0 }
 0xab7   : > { %v4580_v36 = vadd.f32 %v8903_v11, %v4579_v43 }
 0xab9   : > { %4606 = vst [vmem:[%s8907_s24 + $0x48] sm:$0xff] %v4580_v36 }
 0xae8   : > { %v4582_v32 = vpop.f32.mrf.mxu0 }
 0xae9   : > { %v4583_v20 = vadd.f32 %v8903_v11, %v4582_v32 }
 0xaeb   : > { %4607 = vst [vmem:[%s8907_s24 + $0x50] sm:$0xff] %v4583_v20 }
 0xaf0   : > { %v4584_v16 = vpop.f32.mrf.mxu0 }
 0xaf1   : > { %v4585_v21 = vadd.f32 %v8903_v11, %v4584_v16 }
 0xaf3   : > { %4608 = vst [vmem:[%s8907_s24 + $0x58] sm:$0xff] %v4585_v21 }
 0xaf9   : > { %v4587_v4 = vpop.f32.mrf.mxu0 }
 0xafa   : > { %v4588_v15 = vadd.f32 %v8903_v11, %v4587_v4 }
 0xafc   : > { %4609 = vst [vmem:[%s8907_s24 + $0x60] sm:$0xff] %v4588_v15 }
 0xb01   : > { %v4589_v29 = vpop.f32.mrf.mxu0 }
 0xb02   : > { %v4590_v59 = vadd.f32 %v8903_v11, %v4589_v29 }
 0xb04   : > { %4610 = vst [vmem:[%s8907_s24 + $0x68] sm:$0xff] %v4590_v59 }
 0xb26   : > { %v4592_v51 = vpop.f32.mrf.mxu0 }
 0xb27   : > { %v4593_v18 = vadd.f32 %v8903_v11, %v4592_v51 }
 0xb29   : > { %4611 = vst [vmem:[%s8907_s24 + $0x70] sm:$0xff] %v4593_v18 }
 0xb2e   : > { %v4594_v5 = vpop.f32.mrf.mxu0 }
 0xb2f   : > { %v4595_v31 = vadd.f32 %v8903_v11, %v4594_v5 }
 0xb31   : > { %4612 = vst [vmem:[%s8907_s24 + $0x78] sm:$0xff] %v4595_v31 }
 0xb32   : > { %5840 = shalt.err (!%p5837_p8)
}
 0xb33   : > { %s5929_s23 = smov 128   ;;  %s5930_s10 = smov 8  }
 0xb34   : > { %5172 = dma.vmem_to_hbm [thread:$0]  (%p6103_p7), %s4627_s15, 2048, %s4629_s30, %s4614_s28, %s5929_s23, %s5929_s23, %s5930_s10  }
 0xb35 PF: > { %s9474_s29 = sld [smem:[#allocation26_spill]]  ;;  %p9476_p9 = scmp.ge.s32.totalorder %s5899_s21, 2 }
 0xb37   : > { %p5204_p12 = pnand %p9476_p9, %p6046_p6 }
 0xb39   : > { %p5205_p0 = pneg %p5204_p12 }
 0xb3b   : > { %s4643_s25 = sand.u32 1, %s9474_s29  }
 0xb3c   : > { %s4644_s24 = scalar_lea.sflag [#allocation5], %s4643_s25 }
 0xb3d   : > { %5882 = dma.done.wait (%p5205_p0), %s4644_s24, 2048  }
 0xb3e   : > { %5884 = vsyncadd (%p5205_p0), %s4644_s24, 4294965248  ;;  %s9477_s21 = sld [smem:[#allocation28_spill]]  ;;  %s9479_s18 = smov %s5891_s19 }
 0xb3f   : > { %s9478_s27 = sld [smem:[#allocation29_spill]]  ;;  %s9480_s19 = smov %s5895_s20 }
 0xb44   : > { %p36_p3 = scmp.ge.s32.totalorder %s9477_s21, 4  }
 0xb45   : > { %s9481_s20 = smov %s9478_s27 }
 0xb46   :  { %38 = sbr.rel (!%p36_p3) target bundleno = 22 (0x16), region = 182 }
 0xb4b   :  { %4650 = vsyncpa [#allocation4], 1 }
 0xb4c   :  { %4652 = vsyncpa [#allocation4 + $0x1], 1 }
 0xb4d   :  { %4653 = vsyncpa [#allocation7], 1 }
 0xb4e   :  { %4655 = vsyncpa [#allocation7 + $0x1], 1 }
 0xb4f   :  { %4656 = vsyncpa [#allocation10], 1 }
 0xb50   :  { %4658 = vsyncpa [#allocation10 + $0x1], 1 }
 0xb51   :  { %4659 = vsyncpa [#allocation13], 1 }
 0xb52   :  { %4660 = vsyncpa [#allocation16], 1 }
 0xb53   :  { %4661 = vsyncpa [#allocation5], 1 }
 0xb54   :  { %4663 = vsyncpa [#allocation5 + $0x1], 1 }

</bundles_post_ra>
